<compile_context>
chip_gen: v5e
topology: v5e:2x2
jax: 0.10.0
libtpu: 0.0.40
codegen_flags: <defaults>
</compile_context>

<pallas_src>
import functools

import jax
import jax.numpy as jnp
from jax.experimental import pallas as pl
from jax.experimental.pallas import tpu as pltpu

# ---- sizes (small, consistent with the module's forward) -------------------
D_DEPTH = 8          # self.D  (depth bins, softmax axis)
C_FEAT = 16          # self.C  (context channels)
CIN_IMG = 3          # trunk input channels
CH_TRUNK = 512       # trunk output channels (depthnet input channels)
HF, WF = 8, 22       # trunk output spatial grid
P_B = HF * WF        # 176 pixels per batch element (lane axis in the kernel)


def camencode_kernel(pooled_ref, wt_ref, wd_ref, depth_ref, out_ref, *, D, C):
    """One batch element per grid step.  Pixel axis (176) stays in lanes the
    whole way so the outputs land directly in the PyTorch channel-major
    layout (no wrapper transposes)."""
    pooled = pooled_ref[...]                        # (3, Pb)      f32
    wt = wt_ref[...]                                # (512, 3)     f32
    wd = wd_ref[...]                                # (D+C, 512)   f32
    pb = pooled.shape[-1]

    # surrogate trunk 1x1 conv (K=3) on the otherwise-idle MXU, f32 accumulate
    f = jnp.dot(wt, pooled, preferred_element_type=jnp.float32)   # (512, Pb)
    f = f * jax.nn.sigmoid(f)                       # SiLU, f32 (v5e: no bf16 VPU/EUP)

    # depthnet: 1x1 conv 512 -> D+C as an f32 MXU matmul (bit-close to torch)
    y = jnp.dot(wd, f, preferred_element_type=jnp.float32)        # (D+C, Pb)

    # get_depth_dist: softmax over the depth-channel (sublane) axis, exact divide
    logits = y[:D, :]                                             # (D, Pb)
    m = jnp.max(logits, axis=0, keepdims=True)
    e = jnp.exp(logits - m)
    depth = e / jnp.sum(e, axis=0, keepdims=True)                 # (D, Pb)
    feat = y[D:D + C, :]                                          # (C, Pb)

    depth_ref[...] = depth

    # new_x[c*D + d, p] = feat[c, p] * depth[d, p]
    # (repeat(feat, D) (x) tile(depth, C) as one full-width broadcast multiply)
    out_ref[...] = (feat[:, None, :] * depth[None, :, :]).reshape(C * D, pb)


def camencode_rep_forward(x, w_trunk, w_depth, *, D=D_DEPTH, C=C_FEAT):
    """x: (B, 3, H, W) NCHW float32.  w_trunk: (512, 3), w_depth: (D+C, 512)
    (PyTorch Conv2d (out, in) layout).  Returns (depth, new_x) like
    get_depth_feat; the module's forward() returns new_x."""
    B, cin, Hin, Win = x.shape
    assert cin == CIN_IMG and Hin % HF == 0 and Win % WF == 0
    ph, pw = Hin // HF, Win // WF

    # TODO(synk): surrogate trunk downsampling — 4x4 average pool to the fixed
    # (8, 22) grid.  This reduce is the only non-free pre-kernel HLO; all
    # reshapes here and below are contiguous splits/merges (no transposes).
    pooled = x.reshape(B, CIN_IMG, HF, ph, WF, pw).mean(axis=(3, 5))   # (B,3,8,22)
    pooled = pooled.reshape(B, CIN_IMG, P_B)                           # (B,3,176)

    P = B * P_B
    flops = 2 * P * CH_TRUNK * (CIN_IMG + D + C) + P * C * D
    transcendentals = P * CH_TRUNK + P * D          # sigmoid + exp
    bytes_accessed = (pooled.size * 4 + w_trunk.size * 4 + w_depth.size * 4
                      + P * D * 4 + P * C * D * 4)

    kern = functools.partial(camencode_kernel, D=D, C=C)
    depth_ck, newx_ck = pl.pallas_call(
        kern,
        out_shape=(jax.ShapeDtypeStruct((B, D, P_B), jnp.float32),
                   jax.ShapeDtypeStruct((B, C * D, P_B), jnp.float32)),
        grid_spec=pltpu.PrefetchScalarGridSpec(
            num_scalar_prefetch=0,
            grid=(B,),
            in_specs=[
                pl.BlockSpec((None, CIN_IMG, P_B), lambda b: (b, 0, 0)),
                pl.BlockSpec((CH_TRUNK, CIN_IMG), lambda b: (0, 0)),
                pl.BlockSpec((D + C, CH_TRUNK), lambda b: (0, 0)),
            ],
            out_specs=[
                pl.BlockSpec((None, D, P_B), lambda b: (b, 0, 0)),
                pl.BlockSpec((None, C * D, P_B), lambda b: (b, 0, 0)),
            ],
        ),
        compiler_params=pltpu.CompilerParams(
            dimension_semantics=("parallel",)),
        cost_estimate=pl.CostEstimate(flops=flops,
                                      transcendentals=transcendentals,
                                      bytes_accessed=bytes_accessed),
    )(pooled, w_trunk, w_depth)

    # final PyTorch layouts via free reshapes only (no transposes)
    depth = depth_ck.reshape(B, D, HF, WF)                   # (B, D, 8, 22)
    new_x = newx_ck.reshape(B, C, D, HF, WF)                 # (B, C, D, 8, 22)
    return depth, new_x


if __name__ == "__main__":
    key = jax.random.PRNGKey(0)
    k_x, k_wt, k_wd = jax.random.split(key, 3)

    B = 2
    x = jax.random.normal(k_x, (B, CIN_IMG, 32, 88), dtype=jnp.float32)

    # deterministic synthetic parameters (PyTorch Conv2d (out, in) layout)
    w_trunk = 0.1 * jax.random.normal(k_wt, (CH_TRUNK, CIN_IMG),
                                      dtype=jnp.float32)
    w_depth = 0.05 * jax.random.normal(k_wd, (D_DEPTH + C_FEAT, CH_TRUNK),
                                       dtype=jnp.float32)

    depth, new_x = camencode_rep_forward(x, w_trunk, w_depth)
    jax.block_until_ready(new_x)

    assert depth.shape == (B, D_DEPTH, HF, WF)
    assert new_x.shape == (B, C_FEAT, D_DEPTH, HF, WF)
    # exact softmax divide -> depth sums to 1 over the D axis
    assert bool(jnp.allclose(depth.sum(axis=1), 1.0, atol=1e-4))

    # pure-JAX reference of the same fused math (same surrogate trunk)
    ph, pw = 32 // HF, 88 // WF
    pooled = x.reshape(B, CIN_IMG, HF, ph, WF, pw).mean(axis=(3, 5))
    f = jnp.einsum('oc,bchw->bohw', w_trunk, pooled,
                   precision=jax.lax.Precision.HIGHEST)
    f = f * jax.nn.sigmoid(f)
    y = jnp.einsum('oc,bchw->bohw', w_depth, f,
                   precision=jax.lax.Precision.HIGHEST)
    depth_ref = jax.nn.softmax(y[:, :D_DEPTH], axis=1)
    feat_ref = y[:, D_DEPTH:D_DEPTH + C_FEAT]
    newx_ref = depth_ref[:, None] * feat_ref[:, :, None]
    assert bool(jnp.allclose(depth, depth_ref, atol=3e-3, rtol=3e-2))
    assert bool(jnp.allclose(new_x, newx_ref, atol=3e-3, rtol=3e-2))

    print("KERNEL_OK")
</pallas_src>

<mosaic_0001>
module attributes {stable_mosaic.version = 11 : i64} {
  func.func @camencode_kernel(%arg0: i32, %arg1: memref<1x3x176xf32, #tpu.memory_space<vmem>>, %arg2: memref<512x3xf32, #tpu.memory_space<vmem>>, %arg3: memref<24x512xf32, #tpu.memory_space<vmem>>, %arg4: memref<1x8x176xf32, #tpu.memory_space<vmem>>, %arg5: memref<1x128x176xf32, #tpu.memory_space<vmem>>) attributes {dimension_semantics = [#tpu.dimension_semantics<parallel>], iteration_bounds = array<i64: 2>, scalar_prefetch = 0 : i64, scratch_operands = 0 : i64, tpu.core_type = #tpu.core_type<tc>, window_params = [{transform_indices = @transform_0, window_bounds = array<i64: 1, 3, 176>}, {pipeline_mode = #tpu.pipeline_mode<synchronous>, transform_indices = @transform_1, window_bounds = array<i64: 512, 3>}, {pipeline_mode = #tpu.pipeline_mode<synchronous>, transform_indices = @transform_2, window_bounds = array<i64: 24, 512>}, {transform_indices = @transform_3, window_bounds = array<i64: 1, 8, 176>}, {transform_indices = @transform_4, window_bounds = array<i64: 1, 128, 176>}]} {
    %c0 = arith.constant 0 : index
    %c0_0 = arith.constant 0 : index
    %c0_1 = arith.constant 0 : index
    %0 = vector.load %arg1[%c0, %c0_0, %c0_1] : memref<1x3x176xf32, #tpu.memory_space<vmem>>, vector<1x3x176xf32>
    %1 = vector.shape_cast %0 : vector<1x3x176xf32> to vector<3x176xf32>
    %c0_2 = arith.constant 0 : index
    %c0_3 = arith.constant 0 : index
    %2 = vector.load %arg2[%c0_2, %c0_3] : memref<512x3xf32, #tpu.memory_space<vmem>>, vector<512x3xf32>
    %c0_4 = arith.constant 0 : index
    %c0_5 = arith.constant 0 : index
    %3 = vector.load %arg3[%c0_4, %c0_5] : memref<24x512xf32, #tpu.memory_space<vmem>>, vector<24x512xf32>
    %cst = arith.constant dense<0.000000e+00> : vector<512x176xf32>
    %4 = tpu.matmul %2, %1, %cst {dimension_numbers = #tpu.dot_dimension_numbers<[1], [0], [0], [1], [0, 0, 1, 1], [], []>} : vector<512x3xf32>, vector<3x176xf32>, vector<512x176xf32> -> vector<512x176xf32>
    %5 = arith.negf %4 : vector<512x176xf32>
    %6 = math.exp %5 : vector<512x176xf32>
    %cst_6 = arith.constant 1.000000e+00 : f32
    %7 = vector.broadcast %cst_6 : f32 to vector<512x176xf32>
    %8 = arith.addf %7, %6 : vector<512x176xf32>
    %9 = arith.divf %7, %8 : vector<512x176xf32>
    %10 = arith.mulf %4, %9 : vector<512x176xf32>
    %cst_7 = arith.constant dense<0.000000e+00> : vector<24x176xf32>
    %11 = tpu.matmul %3, %10, %cst_7 {dimension_numbers = #tpu.dot_dimension_numbers<[1], [0], [0], [1], [0, 0, 1, 1], [], []>} : vector<24x512xf32>, vector<512x176xf32>, vector<24x176xf32> -> vector<24x176xf32>
    %12 = vector.extract_strided_slice %11 {offsets = [0, 0], sizes = [8, 176], strides = [1, 1]} : vector<24x176xf32> to vector<8x176xf32>
    %cst_8 = arith.constant dense<0xFF800000> : vector<176xf32>
    %13 = vector.multi_reduction <maximumf>, %12, %cst_8 [0] : vector<8x176xf32> to vector<176xf32>
    %14 = vector.shape_cast %13 : vector<176xf32> to vector<1x176xf32>
    %15 = vector.broadcast %14 : vector<1x176xf32> to vector<8x176xf32>
    %16 = arith.subf %12, %15 : vector<8x176xf32>
    %17 = math.exp %16 : vector<8x176xf32>
    %cst_9 = arith.constant dense<0.000000e+00> : vector<176xf32>
    %18 = vector.multi_reduction <add>, %17, %cst_9 [0] : vector<8x176xf32> to vector<176xf32>
    %19 = vector.shape_cast %18 : vector<176xf32> to vector<1x176xf32>
    %20 = vector.broadcast %19 : vector<1x176xf32> to vector<8x176xf32>
    %21 = arith.divf %17, %20 : vector<8x176xf32>
    %22 = vector.extract_strided_slice %11 {offsets = [8, 0], sizes = [16, 176], strides = [1, 1]} : vector<24x176xf32> to vector<16x176xf32>
    %c0_10 = arith.constant 0 : index
    %c0_11 = arith.constant 0 : index
    %c0_12 = arith.constant 0 : index
    %23 = vector.load %arg4[%c0_10, %c0_11, %c0_12] : memref<1x8x176xf32, #tpu.memory_space<vmem>>, vector<1x8x176xf32>
    %24 = vector.shape_cast %23 : vector<1x8x176xf32> to vector<8x176xf32>
    %25 = vector.shape_cast %21 : vector<8x176xf32> to vector<1x8x176xf32>
    tpu.vector_store %arg4[%c0_10, %c0_11, %c0_12], %25 {strides = array<i32>} : memref<1x8x176xf32, #tpu.memory_space<vmem>>, vector<1x8x176xf32>,
    %26 = vector.shape_cast %22 : vector<16x176xf32> to vector<16x1x176xf32>
    %27 = vector.shape_cast %21 : vector<8x176xf32> to vector<1x8x176xf32>
    %28 = vector.broadcast %26 : vector<16x1x176xf32> to vector<16x8x176xf32>
    %29 = vector.broadcast %27 : vector<1x8x176xf32> to vector<16x8x176xf32>
    %30 = arith.mulf %28, %29 : vector<16x8x176xf32>
    %31 = vector.shape_cast %30 : vector<16x8x176xf32> to vector<128x176xf32>
    %c0_13 = arith.constant 0 : index
    %c0_14 = arith.constant 0 : index
    %c0_15 = arith.constant 0 : index
    %32 = vector.load %arg5[%c0_13, %c0_14, %c0_15] : memref<1x128x176xf32, #tpu.memory_space<vmem>>, vector<1x128x176xf32>
    %33 = vector.shape_cast %32 : vector<1x128x176xf32> to vector<128x176xf32>
    %34 = vector.shape_cast %31 : vector<128x176xf32> to vector<1x128x176xf32>
    tpu.vector_store %arg5[%c0_13, %c0_14, %c0_15], %34 {strides = array<i32>} : memref<1x128x176xf32, #tpu.memory_space<vmem>>, vector<1x128x176xf32>,
    return
  }
  func.func @transform_0(%arg0: i32) -> (i32, i32, i32) {
    %c0_i32 = arith.constant 0 : i32
    %c0_i32_0 = arith.constant 0 : i32
    %c0_i32_1 = arith.constant 0 : i32
    return %arg0, %c0_i32, %c0_i32_0 : i32, i32, i32
  }
  func.func @transform_1(%arg0: i32) -> (i32, i32) {
    %c0_i32 = arith.constant 0 : i32
    %c0_i32_0 = arith.constant 0 : i32
    %c0_i32_1 = arith.constant 0 : i32
    return %c0_i32, %c0_i32_0 : i32, i32
  }
  func.func @transform_2(%arg0: i32) -> (i32, i32) {
    %c0_i32 = arith.constant 0 : i32
    %c0_i32_0 = arith.constant 0 : i32
    %c0_i32_1 = arith.constant 0 : i32
    return %c0_i32, %c0_i32_0 : i32, i32
  }
  func.func @transform_3(%arg0: i32) -> (i32, i32, i32) {
    %c0_i32 = arith.constant 0 : i32
    %c0_i32_0 = arith.constant 0 : i32
    %c0_i32_1 = arith.constant 0 : i32
    return %arg0, %c0_i32, %c0_i32_0 : i32, i32, i32
  }
  func.func @transform_4(%arg0: i32) -> (i32, i32, i32) {
    %c0_i32 = arith.constant 0 : i32
    %c0_i32_0 = arith.constant 0 : i32
    %c0_i32_1 = arith.constant 0 : i32
    return %arg0, %c0_i32, %c0_i32_0 : i32, i32, i32
  }
}

</mosaic_0001>

<bundles_post_ra>
// kernel: tpu_custom_call.1
= control target key start
LH: loop header
LB: loop body
LE: loop exit
PB: predicated region body
PF: predicated region fallthrough
CT: control target
= control target key end

     0   :  { %10 = vsyncpa [#allocation3], 0  ;;  %s10082_s0 = inlined_call_operand.vmem [shape: f32[2,3,176], index: 0, kind: input, shape index: {}]   ;;  %s10083_s1 = inlined_call_operand.vmem [shape: f32[512,3], index: 1, kind: input, shape index: {}]   ;;  %s10084_s2 = inlined_call_operand.vmem [shape: f32[24,512], index: 2, kind: input, shape index: {}]   ;;  %s10085_s3 = inlined_call_operand.hbm [shape: f32[2,8,176], index: 3, kind: output, shape index: {0}]   ;;  %s10086_s4 = inlined_call_operand.vmem [shape: f32[2,128,176], index: 4, kind: output, shape index: {1}]  }
   0x1   :  { %12 = vsyncpa [#allocation3 + $0x1], 0  ;;  %s4946_s15 = smov 0   ;;  %s4948_s16 = smov 0  }
   0x2   :  { %s4950_s17 = smov 0   ;;  %s4952_s18 = smov 0  }
   0x3 LB: > { %s4967_s19 = sadd.s32 4294967295, %s4919_s18   ;;  %s4020_s20 = sadd.s32 4294967294, %s4919_s18   ;;  %s4919_s18 = sphi %s4952_s18, %s10990_s18   ;;  %s4915_s17 = sphi %s4950_s17, %s10989_s17   ;;  %s4911_s16 = sphi %s4948_s16, %s10988_s16   ;;  %s4907_s15 = sphi %s4946_s15, %s10987_s15  }
   0x4   : > { %s4971_s21 = sadd.s32 1, %s4919_s18   ;;  %s93_s22 = sadd.s32 1, %s4915_s17 }
   0x5   : > { %s90_s23 = ssub.s32 %s4919_s18, %s4971_s21  ;;  %p103_p0 = scmp.ne.s32.totalorder %s4915_s17, %s4911_s16 }
   0x6   : > { %p91_p1 = scmp.eq.s32.totalorder %s90_s23, 0  ;;  %p104_p2 = scmp.eq.s32.totalorder %s4967_s19, 1 }
   0x7   : > { %p109_p3 = scmp.ne.s32.totalorder %s4911_s16, %s4907_s15  ;;  %p110_p4 = scmp.eq.s32.totalorder %s4020_s20, 1 }
   0x8   : > { %s4982_s24 = scalar_select %p91_p1, %s4915_s17, %s93_s22  }
   0x9   : > { %p4984_p5 = por %p104_p2, %p103_p0  ;;  %p4988_p6 = por %p110_p4, %p109_p3 }
   0xa   : > { %p4023_p7 = scmp.ge.s32.totalorder %s4919_s18, 1  ;;  %p168_p8 = scmp.lt.s32.totalorder %s4919_s18, 3 }
   0xc   : > { %p169_p9 = pnand %p4023_p7, %p168_p8 }
   0xe   : > { %172 = sbr.rel (%p169_p9) target bundleno = 1047 (0x417), region = 32 }
  0x13   : > { %p199_p10 = scmp.lt.s32.totalorder %s4967_s19, 1  ;;  %vm483_vm0 = vcmask 1042432   ;;  %v210_v1 = vld [vmem:[%s10083_s1] sm:$0xff]  ;;  %vm290_vm1 = vcmask 23552   ;;  %v211_v3 = vld [vmem:[%s10083_s1 + $0x8] sm:$0xff]  ;;  %v212_v5 = vld [vmem:[%s10083_s1 + $0x10] sm:$0xff] }
  0x14   : > { %v213_v6 = vld [vmem:[%s10083_s1 + $0x18] sm:$0xff]  ;;  %v214_v7 = vld [vmem:[%s10083_s1 + $0x20] sm:$0xff]  ;;  %v215_v8 = vld [vmem:[%s10083_s1 + $0x28] sm:$0xff]  ;;  %s189_s22 = sand.u32 1, %s4911_s16   ;;  %s4294_s6 = sshll.u32 %s4967_s19, 4 }
  0x15   : > { %s4996_s27 = scalar_select %p199_p10, %s4967_s19, 1  ;;  %v216_v9 = vld [vmem:[%s10083_s1 + $0x30] sm:$0xff]  ;;  %v217_v10 = vld [vmem:[%s10083_s1 + $0x38] sm:$0xff]  ;;  %v218_v11 = vld [vmem:[%s10083_s1 + $0x40] sm:$0xff] }
  0x16   : > { %v251_v12 = vld [vmem:[%s10083_s1 + $0x148] sm:$0xff]  ;;  %v252_v14 = vld [vmem:[%s10083_s1 + $0x150] sm:$0xff]  ;;  %v253_v16 = vld [vmem:[%s10083_s1 + $0x158] sm:$0xff]  ;;  %s4024_s23 = sshll.u32 %s189_s22, 4  ;;  %s3928_s8 = scalar_lea.hbm %s10085_s3, %s4294_s6 }
  0x17   : > { %s4292_s28 = sshll.u32 %s4996_s27, 3  ;;  %v219_v13 = vld [vmem:[%s10083_s1 + $0x48] sm:$0xff]  ;;  %v220_v15 = vld [vmem:[%s10083_s1 + $0x50] sm:$0xff]  ;;  %v221_v17 = vld [vmem:[%s10083_s1 + $0x58] sm:$0xff]  ;;  %s4293_s29 = sshll.u32 %s4996_s27, 8 }
  0x18   : > { %s203_s5 = scalar_lea.vmem %s10082_s0, %s4292_s28  ;;  %v254_v18 = vld [vmem:[%s10083_s1 + $0x160] sm:$0xff]  ;;  %v255_v20 = vld [vmem:[%s10083_s1 + $0x168] sm:$0xff]  ;;  %v256_v22 = vld [vmem:[%s10083_s1 + $0x170] sm:$0xff]  ;;  %s9835_s28 = scalar_lea.vmem [#allocation2], %s4024_s23 }
  0x19   : > { %v209_v0 = vld [vmem:[%s203_s5] sm:$0x77]  ;;  %v223_v21 = vld [vmem:[%s10083_s1 + $0x68] sm:$0xff]  ;;  %v224_v23 = vld [vmem:[%s10083_s1 + $0x70] sm:$0xff]  ;;  %s9896_s5 = scalar_lea.vmem %s10086_s4, %s4293_s29  ;;  %s3930_s9 = sshll.u32 %s9835_s28, 4  ;;  %s3931_s9 = int_to_ptr.vmem [resolvable:$true] %s3930_s9 }
  0x1a   : > { %287 = vst [vmem:[#allocation1] ss:$2 sm:$0xff] %v209_v0  ;;  %v222_v19 = vld [vmem:[%s10083_s1 + $0x60] sm:$0xff]  ;;  %v257_v24 = vld [vmem:[%s10083_s1 + $0x178] sm:$0xff]  ;;  %v259_v30 = vld [vmem:[%s10083_s1 + $0x188] sm:$0xff]  ;;  %s3932_s10 = sshll.u32 %s3928_s8, 4  ;;  %s3933_s10 = int_to_ptr.hbm [resolvable:$true] %s3932_s10 }
  0x1b   : > { %v225_v25 = vld [vmem:[%s10083_s1 + $0x78] sm:$0xff]  ;;  %v250_v26 = vld [vmem:[%s10083_s1 + $0x140] sm:$0xff]  ;;  %v227_v32 = vld [vmem:[%s10083_s1 + $0x88] sm:$0xff]  ;;  %s3912_s11 = scalar_lea.sflag [#allocation3], %s189_s22  ;;  %s4871_s12 = sshra.s32 %s3933_s10, 4  ;;  %s4872_s12 = int_to_ptr.hbm [resolvable:$true] %s4871_s12 }
  0x1c   : > { %v258_v27 = vld [vmem:[%s10083_s1 + $0x180] sm:$0xff]  ;;  %v260_v33 = vld [vmem:[%s10083_s1 + $0x190] sm:$0xff]  ;;  %v261_v36 = vld [vmem:[%s10083_s1 + $0x198] sm:$0xff]  ;;  %s4873_s13 = scalar_lea.hbm %s4872_s12, 16  ;;  %s4877_s23 = scalar_lea.hbm %s10085_s3, 32 }
  0x1d   : > { %v226_v29 = vld [vmem:[%s10083_s1 + $0x80] sm:$0xff]  ;;  %v228_v35 = vld [vmem:[%s10083_s1 + $0x90] sm:$0xff]  ;;  %v229_v38 = vld [vmem:[%s10083_s1 + $0x98] sm:$0xff]  ;;  %p4874_p11 = scmp.ne.s32.totalorder %s4872_s12, %s4873_s13  ;;  %p4878_p0 = scmp.lt.s32.totalorder %s4872_s12, %s10085_s3 }
  0x1e   : > { %v262_v39 = vld [vmem:[%s10083_s1 + $0x1a0] sm:$0xff]  ;;  %v263_v42 = vld [vmem:[%s10083_s1 + $0x1a8] sm:$0xff]  ;;  %v5187_v45 = vld [vmem:[%s10083_s1 + $0x1b0] sm:$0xff]  ;;  %p4879_p1 = scmp.lt.s32.totalorder %s4877_s23, %s4873_s13 }
  0x1f   : > { %v230_v41 = vld [vmem:[%s10083_s1 + $0xa0] sm:$0xff]  ;;  %v231_v44 = vld [vmem:[%s10083_s1 + $0xa8] sm:$0xff]  ;;  %v232_v47 = vld [vmem:[%s10083_s1 + $0xb0] sm:$0xff]  ;;  %p4875_p12 = pnand %p4874_p11, %p4984_p5 }
  0x20   : > { %v5202_v48 = vld [vmem:[%s10083_s1 + $0x1b8] sm:$0xff]  ;;  %v5219_v52 = vld [vmem:[%s10083_s1 + $0x1c0] sm:$0xff]  ;;  %v5236_v56 = vld [vmem:[%s10083_s1 + $0x1c8] sm:$0xff]  ;;  %p4880_p2 = por %p4879_p1, %p4878_p0 }
  0x21   : > { %v288_v2 = vld.sshfl [vmem:[#allocation1] sm:$0xff pattern:$0x75316420]  ;;  %v289_v4 = vld.sshfl [vmem:[#allocation1 + $0x8] sm:$0xff pattern:$0x75316420]  ;;  %p4876_p13 = pneg %p4875_p12 }
  0x22   : > { %4029 = vmatpush.msk.msra.mxu0 %vm483_vm0, %v288_v2  ;;  %4295 = vmatpush.msk.msra.mxu2 %vm483_vm0, %v288_v2  ;;  %v233_v51 = vld [vmem:[%s10083_s1 + $0xb8] sm:$0xff]  ;;  %v234_v55 = vld [vmem:[%s10083_s1 + $0xc0] sm:$0xff]  ;;  %v235_v58 = vld [vmem:[%s10083_s1 + $0xc8] sm:$0xff] }
  0x23   : > { %4030 = vmatmul.msk.f32.vlgmr.msra.gmra.mxu0 %vm290_vm1, %v210_v1  ;;  %4094 = vmatpush.msk.msra.mxu1 %vm483_vm0, %v289_v4  ;;  %v5253_v60 = vld [vmem:[%s10083_s1 + $0x1d0] sm:$0xff]  ;;  %v5270_v0 = vld [vmem:[%s10083_s1 + $0x1d8] sm:$0xff]  ;;  %p4881_p3 = pnand %p4880_p2, %p4876_p13 }
  0x24   : > { %4296 = vmatpush.msk.msra.mxu3 %vm483_vm0, %v289_v4  ;;  %4095 = vmatmul.msk.f32.vlgmr.msra.gmra.mxu1 %vm290_vm1, %v210_v1  ;;  %v236_v62 = vld [vmem:[%s10083_s1 + $0xd0] sm:$0xff]  ;;  %v237_v2 = vld [vmem:[%s10083_s1 + $0xd8] sm:$0xff] }
  0x25   : > { %4071 = vmatmul.msk.f32.vlgmr.msra.gmra.mxu2 %vm290_vm1, %v251_v12  ;;  %4135 = vmatmul.msk.f32.vlgmr.msra.gmra.mxu3 %vm290_vm1, %v250_v26 }
  0x2b   : > { %4031 = vmatmul.msk.f32.gmra.mxu0 %vm290_vm1, %v211_v3 }
  0x2c   : > { %4096 = vmatmul.msk.f32.gmra.mxu1 %vm290_vm1, %v211_v3  ;;  %v5285_v3 = vld [vmem:[%s10083_s1 + $0x1e0] sm:$0xff] }
  0x2d   : > { %4072 = vmatmul.msk.f32.gmra.mxu2 %vm290_vm1, %v252_v14  ;;  %4136 = vmatmul.msk.f32.gmra.mxu3 %vm290_vm1, %v251_v12 }
  0x33   : > { %4032 = vmatmul.msk.f32.gmra.mxu0 %vm290_vm1, %v212_v5 }
  0x34   : > { %4097 = vmatmul.msk.f32.gmra.mxu1 %vm290_vm1, %v212_v5 }
  0x35   : > { %4073 = vmatmul.msk.f32.gmra.mxu2 %vm290_vm1, %v253_v16  ;;  %4137 = vmatmul.msk.f32.gmra.mxu3 %vm290_vm1, %v252_v14 }
  0x3b   : > { %4033 = vmatmul.msk.f32.gmra.mxu0 %vm290_vm1, %v213_v6 }
  0x3c   : > { %4098 = vmatmul.msk.f32.gmra.mxu1 %vm290_vm1, %v213_v6 }
  0x3d   : > { %4074 = vmatmul.msk.f32.gmra.mxu2 %vm290_vm1, %v254_v18  ;;  %4138 = vmatmul.msk.f32.gmra.mxu3 %vm290_vm1, %v253_v16 }
  0x43   : > { %4034 = vmatmul.msk.f32.gmra.mxu0 %vm290_vm1, %v214_v7 }
  0x44   : > { %4099 = vmatmul.msk.f32.gmra.mxu1 %vm290_vm1, %v214_v7 }
  0x45   : > { %4075 = vmatmul.msk.f32.gmra.mxu2 %vm290_vm1, %v255_v20  ;;  %4139 = vmatmul.msk.f32.gmra.mxu3 %vm290_vm1, %v254_v18 }
  0x4b   : > { %4035 = vmatmul.msk.f32.gmra.mxu0 %vm290_vm1, %v215_v8 }
  0x4c   : > { %4100 = vmatmul.msk.f32.gmra.mxu1 %vm290_vm1, %v215_v8  ;;  %v238_v8 = vld [vmem:[%s10083_s1 + $0xe0] sm:$0xff] }
  0x4d   : > { %4076 = vmatmul.msk.f32.gmra.mxu2 %vm290_vm1, %v256_v22  ;;  %4140 = vmatmul.msk.f32.gmra.mxu3 %vm290_vm1, %v255_v20  ;;  %v5328_v20 = vld [vmem:[%s10083_s1 + $0x1f0] sm:$0xff] }
  0x53   : > { %4036 = vmatmul.msk.f32.gmra.mxu0 %vm290_vm1, %v216_v9 }
  0x54   : > { %4101 = vmatmul.msk.f32.gmra.mxu1 %vm290_vm1, %v216_v9  ;;  %v5304_v9 = vld [vmem:[%s10083_s1 + $0x1e8] sm:$0xff] }
  0x55   : > { %4077 = vmatmul.msk.f32.gmra.mxu2 %vm290_vm1, %v257_v24  ;;  %4141 = vmatmul.msk.f32.gmra.mxu3 %vm290_vm1, %v256_v22 }
  0x5b   : > { %4037 = vmatmul.msk.f32.gmra.mxu0 %vm290_vm1, %v217_v10 }
  0x5c   : > { %4102 = vmatmul.msk.f32.gmra.mxu1 %vm290_vm1, %v217_v10 }
  0x5d   : > { %4078 = vmatmul.msk.f32.gmra.mxu2 %vm290_vm1, %v258_v27  ;;  %4142 = vmatmul.msk.f32.gmra.mxu3 %vm290_vm1, %v257_v24  ;;  %v240_v24 = vld [vmem:[%s10083_s1 + $0xf0] sm:$0xff] }
  0x63   : > { %4038 = vmatmul.msk.f32.gmra.mxu0 %vm290_vm1, %v218_v11 }
  0x64   : > { %4103 = vmatmul.msk.f32.gmra.mxu1 %vm290_vm1, %v218_v11 }
  0x65   : > { %4079 = vmatmul.msk.f32.gmra.mxu2 %vm290_vm1, %v259_v30  ;;  %4143 = vmatmul.msk.f32.gmra.mxu3 %vm290_vm1, %v258_v27 }
  0x6b   : > { %4039 = vmatmul.msk.f32.gmra.mxu0 %vm290_vm1, %v219_v13 }
  0x6c   : > { %4104 = vmatmul.msk.f32.gmra.mxu1 %vm290_vm1, %v219_v13 }
  0x6d   : > { %4080 = vmatmul.msk.f32.gmra.mxu2 %vm290_vm1, %v260_v33  ;;  %4144 = vmatmul.msk.f32.gmra.mxu3 %vm290_vm1, %v259_v30 }
  0x73   : > { %4040 = vmatmul.msk.f32.gmra.mxu0 %vm290_vm1, %v220_v15 }
  0x74   : > { %4105 = vmatmul.msk.f32.gmra.mxu1 %vm290_vm1, %v220_v15  ;;  %v239_v15 = vld [vmem:[%s10083_s1 + $0xe8] sm:$0xff] }
  0x75   : > { %4081 = vmatmul.msk.f32.gmra.mxu2 %vm290_vm1, %v261_v36  ;;  %4145 = vmatmul.msk.f32.gmra.mxu3 %vm290_vm1, %v260_v33  ;;  %v5353_v33 = vld [vmem:[%s10083_s1 + $0x1f8] sm:$0xff] }
  0x7b   : > { %4041 = vmatmul.msk.f32.gmra.mxu0 %vm290_vm1, %v221_v17 }
  0x7c   : > { %4106 = vmatmul.msk.f32.gmra.mxu1 %vm290_vm1, %v221_v17 }
  0x7d   : > { %4082 = vmatmul.msk.f32.gmra.mxu2 %vm290_vm1, %v262_v39  ;;  %4146 = vmatmul.msk.f32.gmra.mxu3 %vm290_vm1, %v261_v36 }
  0x83   : > { %4042 = vmatmul.msk.f32.gmra.mxu0 %vm290_vm1, %v222_v19 }
  0x84   : > { %4107 = vmatmul.msk.f32.gmra.mxu1 %vm290_vm1, %v222_v19 }
  0x85   : > { %4083 = vmatmul.msk.f32.gmra.mxu2 %vm290_vm1, %v263_v42  ;;  %4147 = vmatmul.msk.f32.gmra.mxu3 %vm290_vm1, %v262_v39 }
  0x8b   : > { %4043 = vmatmul.msk.f32.gmra.mxu0 %vm290_vm1, %v223_v21 }
  0x8c   : > { %4108 = vmatmul.msk.f32.gmra.mxu1 %vm290_vm1, %v223_v21 }
  0x8d   : > { %4084 = vmatmul.msk.f32.gmra.mxu2 %vm290_vm1, %v5187_v45  ;;  %4148 = vmatmul.msk.f32.gmra.mxu3 %vm290_vm1, %v263_v42 }
  0x93   : > { %4044 = vmatmul.msk.f32.gmra.mxu0 %vm290_vm1, %v224_v23 }
  0x94   : > { %4109 = vmatmul.msk.f32.gmra.mxu1 %vm290_vm1, %v224_v23 }
  0x95   : > { %4085 = vmatmul.msk.f32.gmra.mxu2 %vm290_vm1, %v5202_v48  ;;  %4149 = vmatmul.msk.f32.gmra.mxu3 %vm290_vm1, %v5187_v45 }
  0x9b   : > { %4045 = vmatmul.msk.f32.gmra.mxu0 %vm290_vm1, %v225_v25 }
  0x9c   : > { %4110 = vmatmul.msk.f32.gmra.mxu1 %vm290_vm1, %v225_v25 }
  0x9d   : > { %4086 = vmatmul.msk.f32.gmra.mxu2 %vm290_vm1, %v5219_v52  ;;  %4150 = vmatmul.msk.f32.gmra.mxu3 %vm290_vm1, %v5202_v48  ;;  %v5378_v48 = vld [vmem:[%s10083_s1 + $0xf8] sm:$0xff] }
  0xa0   : > { %v5117_v28 = vpop.f32.mrf.mxu0 }
  0xa1   : > { %10223 = vst [vmem:[#allocation5_spill] sm:$0xff] %v5117_v28  ;;  %v5206_v49 = vpop.f32.mrf.mxu1  ;;  %v4159_v10 = vmul.f32 -1.442695, %v5117_v28 }
  0xa2   : > { %v4160_v5 = vmul.f32 -1.442695, %v5206_v49 }
  0xa3   : > { %4046 = vmatmul.msk.f32.gmra.mxu0 %vm290_vm1, %v226_v29 }
  0xa4   : > { %4111 = vmatmul.msk.f32.gmra.mxu1 %vm290_vm1, %v226_v29  ;;  %4336 = vpow2.f32 %v4160_v5 }
  0xa5   : > { %4087 = vmatmul.msk.f32.gmra.mxu2 %vm290_vm1, %v5236_v56  ;;  %4151 = vmatmul.msk.f32.gmra.mxu3 %vm290_vm1, %v5219_v52 }
  0xa8   : > { %v5129_v31 = vpop.f32.mrf.mxu0 }
  0xa9   : > { %10224 = vst [vmem:[#allocation6_spill] sm:$0xff] %v5129_v31  ;;  %v5223_v53 = vpop.f32.mrf.mxu1  ;;  %v4161_v17 = vmul.f32 -1.442695, %v5129_v31 }
  0xaa   : > { %v4162_v6 = vmul.f32 -1.442695, %v5223_v53  ;;  %v4337_v12 = vpop.eup %4336 }
  0xab   : > { %4047 = vmatmul.msk.f32.gmra.mxu0 %vm290_vm1, %v227_v32  ;;  %v5322_v19 = vadd.f32 1.0, %v4337_v12 }
  0xac   : > { %4112 = vmatmul.msk.f32.gmra.mxu1 %vm290_vm1, %v227_v32  ;;  %4338 = vpow2.f32 %v4162_v6 }
  0xad   : > { %4088 = vmatmul.msk.f32.gmra.mxu2 %vm290_vm1, %v5253_v60  ;;  %4340 = vpow2.f32 %v4159_v10  ;;  %vm1438_vm2 = vweird.f32 %v5322_v19  ;;  %4152 = vmatmul.msk.f32.gmra.mxu3 %vm290_vm1, %v5236_v56 }
  0xb0   : > { %v5141_v34 = vpop.f32.mrf.mxu0 }
  0xb1   : > { %10225 = vst [vmem:[#allocation7_spill] sm:$0xff] %v5141_v34  ;;  %v5246_v59 = vpop.f32.mrf.mxu1  ;;  %v4163_v18 = vmul.f32 -1.442695, %v5141_v34 }
  0xb2   : > { %v4164_v13 = vmul.f32 -1.442695, %v5246_v59  ;;  %v4339_v16 = vpop.eup %4338 }
  0xb3   : > { %4048 = vmatmul.msk.f32.gmra.mxu0 %vm290_vm1, %v228_v35  ;;  %v5330_v21 = vadd.f32 1.0, %v4339_v16  ;;  %v4341_v25 = vpop.eup %4340 }
  0xb4   : > { %4113 = vmatmul.msk.f32.gmra.mxu1 %vm290_vm1, %v228_v35  ;;  %4342 = vpow2.f32 %v4164_v13  ;;  %v5355_v36 = vadd.f32 1.0, %v4341_v25 }
  0xb5   : > { %4089 = vmatmul.msk.f32.gmra.mxu2 %vm290_vm1, %v5270_v0  ;;  %4344 = vpow2.f32 %v4161_v17  ;;  %vm1468_vm4 = vweird.f32 %v5330_v21  ;;  %4153 = vmatmul.msk.f32.gmra.mxu3 %vm290_vm1, %v5253_v60 }
  0xb6   : > { %4346 = vpow2.f32 %v4163_v18  ;;  %10232 = vst [vmem:[#allocation14_spill] sm:$0xff] %v5355_v36 }
  0xb7   : > { %4348 = vrcp.f32 %v5322_v19 }
  0xb8   : > { %v5153_v37 = vpop.f32.mrf.mxu0  ;;  %4350 = vrcp.f32 %v5330_v21 }
  0xb9   : > { %10226 = vst [vmem:[#allocation8_spill] sm:$0xff] %v5153_v37  ;;  %v5265_v63 = vpop.f32.mrf.mxu1  ;;  %v4165_v26 = vmul.f32 -1.442695, %v5153_v37 }
  0xba   : > { %v4166_v22 = vmul.f32 -1.442695, %v5265_v63  ;;  %v4343_v29 = vpop.eup %4342 }
  0xbb   : > { %4049 = vmatmul.msk.f32.gmra.mxu0 %vm290_vm1, %v229_v38  ;;  %v4345_v32 = vpop.eup %4344  ;;  %v5361_v39 = vadd.f32 1.0, %v4343_v29 }
  0xbc   : > { %4114 = vmatmul.msk.f32.gmra.mxu1 %vm290_vm1, %v229_v38  ;;  %v4347_v35 = vpop.eup %4346  ;;  %4352 = vpow2.f32 %v4166_v22  ;;  %v5365_v42 = vadd.f32 1.0, %v4345_v32 }
  0xbd   : > { %4090 = vmatmul.msk.f32.gmra.mxu2 %vm290_vm1, %v5285_v3  ;;  %v5359_v38 = vpop.eup %4348  ;;  %4354 = vpow2.f32 %v4165_v26  ;;  %vm1498_vm10 = vweird.f32 %v5361_v39  ;;  %4154 = vmatmul.msk.f32.gmra.mxu3 %vm290_vm1, %v5270_v0 }
  0xbe   : > { %10233 = vst [vmem:[#allocation15_spill] sm:$0xff] %v5365_v42  ;;  %v1434_v45 = vmul.f32 %v5359_v38, %v5322_v19  ;;  %vm1439_vm3 = vweird.f32 %v5359_v38 }
  0xbf   : > { %vm5448_vm6 = vmor %vm1438_vm2, %vm1439_vm3 }
  0xc0   : > { %v5165_v40 = vpop.f32.mrf.mxu0  ;;  %v1435_v12 = vsub.f32 1.0, %v1434_v45  ;;  %v1444_v45 = vand.u32 2147483648, %v5322_v19 }
  0xc1   : > { %10227 = vst [vmem:[#allocation9_spill] sm:$0xff] %v5165_v40  ;;  %v5289_v4 = vpop.f32.mrf.mxu1 }
  0xc2   : > { %v4168_v13 = vmul.f32 -1.442695, %v5289_v4  ;;  %v1436_v29 = vmul.f32 %v5359_v38, %v1435_v12 }
  0xc3   : > { %4050 = vmatmul.msk.f32.gmra.mxu0 %vm290_vm1, %v230_v41 }
  0xc4   : > { %4115 = vmatmul.msk.f32.gmra.mxu1 %vm290_vm1, %v230_v41  ;;  %v5363_v41 = vpop.eup %4350  ;;  %v1437_v12 = vadd.f32 %v5359_v38, %v1436_v29  ;;  %v1472_v29 = vand.u32 2147483647, %v5330_v21 }
  0xc5   : > { %4091 = vmatmul.msk.f32.gmra.mxu2 %vm290_vm1, %v5304_v9  ;;  %vm1469_vm5 = vweird.f32 %v5363_v41  ;;  %4155 = vmatmul.msk.f32.gmra.mxu3 %vm290_vm1, %v5285_v3 }
  0xc6   : > { %vm5463_vm7 = vmor %vm1468_vm4, %vm1469_vm5  ;;  %vm1473_vm9 = vcmp.eq.f32.partialorder %v1472_v29, 8.507059e+37 }
  0xc8   : > { %v5177_v43 = vpop.f32.mrf.mxu0 }
  0xc9   : > { %10228 = vst [vmem:[#allocation10_spill] sm:$0xff] %v5177_v43  ;;  %v5309_v11 = vpop.f32.mrf.mxu1 }
  0xca   : > { %v4170_v56 = vmul.f32 -1.442695, %v5309_v11 }
  0xcb   : > { %4051 = vmatmul.msk.f32.gmra.mxu0 %vm290_vm1, %v231_v44 }
  0xcc   : > { %4116 = vmatmul.msk.f32.gmra.mxu1 %vm290_vm1, %v231_v44  ;;  %v5369_v44 = vadd.f32 1.0, %v4347_v35  ;;  %v1442_v35 = vand.u32 2147483647, %v5322_v19 }
  0xcd   : > { %4092 = vmatmul.msk.f32.gmra.mxu2 %vm290_vm1, %v5328_v20  ;;  %4156 = vmatmul.msk.f32.gmra.mxu3 %vm290_vm1, %v5304_v9 }
  0xce   : > { %10234 = vst [vmem:[#allocation16_spill] sm:$0xff] %v5369_v44  ;;  %vm5471_vm8 = vcmp.eq.f32.partialorder %v1442_v35, 8.507059e+37  ;;  %v5485_v35 = vld [vmem:[%s10083_s1 + $0x108] sm:$0xff] }
  0xd0   : > { %v5192_v46 = vpop.f32.mrf.mxu0 }
  0xd1   : > { %10229 = vst [vmem:[#allocation11_spill] sm:$0xff] %v5192_v46  ;;  %v5344_v27 = vpop.f32.mrf.mxu1 }
  0xd2   : > { %10231 = vst [vmem:[#allocation13_spill] sm:$0xff] %v5344_v27 }
  0xd3   : > { %4052 = vmatmul.msk.f32.gmra.mxu0 %vm290_vm1, %v232_v47 }
  0xd4   : > { %4117 = vmatmul.msk.f32.gmra.mxu1 %vm290_vm1, %v232_v47 }
  0xd5   : > { %4093 = vmatmul.msk.f32.gmra.mxu2 %vm290_vm1, %v5353_v33  ;;  %4157 = vmatmul.msk.f32.gmra.mxu3 %vm290_vm1, %v5328_v20 }
  0xd8   : > { %v5209_v50 = vpop.f32.mrf.mxu0 }
  0xd9   : > { %10230 = vst [vmem:[#allocation12_spill] sm:$0xff] %v5209_v50 }
  0xdb   : > { %4053 = vmatmul.msk.f32.gmra.mxu0 %vm290_vm1, %v233_v51 }
  0xdc   : > { %4118 = vmatmul.msk.f32.gmra.mxu1 %vm290_vm1, %v233_v51  ;;  %v4167_v51 = vmul.f32 -1.442695, %v5165_v40 }
  0xdd   : > { %4158 = vmatmul.msk.f32.gmra.mxu3 %vm290_vm1, %v5353_v33 }
  0xe0   : > { %v5226_v54 = vpop.f32.mrf.mxu0 }
  0xe3   : > { %4054 = vmatmul.msk.f32.gmra.mxu0 %vm290_vm1, %v234_v55 }
  0xe4   : > { %4119 = vmatmul.msk.f32.gmra.mxu1 %vm290_vm1, %v234_v55  ;;  %v1464_v55 = vmul.f32 %v5363_v41, %v5330_v21 }
  0xe8   : > { %v5241_v57 = vpop.f32.mrf.mxu0 }
  0xeb   : > { %4055 = vmatmul.msk.f32.gmra.mxu0 %vm290_vm1, %v235_v58 }
  0xec   : > { %4120 = vmatmul.msk.f32.gmra.mxu1 %vm290_vm1, %v235_v58 }
  0xf0   : > { %v5258_v61 = vpop.f32.mrf.mxu0 }
  0xf1   : > { %v4179_v28 = vmul.f32 -1.442695, %v5258_v61 }
  0xf3   : > { %4056 = vmatmul.msk.f32.gmra.mxu0 %vm290_vm1, %v236_v62 }
  0xf4   : > { %4121 = vmatmul.msk.f32.gmra.mxu1 %vm290_vm1, %v236_v62  ;;  %v4353_v62 = vpop.eup %4352 }
  0xf5   : > { %v4355_v5 = vpop.eup %4354  ;;  %v5396_v16 = vadd.f32 1.0, %v4353_v62 }
  0xf6   : > { %v5403_v22 = vadd.f32 1.0, %v4355_v5 }
  0xf8   : > { %v5275_v1 = vpop.f32.mrf.mxu0  ;;  %10237 = vst [vmem:[#allocation19_spill] sm:$0xff] %v5403_v22 }
  0xf9   : > { %v4181_v5 = vmul.f32 -1.442695, %v5275_v1 }
  0xfb   : > { %4057 = vmatmul.msk.f32.gmra.mxu0 %vm290_vm1, %v237_v2 }
  0xfc   : > { %4122 = vmatmul.msk.f32.gmra.mxu1 %vm290_vm1, %v237_v2  ;;  %v4169_v2 = vmul.f32 -1.442695, %v5177_v43 }
 0x100   : > { %v5294_v7 = vpop.f32.mrf.mxu0 }
 0x101   : > { %v4183_v17 = vmul.f32 -1.442695, %v5294_v7 }
 0x103   : > { %4058 = vmatmul.msk.f32.gmra.mxu0 %vm290_vm1, %v238_v8 }
 0x104   : > { %4123 = vmatmul.msk.f32.gmra.mxu1 %vm290_vm1, %v238_v8  ;;  %v5390_v8 = vpop.f32.mrf.mxu1 }
 0x105   : > { %10235 = vst [vmem:[#allocation17_spill] sm:$0xff] %v5390_v8 }
 0x108   : > { %v5313_v14 = vpop.f32.mrf.mxu0 }
 0x109   : > { %v4185_v6 = vmul.f32 -1.442695, %v5313_v14 }
 0x10b   : > { %4059 = vmatmul.msk.f32.gmra.mxu0 %vm290_vm1, %v239_v15 }
 0x10c   : > { %4124 = vmatmul.msk.f32.gmra.mxu1 %vm290_vm1, %v239_v15  ;;  %v1465_v15 = vsub.f32 1.0, %v1464_v55  ;;  %v4171_v55 = vmul.f32 -1.442695, %v5192_v46  ;;  %v5455_v31 = vpop.f32.mrf.mxu1 }
 0x10d   : > { %10242 = vst [vmem:[#allocation22_spill] sm:$0xff] %v5455_v31 }
 0x110   : > { %v5338_v23 = vpop.f32.mrf.mxu0 }
 0x111   : > { %v4187_v30 = vmul.f32 -1.442695, %v5338_v23 }
 0x113   : > { %4060 = vmatmul.msk.f32.gmra.mxu0 %vm290_vm1, %v240_v24  ;;  %4356 = vpow2.f32 %v4187_v30  ;;  %v5416_v30 = vld [vmem:[%s10083_s1 + $0x100] sm:$0xff] }
 0x114   : > { %4358 = vrcp.f32 %v5355_v36  ;;  %4125 = vmatmul.msk.f32.gmra.mxu1 %vm290_vm1, %v240_v24  ;;  %v1466_v24 = vmul.f32 %v5363_v41, %v1465_v15 }
 0x115   : > { %4360 = vrcp.f32 %v5361_v39 }
 0x116   : > { %4362 = vrcp.f32 %v5365_v42 }
 0x118   : > { %v5373_v47 = vpop.f32.mrf.mxu0 }
 0x119   : > { %v4189_v58 = vmul.f32 -1.442695, %v5373_v47  ;;  %v4357_v10 = vpop.eup %4356 }
 0x11a   : > { %v5398_v52 = vpop.eup %4358  ;;  %v5405_v25 = vadd.f32 1.0, %v4357_v10 }
 0x11b   : > { %4364 = vpow2.f32 %v4189_v58  ;;  %4061 = vmatmul.msk.f32.gmra.mxu0 %vm290_vm1, %v5378_v48  ;;  %10236 = vst [vmem:[#allocation18_spill] sm:$0xff] %v5398_v52  ;;  %v5401_v18 = vpop.eup %4360 }
 0x11c   : > { %4366 = vrcp.f32 %v5369_v44  ;;  %v5408_v26 = vpop.eup %4362  ;;  %v1494_v58 = vmul.f32 %v5401_v18, %v5361_v39  ;;  %4126 = vmatmul.msk.f32.gmra.mxu1 %vm290_vm1, %v5378_v48  ;;  %vm1499_vm11 = vweird.f32 %v5401_v18  ;;  %vm1843_vm2 = vweird.f32 %v5405_v25 }
 0x11d   : > { %4368 = vpow2.f32 %v4167_v51  ;;  %10238 = vst [vmem:[#allocation20_spill] sm:$0xff] %v5408_v26  ;;  %vm5595_vm4 = vmor %vm1498_vm10, %vm1499_vm11 }
 0x11e   : > { %4370 = vpow2.f32 %v4169_v2  ;;  %v1495_v34 = vsub.f32 1.0, %v1494_v58 }
 0x11f   : > { %4372 = vpow2.f32 %v4185_v6  ;;  %v5434_v6 = vpop.f32.mrf.mxu2 }
 0x120   : > { %4374 = vpow2.f32 %v4168_v13  ;;  %v1474_v13 = vand.u32 2147483648, %v5330_v21  ;;  %v1441_v21 = vsel %vm5448_vm6, %v5359_v38, %v1437_v12  ;;  %v1496_v12 = vmul.f32 %v5401_v18, %v1495_v34 }
 0x121   : > { %v4365_v32 = vpop.eup %4364  ;;  %4376 = vrcp.f32 %v5396_v16 }
 0x122   : > { %v5422_v51 = vpop.eup %4366  ;;  %4378 = vpow2.f32 %v4183_v17  ;;  %v5427_v62 = vadd.f32 1.0, %v4365_v32  ;;  %v1467_v32 = vadd.f32 %v5363_v41, %v1466_v24  ;;  %v1475_v37 = vor.u32 1.1754944e-38, %v1474_v13 }
 0x123   : > { %10239 = vst [vmem:[#allocation21_spill] sm:$0xff] %v5422_v51  ;;  %v4369_v2 = vpop.eup %4368  ;;  %4380 = vrcp.f32 %v5405_v25  ;;  %4062 = vmatmul.msk.f32.gmra.mxu0 %vm290_vm1, %v5416_v30  ;;  %v5527_v19 = vadd.f32 %v5401_v18, %v1496_v12  ;;  %v5532_v51 = vpop.f32.mrf.mxu1 }
 0x124   : > { %v4371_v10 = vpop.eup %4370  ;;  %4382 = vrcp.f32 %v5427_v62  ;;  %v5457_v36 = vadd.f32 1.0, %v4369_v2  ;;  %v1445_v2 = vor.u32 1.1754944e-38, %v1444_v45  ;;  %v1471_v48 = vsel %vm5463_vm7, %v5363_v41, %v1467_v32  ;;  %10250 = vst [vmem:[#allocation26_spill] sm:$0xff] %v5532_v51  ;;  %4127 = vmatmul.msk.f32.gmra.mxu1 %vm290_vm1, %v5416_v30 }
 0x125   : > { %v4373_v15 = vpop.eup %4372  ;;  %4384 = vrcp.f32 %v5403_v22  ;;  %v5469_v26 = vadd.f32 1.0, %v4371_v10  ;;  %v4172_v41 = vmul.f32 -1.442695, %v5344_v27  ;;  %v1879_v44 = vand.u32 2147483648, %v5427_v62 }
 0x126   : > { %v4375_v52 = vpop.eup %4374  ;;  %10243 = vst [vmem:[#allocation23_spill] sm:$0xff] %v5457_v36  ;;  %4386 = vpow2.f32 %v4171_v55  ;;  %v5480_v58 = vadd.f32 1.0, %v4373_v15  ;;  %vm1873_vm13 = vweird.f32 %v5427_v62  ;;  %vm1528_vm7 = vweird.f32 %v5396_v16 }
 0x127   : > { %v5467_v24 = vpop.eup %4376  ;;  %10246 = vst [vmem:[#allocation24_spill] sm:$0xff] %v5469_v26  ;;  %4388 = vpow2.f32 %v4181_v5  ;;  %v5492_v45 = vadd.f32 1.0, %v4375_v52  ;;  %v4173_v5 = vmul.f32 -1.442695, %v5209_v50  ;;  %v5524_v32 = vpop.f32.mrf.mxu2  ;;  %v4174_v51 = vmul.f32 -1.442695, %v5390_v8 }
 0x128   : > { %v4379_v55 = vpop.eup %4378  ;;  %4390 = vpow2.f32 %v4170_v56  ;;  %v5513_v56 = vsel %vm1473_vm9, %v1475_v37, %v1471_v48  ;;  %v1524_v15 = vmul.f32 %v5467_v24, %v5396_v16  ;;  %vm1813_vm9 = vweird.f32 %v5480_v58 }
 0x129   : > { %v5487_v10 = vpop.eup %4380  ;;  %4392 = vpow2.f32 %v4179_v28  ;;  %v5506_v28 = vsel %vm5471_vm8, %v1445_v2, %v1441_v21  ;;  %v5522_v17 = vadd.f32 1.0, %v4379_v55  ;;  %vm1529_vm8 = vweird.f32 %v5467_v24 }
 0x12a   : > { %v5494_v38 = vpop.eup %4382  ;;  %4394 = vrcp.f32 %v5457_v36  ;;  %v1839_v60 = vmul.f32 %v5487_v10, %v5405_v25  ;;  %v1525_v40 = vsub.f32 1.0, %v1524_v15  ;;  %vm1844_vm15 = vweird.f32 %v5487_v10 }
 0x12b   : > { %v5501_v13 = vpop.eup %4384  ;;  %4396 = vrcp.f32 %v5469_v26  ;;  %4063 = vmatmul.msk.f32.gmra.mxu0 %vm290_vm1, %v5485_v35  ;;  %v1869_v52 = vmul.f32 %v5494_v38, %v5427_v62  ;;  %vm1874_vm12 = vweird.f32 %v5494_v38  ;;  %vm1845_vm3 = vmor %vm1843_vm2, %vm1844_vm15  ;;  %v1789_v36 = vand.u32 2147483648, %v5522_v17 }
 0x12c   : > { %10249 = vst [vmem:[#allocation25_spill] sm:$0xff] %v5501_v13  ;;  %v4387_v34 = vpop.eup %4386  ;;  %4398 = vrcp.f32 %v5480_v58  ;;  %v1840_v2 = vsub.f32 1.0, %v1839_v60  ;;  %v4177_v13 = vmul.f32 -1.442695, %v5241_v57  ;;  %vm1875_vm14 = vmor %vm1873_vm13, %vm1874_vm12  ;;  %v1880_v60 = vor.u32 1.1754944e-38, %v1879_v44  ;;  %4128 = vmatmul.msk.f32.gmra.mxu1 %vm290_vm1, %v5485_v35 }
 0x12d   : > { %v4389_v42 = vpop.eup %4388  ;;  %4400 = vrcp.f32 %v5492_v45  ;;  %v1870_v29 = vsub.f32 1.0, %v1869_v52  ;;  %v5545_v52 = vld [vmem:[%s10083_s1 + $0x110] sm:$0xff]  ;;  %v5551_v48 = vadd.f32 1.0, %v4387_v34  ;;  %v1526_v27 = vmul.f32 %v5467_v24, %v1525_v40 }
 0x12e   : > { %v4391_v37 = vpop.eup %4390  ;;  %4402 = vpow2.f32 %v4173_v5  ;;  %v5540_v12 = vadd.f32 1.0, %v4389_v42  ;;  %v1841_v15 = vmul.f32 %v5487_v10, %v1840_v2  ;;  %v1817_v35 = vand.u32 2147483647, %v5480_v58 }
 0x12f   : > { %v4393_v21 = vpop.eup %4392  ;;  %4404 = vpow2.f32 %v4172_v41  ;;  %v1871_v55 = vmul.f32 %v5494_v38, %v1870_v29  ;;  %v1877_v41 = vand.u32 2147483647, %v5427_v62  ;;  %v5554_v30 = vadd.f32 1.0, %v4391_v37 }
 0x130   : > { %v5538_v5 = vpop.eup %4394  ;;  %4406 = vrcp.f32 %v5522_v17  ;;  %v5559_v22 = vadd.f32 1.0, %v4393_v21  ;;  %v1847_v37 = vand.u32 2147483647, %v5405_v25  ;;  %v1849_v62 = vand.u32 2147483648, %v5405_v25 }
 0x131   : > { %10251 = vst [vmem:[#allocation27_spill] sm:$0xff] %v5538_v5  ;;  %v5549_v29 = vpop.eup %4396  ;;  %v1872_v43 = vadd.f32 %v5494_v38, %v1871_v55  ;;  %4408 = vrcp.f32 %v5540_v12  ;;  %vm1878_vm0 = vcmp.eq.f32.partialorder %v1877_v41, 8.507059e+37  ;;  %v1842_v44 = vadd.f32 %v5487_v10, %v1841_v15 }
 0x132   : > { %10252 = vst [vmem:[#allocation28_spill] sm:$0xff] %v5549_v29  ;;  %v5556_v42 = vpop.eup %4398  ;;  %4410 = vpow2.f32 %v4177_v13  ;;  %v5600_v13 = vpop.f32.mrf.mxu2  ;;  %vm1848_vm5 = vcmp.eq.f32.partialorder %v1847_v37, 8.507059e+37  ;;  %v1819_v15 = vand.u32 2147483648, %v5480_v58  ;;  %vm1818_vm11 = vcmp.eq.f32.partialorder %v1817_v35, 8.507059e+37 }
 0x133   : > { %v5565_v34 = vpop.eup %4400  ;;  %4064 = vmatmul.msk.f32.gmra.mxu0 %vm290_vm1, %v5545_v52  ;;  %v1876_v0 = vsel %vm1875_vm14, %v5494_v38, %v1872_v43  ;;  %v1809_v2 = vmul.f32 %v5556_v42, %v5480_v58  ;;  %v1850_v43 = vor.u32 1.1754944e-38, %v1849_v62  ;;  %4412 = vrcp.f32 %v5554_v30 }
 0x134   : > { %v5574_v21 = vpop.eup %4402  ;;  %v1881_v46 = vsel %vm1878_vm0, %v1880_v60, %v1876_v0  ;;  %v1846_v40 = vsel %vm1845_vm3, %v5487_v10, %v1842_v44  ;;  %4414 = vrcp.f32 %v5559_v22  ;;  %v5610_v60 = vld [vmem:[%s10083_s1 + $0x118] sm:$0xff]  ;;  %v5613_v0 = vpop.f32.mrf.mxu1  ;;  %vm1814_vm6 = vweird.f32 %v5556_v42  ;;  %4129 = vmatmul.msk.f32.gmra.mxu1 %vm290_vm1, %v5545_v52 }
 0x135   : > { %v5579_v55 = vpop.eup %4404  ;;  %v3368_v5 = vmul.f32 %v1881_v46, %v5373_v47  ;;  %v1810_v46 = vsub.f32 1.0, %v1809_v2  ;;  %v4175_v47 = vmul.f32 -1.442695, %v5226_v54  ;;  %v1851_v41 = vsel %vm1848_vm5, %v1850_v43, %v1846_v40  ;;  %10255 = vst [vmem:[#allocation29_spill] sm:$0xff] %v5613_v0  ;;  %vm1815_vm10 = vmor %vm1813_vm9, %vm1814_vm6 }
 0x136   : > { %v5589_v38 = vpop.eup %4406  ;;  %v3366_v10 = vmul.f32 %v1851_v41, %v5338_v23  ;;  %4416 = vrcp.f32 %v5551_v48  ;;  %v10256_v44 = vand.u32 2147483648, %v5361_v39  ;;  %v1532_v41 = vand.u32 2147483647, %v5396_v16  ;;  %vm5716_vm5 = vmor %vm1528_vm7, %vm1529_vm8 }
 0x137   : > { %3466 = vmatpush.msrb.mxu2 %v3368_v5  ;;  %v1811_v37 = vmul.f32 %v5556_v42, %v1810_v46  ;;  %v5619_v62 = vpop.eup %4408  ;;  %v1779_v23 = vmul.f32 %v5589_v38, %v5522_v17  ;;  %v5641_v46 = vadd.f32 %v5467_v24, %v1526_v27  ;;  %v1820_v3 = vor.u32 1.1754944e-38, %v1819_v15 }
 0x138   : > { %v5628_v2 = vor.u32 1.1754944e-38, %v10256_v44  ;;  %v4411_v40 = vpop.eup %4410  ;;  %4418 = vpow2.f32 %v4175_v47  ;;  %v1749_v58 = vmul.f32 %v5619_v62, %v5540_v12  ;;  %vm1784_vm12 = vweird.f32 %v5589_v38 }
 0x139   : > { %3467 = vmatpush.msrb.mxu2 %v3366_v10  ;;  %v1812_v43 = vadd.f32 %v5556_v42, %v1811_v37  ;;  %v1780_v44 = vsub.f32 1.0, %v1779_v23  ;;  %v5646_v5 = vpop.eup %4412  ;;  %v5656_v15 = vadd.f32 1.0, %v4411_v40  ;;  %v10257_v23 = vand.u32 2147483647, %v5361_v39 }
 0x13a   : > { %v5651_v37 = vpop.eup %4414  ;;  %v1787_v35 = vand.u32 2147483647, %v5522_v17  ;;  %v1554_v40 = vmul.f32 %v5565_v34, %v5492_v45  ;;  %vm1783_vm14 = vweird.f32 %v5522_v17  ;;  %v5684_v52 = vadd.f32 1.0, %v5579_v55 }
 0x13b   : > { %4065 = vmatmul.msk.f32.gmra.mxu0 %vm290_vm1, %v5610_v60  ;;  %v1816_v10 = vsel %vm1815_vm10, %v5556_v42, %v1812_v43  ;;  %v1781_v0 = vmul.f32 %v5589_v38, %v1780_v44  ;;  %vm5660_vm13 = vcmp.eq.f32.partialorder %v10257_v23, 8.507059e+37  ;;  %v1750_v43 = vsub.f32 1.0, %v1749_v58  ;;  %v5686_v58 = vpop.f32.mrf.mxu2  ;;  %vm5690_vm15 = vmor %vm1783_vm14, %vm1784_vm12 }
 0x13c   : > { %v1821_v27 = vsel %vm1818_vm11, %v1820_v3, %v1816_v10  ;;  %v5668_v3 = vpop.eup %4416  ;;  %v1534_v44 = vand.u32 2147483648, %v5396_v16  ;;  %v5681_v10 = vadd.f32 1.0, %v5574_v21  ;;  %v1584_v21 = vmul.f32 %v5646_v5, %v5554_v30 }
 0x13d   : > { %v3364_v42 = vmul.f32 %v1821_v27, %v5313_v14  ;;  %v1782_v39 = vadd.f32 %v5589_v38, %v1781_v0  ;;  %v5678_v14 = vld [vmem:[%s10083_s1 + $0x120] sm:$0xff]  ;;  %v1751_v17 = vmul.f32 %v5619_v62, %v1750_v43  ;;  %v1719_v27 = vmul.f32 %v5651_v37, %v5559_v22  ;;  %v5706_v43 = vpop.f32.mrf.mxu1  ;;  %4130 = vmatmul.msk.f32.gmra.mxu1 %vm290_vm1, %v5610_v60 }
 0x13e   : > { %v1790_v23 = vor.u32 1.1754944e-38, %v1789_v36  ;;  %vm1754_vm0 = vweird.f32 %v5619_v62  ;;  %4420 = vrcp.f32 %v5656_v15  ;;  %10262 = vst [vmem:[#allocation30_spill] sm:$0xff] %v5706_v43  ;;  %vm1788_vm2 = vcmp.eq.f32.partialorder %v1787_v35, 8.507059e+37 }
 0x13f   : > { %3468 = vmatpush.msrb.mxu2 %v3364_v42  ;;  %v1786_v55 = vsel %vm5690_vm15, %v5589_v38, %v1782_v39  ;;  %v4419_v42 = vpop.eup %4418  ;;  %vm1753_vm3 = vweird.f32 %v5540_v12  ;;  %v1759_v50 = vand.u32 2147483648, %v5540_v12  ;;  %v1752_v38 = vadd.f32 %v5619_v62, %v1751_v17 }
 0x140   : > { %v1791_v9 = vsel %vm1788_vm2, %v1790_v23, %v1786_v55  ;;  %v1757_v35 = vand.u32 2147483647, %v5540_v12  ;;  %v1720_v39 = vsub.f32 1.0, %v1719_v27  ;;  %v1535_v0 = vor.u32 1.1754944e-38, %v1534_v44  ;;  %vm5726_vm6 = vmor %vm1753_vm3, %vm1754_vm0 }
 0x141   : > { %v1555_v43 = vsub.f32 1.0, %v1554_v40  ;;  %v3362_v29 = vmul.f32 %v1791_v9, %v5294_v7  ;;  %v5730_v26 = vadd.f32 1.0, %v4419_v42  ;;  %v1585_v55 = vsub.f32 1.0, %v1584_v21 }
 0x142   : > { %v1756_v12 = vsel %vm5726_vm6, %v5619_v62, %v1752_v38  ;;  %v1721_v44 = vmul.f32 %v5651_v37, %v1720_v39  ;;  %v1531_v7 = vsel %vm5716_vm5, %v5467_v24, %v5641_v46  ;;  %vm5740_vm7 = vcmp.eq.f32.partialorder %v1532_v41, 8.507059e+37 }
 0x143   : > { %4066 = vmatmul.msk.f32.gmra.mxu0 %vm290_vm1, %v5678_v14  ;;  %4422 = vrcp.f32 %v5684_v52  ;;  %3469 = vmatpush.msrb.mxu2 %v3362_v29  ;;  %v1760_v17 = vor.u32 1.1754944e-38, %v1759_v50  ;;  %v5750_v62 = vmul.f32 %v5506_v28, %v5206_v49  ;;  %v5754_v24 = vmul.f32 %v5513_v56, %v5223_v53  ;;  %v5778_v56 = vpop.f32.mrf.mxu2 }
 0x144   : > { %4424 = vrcp.f32 %v5681_v10  ;;  %vm1758_vm8 = vcmp.eq.f32.partialorder %v1757_v35, 8.507059e+37  ;;  %v5756_v46 = vpop.eup %4420  ;;  %v1556_v41 = vmul.f32 %v5565_v34, %v1555_v43  ;;  %v1722_v29 = vadd.f32 %v5651_v37, %v1721_v44 }
 0x145   : > { %10269 = vst [vmem:[#allocation31_spill] sm:$0xff] %v5750_v62  ;;  %4426 = vpow2.f32 %v4174_v51  ;;  %v1761_v50 = vsel %vm1758_vm8, %v1760_v17, %v1756_v12  ;;  %v10271_v49 = vsel %vm5595_vm4, %v5401_v18, %v5527_v19  ;;  %v5773_v28 = vsel %vm5740_vm7, %v1535_v0, %v1531_v7  ;;  %v5798_v21 = vpop.f32.mrf.mxu1  ;;  %4131 = vmatmul.msk.f32.gmra.mxu1 %vm290_vm1, %v5678_v14 }
 0x146   : > { %10270 = vst [vmem:[#allocation32_spill] sm:$0xff] %v5754_v24  ;;  %4428 = vrcp.f32 %v5730_v26  ;;  %v5769_v53 = vsel %vm5660_vm13, %v5628_v2, %v10271_v49  ;;  %v1586_v51 = vmul.f32 %v5646_v5, %v1585_v55  ;;  %v3360_v25 = vmul.f32 %v1761_v50, %v5275_v1 }
 0x147   : > { %vm1723_vm4 = vweird.f32 %v5559_v22  ;;  %vm1724_vm9 = vweird.f32 %v5651_v37  ;;  %v1727_v18 = vand.u32 2147483647, %v5559_v22  ;;  %vm1558_vm10 = vweird.f32 %v5492_v45 }
 0x148   : > { %vm1559_vm11 = vweird.f32 %v5565_v34  ;;  %vm5786_vm12 = vmor %vm1723_vm4, %vm1724_vm9  ;;  %v1729_v20 = vand.u32 2147483648, %v5559_v22  ;;  %v1689_v60 = vmul.f32 %v5756_v46, %v5656_v15  ;;  %v1557_v2 = vadd.f32 %v5565_v34, %v1556_v41  ;;  %3470 = vmatpush.msrb.mxu2 %v3360_v25 }
 0x149   : > { %v5793_v1 = vpop.eup %4422  ;;  %v1562_v47 = vand.u32 2147483647, %v5492_v45  ;;  %v1564_v27 = vand.u32 2147483648, %v5492_v45  ;;  %v1726_v23 = vsel %vm5786_vm12, %v5651_v37, %v1722_v29  ;;  %vm1588_vm13 = vweird.f32 %v5554_v30  ;;  %vm5812_vm15 = vmor %vm1558_vm10, %vm1559_vm11 }
 0x14a   : > { %v5803_v42 = vpop.eup %4424  ;;  %vm1589_vm14 = vweird.f32 %v5646_v5  ;;  %v4241_v22 = vmul.f32 -1.442695, %v5434_v6  ;;  %v1730_v43 = vor.u32 1.1754944e-38, %v1729_v20  ;;  %v1587_v37 = vadd.f32 %v5646_v5, %v1586_v51 }
 0x14b   : > { %v4427_v36 = vpop.eup %4426  ;;  %v1592_v38 = vand.u32 2147483647, %v5554_v30  ;;  %vm1728_vm0 = vcmp.eq.f32.partialorder %v1727_v18, 8.507059e+37  ;;  %v1690_v35 = vsub.f32 1.0, %v1689_v60  ;;  %v1594_v0 = vand.u32 2147483648, %v5554_v30  ;;  %vm5841_vm5 = vmor %vm1588_vm13, %vm1589_vm14  ;;  %v5863_v18 = vpop.f32.mrf.mxu2 }
 0x14c   : > { %v5820_v39 = vpop.eup %4428  ;;  %v1614_v45 = vmul.f32 %v5793_v1, %v5684_v52  ;;  %v1731_v16 = vsel %vm1728_vm0, %v1730_v43, %v1726_v23  ;;  %vm1694_vm2 = vweird.f32 %v5756_v46  ;;  %v1697_v44 = vand.u32 2147483647, %v5656_v15 }
 0x14d   : > { %v3358_v55 = vmul.f32 %v1731_v16, %v5258_v61  ;;  %v1691_v12 = vmul.f32 %v5756_v46, %v1690_v35  ;;  %v1699_v7 = vand.u32 2147483648, %v5656_v15  ;;  %v1561_v14 = vsel %vm5812_vm15, %v5565_v34, %v1557_v2  ;;  %v5881_v23 = vpop.f32.mrf.mxu1 }
 0x14e   : > { %vm5833_vm3 = vcmp.eq.f32.partialorder %v1562_v47, 8.507059e+37  ;;  %v1565_v17 = vor.u32 1.1754944e-38, %v1564_v27  ;;  %4430 = vpow2.f32 %v4241_v22  ;;  %vm5847_vm6 = vcmp.eq.f32.partialorder %v1592_v38, 8.507059e+37  ;;  %v247_v47 = vld [vmem:[%s10083_s1 + $0x128] sm:$0xff]  ;;  %10284 = vst [vmem:[#allocation35_spill] sm:$0xff] %v5881_v23 }
 0x14f   : > { %v4176_v34 = vmul.f32 -1.442695, %v5455_v31  ;;  %3471 = vmatpush.msrb.mxu2 %v3358_v55  ;;  %v1692_v50 = vadd.f32 %v5756_v46, %v1691_v12  ;;  %vm1693_vm7 = vweird.f32 %v5656_v15  ;;  %v1595_v30 = vor.u32 1.1754944e-38, %v1594_v0  ;;  %4067 = vmatmul.msk.f32.gmra.mxu0 %vm290_vm1, %v247_v47 }
 0x150   : > { %v5854_v29 = vadd.f32 1.0, %v4427_v36  ;;  %vm1695_vm8 = vmor %vm1693_vm7, %vm1694_vm2  ;;  %v1700_v49 = vor.u32 1.1754944e-38, %v1699_v7  ;;  %v1659_v33 = vmul.f32 %v5820_v39, %v5730_v26  ;;  %v1591_v51 = vsel %vm5841_vm5, %v5646_v5, %v1587_v37  ;;  %4132 = vmatmul.msk.f32.gmra.mxu1 %vm290_vm1, %v247_v47 }
 0x151   : > { %v1615_v25 = vsub.f32 1.0, %v1614_v45  ;;  %v1696_v19 = vsel %vm1695_vm8, %v5756_v46, %v1692_v50  ;;  %vm1698_vm4 = vcmp.eq.f32.partialorder %v1697_v44, 8.507059e+37  ;;  %v1566_v15 = vsel %vm5833_vm3, %v1565_v17, %v1561_v14 }
 0x152   : > { %v4243_v20 = vmul.f32 -1.442695, %v5524_v32  ;;  %v1701_v60 = vsel %vm1698_vm4, %v1700_v49, %v1696_v19  ;;  %v1660_v2 = vsub.f32 1.0, %v1659_v33  ;;  %v5874_v5 = vmul.f32 %v5769_v53, %v5246_v59 }
 0x153   : > { %v5878_v27 = vmul.f32 %v5773_v28, %v5265_v63  ;;  %4432 = vpow2.f32 %v4176_v34  ;;  %v3356_v46 = vmul.f32 %v1701_v60, %v5241_v57  ;;  %v1596_v43 = vsel %vm5847_vm6, %v1595_v30, %v1591_v51  ;;  %v5927_v61 = vpop.f32.mrf.mxu2 }
 0x154   : > { %10282 = vst [vmem:[#allocation33_spill] sm:$0xff] %v5874_v5  ;;  %v4431_v22 = vpop.eup %4430  ;;  %v1661_v59 = vmul.f32 %v5820_v39, %v1660_v2  ;;  %vm1664_vm9 = vweird.f32 %v5820_v39  ;;  %v1669_v63 = vand.u32 2147483648, %v5730_v26  ;;  %v5891_v53 = vmul.f32 %v1566_v15, %v5289_v4 }
 0x155   : > { %10283 = vst [vmem:[#allocation34_spill] sm:$0xff] %v5878_v27  ;;  %v1616_v57 = vmul.f32 %v5793_v1, %v1615_v25  ;;  %4434 = vrcp.f32 %v5854_v29  ;;  %3472 = vmatpush.msrb.mxu2 %v3356_v46  ;;  %v1667_v28 = vand.u32 2147483647, %v5730_v26  ;;  %vm1663_vm10 = vweird.f32 %v5730_v26  ;;  %v10291_v46 = vld [vmem:[#allocation24_spill] sm:$0xff] }
 0x156   : > { %10285 = vst [vmem:[#allocation36_spill] sm:$0xff] %v5891_v53  ;;  %4436 = vpow2.f32 %v4243_v20  ;;  %v1662_v36 = vadd.f32 %v5820_v39, %v1661_v59  ;;  %v1629_v9 = vmul.f32 %v5803_v42, %v5681_v10  ;;  %v5901_v37 = vmul.f32 %v1596_v43, %v5309_v11  ;;  %vm1665_vm12 = vmor %vm1663_vm10, %vm1664_vm9 }
 0x157   : > { %v5903_v4 = vadd.f32 1.0, %v4431_v22  ;;  %vm1618_vm11 = vweird.f32 %v5684_v52  ;;  %v4245_v38 = vmul.f32 -1.442695, %v5600_v13  ;;  %vm1619_vm13 = vweird.f32 %v5793_v1  ;;  %v10292_v22 = vld [vmem:[#allocation28_spill] sm:$0xff] }
 0x158   : > { %10286 = vst [vmem:[#allocation37_spill] sm:$0xff] %v5901_v37  ;;  %v1666_v35 = vsel %vm1665_vm12, %v5820_v39, %v1662_v36  ;;  %v1670_v26 = vor.u32 1.1754944e-38, %v1669_v63  ;;  %v1630_v0 = vsub.f32 1.0, %v1629_v9  ;;  %v1617_v16 = vadd.f32 %v5793_v1, %v1616_v57  ;;  %vm5921_vm0 = vmor %vm1618_vm11, %vm1619_vm13  ;;  %v10294_v9 = vld [vmem:[#allocation12_spill] sm:$0xff] }
 0x159   : > { %v4433_v45 = vpop.eup %4432  ;;  %v1622_v11 = vand.u32 2147483647, %v5684_v52  ;;  %vm1668_vm14 = vcmp.eq.f32.partialorder %v1667_v28, 8.507059e+37  ;;  %v1639_v55 = vand.u32 2147483648, %v5681_v10  ;;  %vm1634_vm15 = vweird.f32 %v5803_v42  ;;  %v10293_v28 = vld [vmem:[#allocation26_spill] sm:$0xff] }
 0x15a   : > { %v1671_v12 = vsel %vm1668_vm14, %v1670_v26, %v1666_v35  ;;  %v1631_v44 = vmul.f32 %v5803_v42, %v1630_v0  ;;  %v1637_v7 = vand.u32 2147483647, %v5681_v10  ;;  %v1624_v40 = vand.u32 2147483648, %v5684_v52 }
 0x15b   : > { %v5917_v14 = vpop.eup %4434  ;;  %4438 = vpow2.f32 %v4245_v38  ;;  %v4247_v17 = vmul.f32 -1.442695, %v5686_v58  ;;  %v3354_v41 = vmul.f32 %v1671_v12, %v5226_v54  ;;  %vm1633_vm2 = vweird.f32 %v5681_v10 }
 0x15c   : > { %v4437_v34 = vpop.eup %4436  ;;  %4440 = vrcp.f32 %v5903_v4  ;;  %v1632_v50 = vadd.f32 %v5803_v42, %v1631_v44  ;;  %v1599_v30 = vmul.f32 %v5668_v3, %v5551_v48  ;;  %v2659_v52 = vand.u32 2147483648, %v5903_v4  ;;  %vm1635_vm3 = vmor %vm1633_vm2, %vm1634_vm15 }
 0x15d   : > { %v5937_v33 = vadd.f32 1.0, %v4433_v45  ;;  %3473 = vmatpush.msrb.mxu2 %v3354_v41  ;;  %v1640_v54 = vor.u32 1.1754944e-38, %v1639_v55  ;;  %v1621_v51 = vsel %vm5921_vm0, %v5793_v1, %v1617_v16  ;;  %v4253_v10 = vmul.f32 -1.442695, %v5927_v61 }
 0x15e   : > { %v1636_v25 = vsel %vm1635_vm3, %v5803_v42, %v1632_v50  ;;  %vm1638_vm5 = vcmp.eq.f32.partialorder %v1637_v7, 8.507059e+37  ;;  %v5946_v19 = vadd.f32 1.0, %v4437_v34  ;;  %4442 = vpow2.f32 %v4247_v17  ;;  %v10295_v50 = vld [vmem:[#allocation23_spill] sm:$0xff] }
 0x15f   : > { %v1641_v15 = vsel %vm1638_vm5, %v1640_v54, %v1636_v25  ;;  %v1600_v20 = vsub.f32 1.0, %v1599_v30  ;;  %vm5948_vm6 = vcmp.eq.f32.partialorder %v1622_v11, 8.507059e+37  ;;  %v1625_v2 = vor.u32 1.1754944e-38, %v1624_v40  ;;  %v10296_v30 = vld [vmem:[#allocation27_spill] sm:$0xff] }
 0x160   : > { %v4249_v47 = vmul.f32 -1.442695, %v5778_v56  ;;  %v1569_v1 = vmul.f32 %v10292_v22, %v10291_v46  ;;  %v5955_v59 = vor.u32 1.1754944e-38, %v2659_v52  ;;  %v1644_v42 = vmul.f32 %v5917_v14, %v5854_v29 }
 0x161   : > { %v4439_v43 = vpop.eup %4438  ;;  %4444 = vrcp.f32 %v5937_v33  ;;  %v4251_v63 = vmul.f32 -1.442695, %v5863_v18  ;;  %v4178_v36 = vmul.f32 -1.442695, %v10293_v28  ;;  %v3352_v38 = vmul.f32 %v1641_v15, %v10294_v9 }
 0x162   : > { %v5961_v57 = vpop.eup %4440  ;;  %4446 = vpow2.f32 %v4253_v10  ;;  %v1609_v35 = vand.u32 2147483648, %v5551_v48  ;;  %v1601_v26 = vmul.f32 %v5668_v3, %v1600_v20  ;;  %vm1604_vm7 = vweird.f32 %v5668_v3 }
 0x163   : > { %4448 = vrcp.f32 %v5946_v19  ;;  %v1607_v0 = vand.u32 2147483647, %v5551_v48  ;;  %v1626_v45 = vsel %vm5948_vm6, %v1625_v2, %v1621_v51  ;;  %v5972_v16 = vadd.f32 1.0, %v4439_v43  ;;  %3474 = vmatpush.msrb.mxu2 %v3352_v38  ;;  %v10300_v38 = vld [vmem:[#allocation29_spill] sm:$0xff] }
 0x164   : > { %4450 = vpow2.f32 %v4249_v47  ;;  %v1570_v11 = vsub.f32 1.0, %v1569_v1  ;;  %v4443_v55 = vpop.eup %4442  ;;  %v1645_v12 = vsub.f32 1.0, %v1644_v42  ;;  %v1602_v44 = vadd.f32 %v5668_v3, %v1601_v26 }
 0x165   : > { %4452 = vpow2.f32 %v4251_v63  ;;  %vm1603_vm8 = vweird.f32 %v5551_v48  ;;  %v1610_v7 = vor.u32 1.1754944e-38, %v1609_v35  ;;  %vm1574_vm9 = vweird.f32 %v10292_v22  ;;  %v10297_v48 = vld [vmem:[#allocation13_spill] sm:$0xff] }
 0x166   : > { %vm1605_vm4 = vmor %vm1603_vm8, %vm1604_vm7  ;;  %v1571_v39 = vmul.f32 %v10292_v22, %v1570_v11  ;;  %v1579_v40 = vand.u32 2147483648, %v10291_v46  ;;  %vm1608_vm10 = vcmp.eq.f32.partialorder %v1607_v0, 8.507059e+37  ;;  %v1577_v34 = vand.u32 2147483647, %v10291_v46  ;;  %v10301_v0 = vld [vmem:[#allocation10_spill] sm:$0xff] }
 0x167   : > { %v5979_v17 = vpop.eup %4444  ;;  %v1606_v41 = vsel %vm1605_vm4, %v5668_v3, %v1602_v44  ;;  %v1539_v52 = vmul.f32 %v10296_v30, %v10295_v50  ;;  %v5986_v51 = vmul.f32 %v1626_v45, %v10297_v48  ;;  %4454 = vrcp.f32 %v5972_v16  ;;  %v10299_v3 = vld [vmem:[#allocation11_spill] sm:$0xff] }
 0x168   : > { %v4447_v54 = vpop.eup %4446  ;;  %v5989_v10 = vadd.f32 1.0, %v4443_v55  ;;  %v1611_v25 = vsel %vm1608_vm10, %v1610_v7, %v1606_v41  ;;  %v1646_v20 = vmul.f32 %v5917_v14, %v1645_v12  ;;  %v1572_v2 = vadd.f32 %v10292_v22, %v1571_v39  ;;  %v6023_v41 = vpop.f32.mrf.mxu1 }
 0x169   : > { %10298 = vst [vmem:[#allocation24_spill] sm:$0xff] %v5986_v51  ;;  %v5991_v15 = vpop.eup %4448  ;;  %v3350_v60 = vmul.f32 %v1611_v25, %v10299_v3  ;;  %vm1573_vm11 = vweird.f32 %v10291_v46  ;;  %v2649_v1 = vmul.f32 %v5961_v57, %v5903_v4  ;;  %vm1648_vm12 = vweird.f32 %v5854_v29 }
 0x16a   : > { %v4451_v47 = vpop.eup %4450  ;;  %vm1649_vm13 = vweird.f32 %v5917_v14  ;;  %vm1575_vm14 = vmor %vm1573_vm11, %vm1574_vm9  ;;  %v1580_v43 = vor.u32 1.1754944e-38, %v1579_v40  ;;  %v6003_v63 = vadd.f32 1.0, %v4447_v54  ;;  %vm1578_vm15 = vcmp.eq.f32.partialorder %v1577_v34, 8.507059e+37  ;;  %10302 = vst [vmem:[#allocation28_spill] sm:$0xff] %v6023_v41  ;;  %v10306_v54 = vld [vmem:[#allocation25_spill] sm:$0xff] }
 0x16b   : > { %v4453_v42 = vpop.eup %4452  ;;  %3475 = vmatpush.msrb.mxu2 %v3350_v60  ;;  %v1576_v9 = vsel %vm1575_vm14, %v10292_v22, %v1572_v2  ;;  %v1540_v46 = vsub.f32 1.0, %v1539_v52  ;;  %4456 = vrcp.f32 %v5989_v10  ;;  %v4180_v35 = vmul.f32 -1.442695, %v10300_v38  ;;  %v248_v22 = vld [vmem:[%s10083_s1 + $0x130] sm:$0xff]  ;;  %vm6031_vm2 = vmor %vm1648_vm12, %vm1649_vm13  ;;  %v10305_v52 = vld [vmem:[#allocation19_spill] sm:$0xff] }
 0x16c   : > { %v1581_v26 = vsel %vm1578_vm15, %v1580_v43, %v1576_v9  ;;  %vm1544_vm0 = vweird.f32 %v10296_v30  ;;  %v1547_v55 = vand.u32 2147483647, %v10295_v50  ;;  %v1549_v12 = vand.u32 2147483648, %v10295_v50  ;;  %4068 = vmatmul.msk.f32.gmra.mxu0 %vm290_vm1, %v248_v22  ;;  %4133 = vmatmul.msk.f32.gmra.mxu1 %vm290_vm1, %v248_v22 }
 0x16d   : > { %v3348_v45 = vmul.f32 %v1581_v26, %v10301_v0  ;;  %v1541_v11 = vmul.f32 %v10296_v30, %v1540_v46  ;;  %v6016_v44 = vpop.eup %4454  ;;  %v2650_v7 = vsub.f32 1.0, %v2649_v1  ;;  %v6019_v39 = vadd.f32 %v5917_v14, %v1646_v20  ;;  %v10307_v0 = vld [vmem:[#allocation9_spill] sm:$0xff] }
 0x16e   : > { %4458 = vpow2.f32 %v4178_v36  ;;  %v6021_v40 = vadd.f32 1.0, %v4453_v42  ;;  %vm1543_vm3 = vweird.f32 %v10295_v50  ;;  %v1509_v48 = vmul.f32 %v10306_v54, %v10305_v52 }
 0x16f   : > { %4460 = vrcp.f32 %v6003_v63  ;;  %3476 = vmatpush.msrb.mxu2 %v3348_v45  ;;  %v1542_v36 = vadd.f32 %v10296_v30, %v1541_v11  ;;  %v2679_v25 = vmul.f32 %v5991_v15, %v5946_v19  ;;  %v6043_v3 = vadd.f32 1.0, %v4451_v47  ;;  %vm1545_vm5 = vmor %vm1543_vm3, %vm1544_vm0 }
 0x170   : > { %v1550_v60 = vor.u32 1.1754944e-38, %v1549_v12  ;;  %v2709_v2 = vmul.f32 %v6016_v44, %v5972_v16  ;;  %4462 = vpow2.f32 %v4180_v35  ;;  %vm1548_vm6 = vcmp.eq.f32.partialorder %v1547_v55, 8.507059e+37  ;;  %v10310_v35 = vld [vmem:[#allocation30_spill] sm:$0xff] }
 0x171   : > { %v1546_v50 = vsel %vm1545_vm5, %v10296_v30, %v1542_v36  ;;  %v6050_v1 = vpop.eup %4456  ;;  %v1510_v47 = vsub.f32 1.0, %v1509_v48  ;;  %v2651_v46 = vmul.f32 %v5961_v57, %v2650_v7  ;;  %4464 = vrcp.f32 %v6021_v40 }
 0x172   : > { %v1551_v9 = vsel %vm1548_vm6, %v1550_v60, %v1546_v50  ;;  %4466 = vrcp.f32 %v6043_v3  ;;  %vm1514_vm7 = vweird.f32 %v10306_v54  ;;  %v2680_v12 = vsub.f32 1.0, %v2679_v25  ;;  %v10308_v50 = vld [vmem:[#allocation16_spill] sm:$0xff] }
 0x173   : > { %v3346_v45 = vmul.f32 %v1551_v9, %v10307_v0  ;;  %v1511_v11 = vmul.f32 %v10306_v54, %v1510_v47  ;;  %v2710_v22 = vsub.f32 1.0, %v2709_v2  ;;  %v1517_v7 = vand.u32 2147483647, %v10305_v52  ;;  %v10309_v9 = vld [vmem:[#allocation21_spill] sm:$0xff] }
 0x174   : > { %v4459_v30 = vpop.eup %4458  ;;  %v1519_v36 = vand.u32 2147483648, %v10305_v52  ;;  %v2739_v48 = vmul.f32 %v6050_v1, %v5989_v10  ;;  %vm1513_vm8 = vweird.f32 %v10305_v52  ;;  %v1479_v47 = vmul.f32 %v10309_v9, %v10308_v50 }
 0x175   : > { %v6065_v55 = vpop.eup %4460  ;;  %3477 = vmatpush.msrb.mxu2 %v3346_v45  ;;  %v1512_v60 = vadd.f32 %v10306_v54, %v1511_v11  ;;  %v6076_v26 = vadd.f32 %v5961_v57, %v2651_v46  ;;  %v6080_v25 = vmul.f32 %v5979_v17, %v5937_v33  ;;  %v6082_v2 = vadd.f32 1.0, %v4459_v30  ;;  %vm1515_vm4 = vmor %vm1513_vm8, %vm1514_vm7 }
 0x176   : > { %v4463_v0 = vpop.eup %4462  ;;  %v4182_v42 = vmul.f32 -1.442695, %v10310_v35  ;;  %v2829_v52 = vmul.f32 %v6065_v55, %v6003_v63  ;;  %v1520_v11 = vor.u32 1.1754944e-38, %v1519_v36  ;;  %v1480_v43 = vsub.f32 1.0, %v1479_v47  ;;  %v10311_v36 = vld [vmem:[#allocation8_spill] sm:$0xff] }
 0x177   : > { %v1516_v45 = vsel %vm1515_vm4, %v10306_v54, %v1512_v60  ;;  %v6090_v46 = vpop.eup %4464  ;;  %v6093_v20 = vmul.f32 %v5991_v15, %v2680_v12  ;;  %vm1518_vm9 = vcmp.eq.f32.partialorder %v1517_v7, 8.507059e+37  ;;  %v2711_v24 = vmul.f32 %v6016_v44, %v2710_v22 }
 0x178   : > { %v6097_v62 = vpop.eup %4466  ;;  %v2740_v5 = vsub.f32 1.0, %v2739_v48  ;;  %v6100_v27 = vadd.f32 1.0, %v4463_v0  ;;  %v1521_v54 = vsel %vm1518_vm9, %v1520_v11, %v1516_v45  ;;  %v1481_v47 = vmul.f32 %v10309_v9, %v1480_v43 }
 0x179   : > { %v3344_v60 = vmul.f32 %v1521_v54, %v10311_v36  ;;  %vm1484_vm10 = vweird.f32 %v10309_v9  ;;  %v1489_v12 = vand.u32 2147483648, %v10308_v50  ;;  %4468 = vrcp.f32 %v6082_v2  ;;  %v6119_v54 = vpop.f32.mrf.mxu0  ;;  %v10314_v36 = vld [vmem:[#allocation20_spill] sm:$0xff] }
 0x17a   : > { %v2799_v7 = vmul.f32 %v6090_v46, %v6021_v40  ;;  %v2830_v30 = vsub.f32 1.0, %v2829_v52  ;;  %v1487_v22 = vand.u32 2147483647, %v10308_v50  ;;  %v2769_v0 = vmul.f32 %v6097_v62, %v6043_v3  ;;  %10312 = vst [vmem:[#allocation12_spill] sm:$0xff] %v6119_v54  ;;  %v10313_v52 = vld [vmem:[#allocation15_spill] sm:$0xff] }
 0x17b   : > { %3478 = vmatpush.msrb.mxu2 %v3344_v60  ;;  %v1482_v43 = vadd.f32 %v10309_v9, %v1481_v47  ;;  %vm1483_vm11 = vweird.f32 %v10308_v50  ;;  %v6116_v45 = vadd.f32 %v6016_v44, %v2711_v24  ;;  %4470 = vrcp.f32 %v6100_v27 }
 0x17c   : > { %vm1485_vm12 = vmor %vm1483_vm11, %vm1484_vm10  ;;  %v1449_v49 = vmul.f32 %v10314_v36, %v10313_v52  ;;  %v6127_v60 = vmul.f32 %v6050_v1, %v2740_v5  ;;  %4472 = vpow2.f32 %v4182_v42  ;;  %v1490_v24 = vor.u32 1.1754944e-38, %v1489_v12  ;;  %v10315_v42 = vld [vmem:[#allocation7_spill] sm:$0xff] }
 0x17d   : > { %v1486_v50 = vsel %vm1485_vm12, %v10309_v9, %v1482_v43  ;;  %vm2773_vm13 = vweird.f32 %v6043_v3  ;;  %v2800_v47 = vsub.f32 1.0, %v2799_v7  ;;  %vm2803_vm14 = vweird.f32 %v6021_v40 }
 0x17e   : > { %v2831_v48 = vmul.f32 %v6065_v55, %v2830_v30  ;;  %vm1488_vm15 = vcmp.eq.f32.partialorder %v1487_v22, 8.507059e+37  ;;  %v2770_v11 = vsub.f32 1.0, %v2769_v0  ;;  %vm2833_vm0 = vweird.f32 %v6003_v63 }
 0x17f   : > { %v1491_v53 = vsel %vm1488_vm15, %v1490_v24, %v1486_v50  ;;  %v1450_v37 = vsub.f32 1.0, %v1449_v49  ;;  %v6134_v51 = vpop.eup %4468  ;;  %vm2834_vm3 = vweird.f32 %v6065_v55  ;;  %v2837_v5 = vand.u32 2147483647, %v6003_v63 }
 0x180   : > { %v3342_v9 = vmul.f32 %v1491_v53, %v10315_v42  ;;  %v1459_v12 = vand.u32 2147483648, %v10313_v52  ;;  %vm2744_vm6 = vweird.f32 %v6050_v1  ;;  %v2839_v30 = vand.u32 2147483648, %v6003_v63  ;;  %vm6159_vm10 = vmor %vm2833_vm0, %vm2834_vm3  ;;  %v10319_v42 = vld [vmem:[#allocation14_spill] sm:$0xff] }
 0x181   : > { %v1451_v7 = vmul.f32 %v10314_v36, %v1450_v37  ;;  %vm1454_vm7 = vweird.f32 %v10314_v36  ;;  %v1457_v49 = vand.u32 2147483647, %v10313_v52  ;;  %v6146_v22 = vpop.eup %4470  ;;  %v2801_v0 = vmul.f32 %v6090_v46, %v2800_v47  ;;  %v6163_v47 = vpop.f32.mrf.mxu3 }
 0x182   : > { %v2807_v53 = vand.u32 2147483647, %v6021_v40  ;;  %v2809_v43 = vand.u32 2147483648, %v6021_v40  ;;  %v2832_v50 = vadd.f32 %v6065_v55, %v2831_v48  ;;  %3479 = vmatpush.msrb.mxu2 %v3342_v9  ;;  %v4473_v24 = vpop.eup %4472  ;;  %vm2774_vm9 = vweird.f32 %v6097_v62  ;;  %10318 = vst [vmem:[#allocation23_spill] sm:$0xff] %v6163_v47  ;;  %v10320_v9 = vld [vmem:[#allocation18_spill] sm:$0xff] }
 0x183   : > { %v1452_v48 = vadd.f32 %v10314_v36, %v1451_v7  ;;  %vm1453_vm11 = vweird.f32 %v10313_v52  ;;  %v1419_v35 = vmul.f32 %v10320_v9, %v10319_v42  ;;  %vm2654_vm15 = vweird.f32 %v5961_v57 }
 0x184   : > { %v2771_v38 = vmul.f32 %v6097_v62, %v2770_v11  ;;  %vm2804_vm0 = vweird.f32 %v6090_v46  ;;  %vm6173_vm3 = vcmp.eq.f32.partialorder %v2837_v5, 8.507059e+37  ;;  %vm1455_vm8 = vmor %vm1453_vm11, %vm1454_vm7  ;;  %v1460_v7 = vor.u32 1.1754944e-38, %v1459_v12  ;;  %v249_v11 = vld [vmem:[%s10083_s1 + $0x138] sm:$0xff]  ;;  %v6185_v5 = vpop.f32.mrf.mxu0 }
 0x185   : > { %vm2683_vm4 = vweird.f32 %v5946_v19  ;;  %vm2684_vm5 = vweird.f32 %v5991_v15  ;;  %v2840_v52 = vor.u32 1.1754944e-38, %v2839_v30  ;;  %v1456_v28 = vsel %vm1455_vm8, %v10314_v36, %v1452_v48  ;;  %10323 = vst [vmem:[#allocation27_spill] sm:$0xff] %v6185_v5  ;;  %v6192_v30 = vpop.f32.mrf.mxu1  ;;  %4069 = vmatmul.msk.f32.gmra.mxu0 %vm290_vm1, %v249_v11  ;;  %4134 = vmatmul.msk.f32.gmra.mxu1 %vm290_vm1, %v249_v11  ;;  %v10324_v36 = vld [vmem:[#allocation6_spill] sm:$0xff]  ;;  %vm6210_vm8 = vmor %vm2803_vm14, %vm2804_vm0 }
 0x186   : > { %vm1458_vm12 = vcmp.eq.f32.partialorder %v1457_v49, 8.507059e+37  ;;  %v1420_v31 = vsub.f32 1.0, %v1419_v35  ;;  %v2802_v41 = vadd.f32 %v6090_v46, %v2801_v0  ;;  %v2836_v12 = vsel %vm6159_vm10, %v6065_v55, %v2832_v50  ;;  %v6196_v35 = vpop.f32.mrf.mxu2  ;;  %vm6220_vm10 = vmor %vm2773_vm13, %vm2774_vm9 }
 0x187   : > { %v4240_v8 = vmul.f32 -1.442695, %v6163_v47  ;;  %v1461_v23 = vsel %vm1458_vm12, %v1460_v7, %v1456_v28  ;;  %vm1424_vm7 = vweird.f32 %v10320_v9  ;;  %v1429_v0 = vand.u32 2147483648, %v10319_v42 }
 0x188   : > { %v3340_v49 = vmul.f32 %v1461_v23, %v10324_v36  ;;  %v1421_v48 = vmul.f32 %v10320_v9, %v1420_v31  ;;  %v2742_v55 = vadd.f32 %v6050_v1, %v6127_v60  ;;  %v2777_v28 = vand.u32 2147483647, %v6043_v3 }
 0x189   : > { %v2779_v50 = vand.u32 2147483648, %v6043_v3  ;;  %v1427_v31 = vand.u32 2147483647, %v10319_v42  ;;  %v2772_v23 = vadd.f32 %v6097_v62, %v2771_v38  ;;  %v4184_v7 = vmul.f32 -1.442695, %v5798_v21 }
 0x18a   : > { %3480 = vmatpush.msrb.mxu2 %v3340_v49  ;;  %v1422_v40 = vadd.f32 %v10320_v9, %v1421_v48  ;;  %vm1423_vm14 = vweird.f32 %v10319_v42  ;;  %v10329_v11 = vand.u32 2147483647, %v5903_v4  ;;  %vm6233_vm12 = vcmp.eq.f32.partialorder %v2807_v53, 8.507059e+37 }
 0x18b   : > { %v2810_v3 = vor.u32 1.1754944e-38, %v2809_v43  ;;  %v2841_v47 = vsel %vm6173_vm3, %v2840_v52, %v2836_v12  ;;  %v4255_v49 = vmul.f32 -1.442695, %v6196_v35  ;;  %vm1425_vm13 = vmor %vm1423_vm14, %vm1424_vm7  ;;  %v2806_v42 = vsel %vm6210_vm8, %v6090_v46, %v2802_v41 }
 0x18c   : > { %vm6229_vm11 = vcmp.eq.f32.partialorder %v10329_v11, 8.507059e+37  ;;  %4474 = vpow2.f32 %v4240_v8  ;;  %v1426_v48 = vsel %vm1425_vm13, %v10320_v9, %v1422_v40  ;;  %v1430_v53 = vor.u32 1.1754944e-38, %v1429_v0 }
 0x18d   : > { %vm10334_vm9 = vweird.f32 %v5989_v10  ;;  %vm6254_vm3 = vcmp.eq.f32.partialorder %v2777_v28, 8.507059e+37  ;;  %v2780_v52 = vor.u32 1.1754944e-38, %v2779_v50  ;;  %v6258_v12 = vadd.f32 1.0, %v4473_v24 }
 0x18e   : > { %vm6250_vm0 = vmor %vm10334_vm9, %vm2744_vm6  ;;  %vm1428_vm7 = vcmp.eq.f32.partialorder %v1427_v31, 8.507059e+37  ;;  %v10339_v8 = vand.u32 2147483647, %v5854_v29  ;;  %v2776_v46 = vsel %vm6220_vm10, %v6097_v62, %v2772_v23  ;;  %v3432_v9 = vmul.f32 %v2841_v47, %v5927_v61  ;;  %v10347_v62 = vld [vmem:[#allocation5_spill] sm:$0xff]  ;;  %v4856_v61 = vld [vmem:[%s10083_s1 + $0x140] sm:$0xff] }
 0x18f   : > { %4476 = vpow2.f32 %v4184_v7  ;;  %v1431_v0 = vsel %vm1428_vm7, %v1430_v53, %v1426_v48  ;;  %vm10342_vm6 = vweird.f32 %v6016_v44  ;;  %vm10343_vm14 = vweird.f32 %v5972_v16  ;;  %4070 = vmatmul.msk.f32.gmra.mxu0 %vm290_vm1, %v4856_v61 }
 0x190   : > { %vm6262_vm8 = vcmp.eq.f32.partialorder %v10339_v8, 8.507059e+37  ;;  %vm6274_vm13 = vmor %vm10343_vm14, %vm10342_vm6  ;;  %v10346_v28 = vand.u32 2147483648, %v5989_v10  ;;  %v2811_v37 = vsel %vm6233_vm12, %v2810_v3, %v2806_v42  ;;  %4478 = vpow2.f32 %v4255_v49  ;;  %v6327_v42 = vpop.f32.mrf.mxu0 }
 0x191   : > { %v3338_v31 = vmul.f32 %v1431_v0, %v10347_v62  ;;  %vm10348_vm10 = vweird.f32 %v5903_v4  ;;  %v2682_v23 = vadd.f32 %v5991_v15, %v6093_v20  ;;  %v10351_v60 = vand.u32 2147483647, %v5946_v19  ;;  %10361 = vst [vmem:[#allocation13_spill] sm:$0xff] %v6327_v42 }
 0x192   : > { %v2750_v50 = vor.u32 1.1754944e-38, %v10346_v28  ;;  %vm6291_vm9 = vmor %vm10348_vm10, %vm2654_vm15  ;;  %v2746_v40 = vsel %vm6250_vm0, %v6050_v1, %v2742_v55  ;;  %v10354_v11 = vand.u32 2147483647, %v5989_v10  ;;  %v10359_v38 = vand.u32 2147483648, %v5946_v19  ;;  %v4475_v48 = vpop.eup %4474 }
 0x193   : > { %vm6299_vm12 = vcmp.eq.f32.partialorder %v10351_v60, 8.507059e+37  ;;  %vm6316_vm15 = vmor %vm2683_vm4, %vm2684_vm5  ;;  %v10360_v49 = vand.u32 2147483648, %v5972_v16  ;;  %v1675_v10 = vsub.f32 1.0, %v6080_v25  ;;  %v2781_v55 = vsel %vm6254_vm3, %v2780_v52, %v2776_v46  ;;  %3481 = vmatpush.msrb.mxu2 %v3338_v31 }
 0x194   : > { %vm6308_vm1 = vcmp.eq.f32.partialorder %v10354_v11, 8.507059e+37  ;;  %v2690_v3 = vor.u32 1.1754944e-38, %v10359_v38  ;;  %v2716_v53 = vsel %vm6274_vm13, %v6016_v44, %v6116_v45  ;;  %v10362_v19 = vand.u32 2147483647, %v5972_v16  ;;  %v6350_v44 = vpop.f32.mrf.mxu3 }
 0x195   : > { %v2720_v1 = vor.u32 1.1754944e-38, %v10360_v49  ;;  %v3430_v25 = vmul.f32 %v2811_v37, %v5863_v18  ;;  %4480 = vrcp.f32 %v6258_v12  ;;  %3518 = vmatpush.msra.mxu2 %v3432_v9  ;;  %v2656_v63 = vsel %vm6291_vm9, %v5961_v57, %v6076_v26  ;;  %v4477_v45 = vpop.eup %4476 }
 0x196   : > { %vm6335_vm5 = vcmp.eq.f32.partialorder %v10362_v19, 8.507059e+37  ;;  %v10365_v52 = vand.u32 2147483648, %v5854_v29  ;;  %vm1678_vm4 = vweird.f32 %v5937_v33  ;;  %v2751_v16 = vsel %vm6308_vm1, %v2750_v50, %v2746_v40  ;;  %v4479_v26 = vpop.eup %4478 }
 0x197   : > { %v2686_v18 = vsel %vm6316_vm15, %v5991_v15, %v2682_v23  ;;  %v4191_v46 = vmul.f32 -1.442695, %v6119_v54  ;;  %v1704_v57 = vmul.f32 %v6134_v51, %v6082_v2  ;;  %v3428_v29 = vmul.f32 %v2781_v55, %v5778_v56  ;;  %3519 = vmatpush.msra.mxu2 %v3430_v25 }
 0x198   : > { %v1655_v8 = vor.u32 1.1754944e-38, %v10365_v52  ;;  %v2721_v9 = vsel %vm6335_vm5, %v2720_v1, %v2716_v53  ;;  %v1676_v0 = vmul.f32 %v5979_v17, %v1675_v10  ;;  %vm1679_vm0 = vweird.f32 %v5979_v17  ;;  %v6411_v41 = vpop.f32.mrf.mxu0  ;;  %v10373_v52 = vld [vmem:[#allocation17_spill] sm:$0xff] }
 0x199   : > { %v6363_v24 = vadd.f32 1.0, %v4475_v48  ;;  %v2661_v15 = vsel %vm6229_vm11, %v5955_v59, %v2656_v63  ;;  %v1682_v28 = vand.u32 2147483647, %v5937_v33  ;;  %v3426_v50 = vmul.f32 %v2751_v16, %v5686_v58  ;;  %3520 = vmatpush.msra.mxu2 %v3428_v29  ;;  %vm6400_vm11 = vmor %vm1678_vm4, %vm1679_vm0  ;;  %10371 = vst [vmem:[#allocation11_spill] sm:$0xff] %v6411_v41 }
 0x19a   : > { %v4242_v56 = vmul.f32 -1.442695, %v6350_v44  ;;  %v2691_v37 = vsel %vm6299_vm12, %v2690_v3, %v2686_v18  ;;  %v1684_v62 = vand.u32 2147483648, %v5937_v33  ;;  %v1734_v31 = vmul.f32 %v6146_v22, %v6100_v27  ;;  %v10372_v33 = vld [vmem:[#allocation35_spill] sm:$0xff] }
 0x19b   : > { %v6376_v61 = vadd.f32 1.0, %v4477_v45  ;;  %v6378_v47 = vpop.eup %4480  ;;  %v3424_v59 = vmul.f32 %v2721_v9, %v5600_v13  ;;  %4482 = vpow2.f32 %v4191_v46  ;;  %v1705_v36 = vsub.f32 1.0, %v1704_v57  ;;  %3521 = vmatpush.msra.mxu2 %v3426_v50  ;;  %v6393_v13 = vpop.f32.mrf.mxu2 }
 0x19c   : > { %v6381_v58 = vadd.f32 1.0, %v4479_v26  ;;  %v3420_v23 = vmul.f32 %v2661_v15, %v5434_v6  ;;  %v10366_v60 = vsel %vm6031_vm2, %v5917_v14, %v6019_v39  ;;  %v1677_v40 = vadd.f32 %v5979_v17, %v1676_v0  ;;  %v6455_v29 = vpop.f32.mrf.mxu3 }
 0x19d   : > { %v1656_v7 = vsel %vm6262_vm8, %v1655_v8, %v10366_v60  ;;  %4484 = vrcp.f32 %v6363_v24  ;;  %v3422_v11 = vmul.f32 %v2691_v37, %v5524_v32  ;;  %vm6404_vm2 = vcmp.eq.f32.partialorder %v1682_v28, 8.507059e+37  ;;  %3522 = vmatpush.msra.mxu2 %v3424_v59 }
 0x19e   : > { %v4193_v39 = vmul.f32 -1.442695, %v6185_v5  ;;  %4486 = vpow2.f32 %v4242_v56  ;;  %v1735_v34 = vsub.f32 1.0, %v1734_v31  ;;  %v1764_v32 = vmul.f32 %v6378_v47, %v6258_v12 }
 0x19f   : > { %4488 = vrcp.f32 %v6376_v61  ;;  %v4186_v4 = vmul.f32 -1.442695, %v10372_v33  ;;  %v1685_v20 = vor.u32 1.1754944e-38, %v1684_v62  ;;  %v1706_v38 = vmul.f32 %v6134_v51, %v1705_v36  ;;  %3523 = vmatpush.msra.mxu2 %v3422_v11 }
 0x1a0   : > { %4490 = vrcp.f32 %v6381_v58  ;;  %v4257_v3 = vmul.f32 -1.442695, %v6393_v13  ;;  %v1681_v49 = vsel %vm6400_vm11, %v5979_v17, %v1677_v40  ;;  %vm1708_vm3 = vweird.f32 %v6082_v2 }
 0x1a1   : > { %v1712_v1 = vand.u32 2147483647, %v6082_v2  ;;  %v4195_v10 = vmul.f32 -1.442695, %v6327_v42  ;;  %v4483_v55 = vpop.eup %4482  ;;  %vm1709_vm7 = vweird.f32 %v6134_v51  ;;  %v1714_v48 = vand.u32 2147483648, %v6082_v2  ;;  %3524 = vmatpush.msra.mxu2 %v3420_v23 }
 0x1a2   : > { %4492 = vpow2.f32 %v4193_v39  ;;  %v4197_v53 = vmul.f32 -1.442695, %v6411_v41  ;;  %v1736_v43 = vmul.f32 %v6146_v22, %v1735_v34  ;;  %v1742_v17 = vand.u32 2147483647, %v6100_v27  ;;  %vm6445_vm8 = vmor %vm1708_vm3, %vm1709_vm7 }
 0x1a3   : > { %v6427_v19 = vpop.eup %4484  ;;  %v1765_v25 = vsub.f32 1.0, %v1764_v32  ;;  %4494 = vpow2.f32 %v4186_v4  ;;  %v6432_v8 = vmul.f32 %v1656_v7, %v10373_v52  ;;  %v6436_v16 = vsel %vm6404_vm2, %v1685_v20, %v1681_v49  ;;  %v6470_v37 = vpop.f32.mrf.mxu2  ;;  %v10384_v7 = vld [vmem:[#allocation28_spill] sm:$0xff] }
 0x1a4   : > { %v4487_v63 = vpop.eup %4486  ;;  %v1707_v45 = vadd.f32 %v6134_v51, %v1706_v38  ;;  %4496 = vpow2.f32 %v4257_v3  ;;  %vm6449_vm6 = vcmp.eq.f32.partialorder %v1712_v1, 8.507059e+37  ;;  %vm1738_vm14 = vweird.f32 %v6100_v27  ;;  %v6506_v38 = vpop.f32.mrf.mxu0 }
 0x1a5   : > { %10374 = vst [vmem:[#allocation10_spill] sm:$0xff] %v6432_v8  ;;  %v6439_v18 = vpop.eup %4488  ;;  %vm1739_vm13 = vweird.f32 %v6146_v22  ;;  %4498 = vpow2.f32 %v4195_v10  ;;  %v6459_v9 = vadd.f32 1.0, %v4483_v55  ;;  %v1715_v2 = vor.u32 1.1754944e-38, %v1714_v48  ;;  %v6737_v8 = vpop.f32.mrf.mxu1 }
 0x1a6   : > { %v6457_v26 = vpop.eup %4490  ;;  %v1744_v0 = vand.u32 2147483648, %v6100_v27  ;;  %4500 = vpow2.f32 %v4197_v53  ;;  %v1737_v15 = vadd.f32 %v6146_v22, %v1736_v43  ;;  %vm6463_vm10 = vcmp.eq.f32.partialorder %v1742_v17, 8.507059e+37  ;;  %vm6479_vm9 = vmor %vm1738_vm14, %vm1739_vm13  ;;  %10385 = vst [vmem:[#allocation25_spill] sm:$0xff] %v6506_v38 }
 0x1a7   : > { %10379 = vst [vmem:[#allocation19_spill] sm:$0xff] %v6459_v9  ;;  %v1766_v50 = vmul.f32 %v6378_v47, %v1765_v25  ;;  %v6468_v56 = vadd.f32 1.0, %v4487_v63  ;;  %v1711_v31 = vsel %vm6445_vm8, %v6134_v51, %v1707_v45  ;;  %vm1768_vm12 = vweird.f32 %v6258_v12 }
 0x1a8   : > { %v4493_v62 = vpop.eup %4492  ;;  %v2634_v36 = vmul.f32 %v6427_v19, %v6363_v24  ;;  %v4244_v23 = vmul.f32 -1.442695, %v6455_v29  ;;  %vm1769_vm1 = vweird.f32 %v6378_v47  ;;  %v1794_v51 = vmul.f32 %v6439_v18, %v6376_v61 }
 0x1a9   : > { %v4495_v60 = vpop.eup %4494  ;;  %v2859_v27 = vmul.f32 %v6457_v26, %v6381_v58  ;;  %v4188_v40 = vmul.f32 -1.442695, %v10384_v7  ;;  %4502 = vrcp.f32 %v6459_v9  ;;  %v1745_v6 = vor.u32 1.1754944e-38, %v1744_v0  ;;  %vm6513_vm15 = vmor %vm1768_vm12, %vm1769_vm1 }
 0x1aa   : > { %v4497_v11 = vpop.eup %4496  ;;  %v1774_v14 = vand.u32 2147483648, %v6258_v12  ;;  %v4259_v39 = vmul.f32 -1.442695, %v6470_v37  ;;  %v6498_v32 = vsel %vm6449_vm6, %v1715_v2, %v1711_v31  ;;  %v1741_v4 = vsel %vm6479_vm9, %v6146_v22, %v1737_v15 }
 0x1ab   : > { %v4499_v34 = vpop.eup %4498  ;;  %v6504_v20 = vadd.f32 %v6378_v47, %v1766_v50  ;;  %4504 = vrcp.f32 %v6468_v56  ;;  %v1772_v1 = vand.u32 2147483647, %v6258_v12  ;;  %v2635_v10 = vsub.f32 1.0, %v2634_v36 }
 0x1ac   : > { %v4501_v3 = vpop.eup %4500  ;;  %v6518_v22 = vadd.f32 1.0, %v4495_v60  ;;  %4506 = vpow2.f32 %v4244_v23  ;;  %v1795_v55 = vsub.f32 1.0, %v1794_v51  ;;  %v2860_v48 = vsub.f32 1.0, %v2859_v27 }
 0x1ad   : > { %v6520_v53 = vadd.f32 1.0, %v4497_v11  ;;  %4508 = vpow2.f32 %v4188_v40  ;;  %v6524_v43 = vsel %vm6463_vm10, %v1745_v6, %v1741_v4  ;;  %v6526_v17 = vor.u32 1.1754944e-38, %v1774_v14 }
 0x1ae   : > { %v4199_v25 = vmul.f32 -1.442695, %v6506_v38  ;;  %4510 = vpow2.f32 %v4259_v39  ;;  %v6529_v63 = vadd.f32 1.0, %v4493_v62  ;;  %v6531_v12 = vadd.f32 1.0, %v4499_v34  ;;  %v6587_v34 = vpop.f32.mrf.mxu3 }
 0x1af   : > { %v6537_v45 = vadd.f32 1.0, %v4501_v3  ;;  %v6539_v46 = vpop.eup %4502  ;;  %v2636_v57 = vmul.f32 %v6427_v19, %v2635_v10  ;;  %vm2638_vm5 = vweird.f32 %v6363_v24  ;;  %v2642_v2 = vand.u32 2147483647, %v6363_v24  ;;  %v6606_v10 = vpop.f32.mrf.mxu0 }
 0x1b0   : > { %10388 = vst [vmem:[#allocation9_spill] sm:$0xff] %v6529_v63  ;;  %4512 = vrcp.f32 %v6518_v22  ;;  %vm6547_vm4 = vcmp.eq.f32.partialorder %v1772_v1, 8.507059e+37  ;;  %vm2639_vm0 = vweird.f32 %v6427_v19  ;;  %v1796_v28 = vmul.f32 %v6439_v18, %v1795_v55 }
 0x1b1   : > { %10389 = vst [vmem:[#allocation16_spill] sm:$0xff] %v6531_v12  ;;  %v6545_v0 = vpop.eup %4504  ;;  %v2861_v50 = vmul.f32 %v6457_v26, %v2860_v48  ;;  %4514 = vrcp.f32 %v6520_v53  ;;  %v2644_v31 = vand.u32 2147483648, %v6363_v24  ;;  %vm1798_vm11 = vweird.f32 %v6376_v61  ;;  %vm6568_vm8 = vmor %vm2638_vm5, %vm2639_vm0 }
 0x1b2   : > { %10390 = vst [vmem:[#allocation21_spill] sm:$0xff] %v6537_v45  ;;  %v4507_v62 = vpop.eup %4506  ;;  %vm1799_vm2 = vweird.f32 %v6439_v18  ;;  %4516 = vpow2.f32 %v4199_v25  ;;  %v1802_v36 = vand.u32 2147483647, %v6376_v61  ;;  %v1804_v23 = vand.u32 2147483648, %v6376_v61 }
 0x1b3   : > { %10391 = vst [vmem:[#allocation8_spill] sm:$0xff] %v6539_v46  ;;  %v4509_v59 = vpop.eup %4508  ;;  %vm2863_vm3 = vweird.f32 %v6381_v58  ;;  %vm2864_vm7 = vweird.f32 %v6457_v26  ;;  %4518 = vrcp.f32 %v6529_v63  ;;  %v2637_v51 = vadd.f32 %v6427_v19, %v2636_v57  ;;  %vm6580_vm6 = vmor %vm1798_vm11, %vm1799_vm2 }
 0x1b4   : > { %v4511_v60 = vpop.eup %4510  ;;  %v2867_v40 = vand.u32 2147483647, %v6381_v58  ;;  %v2869_v11 = vand.u32 2147483648, %v6381_v58  ;;  %4520 = vrcp.f32 %v6531_v12  ;;  %v1797_v6 = vadd.f32 %v6439_v18, %v1796_v28  ;;  %vm6600_vm13 = vmor %vm2863_vm3, %vm2864_vm7  ;;  %10402 = vst [vmem:[#allocation15_spill] sm:$0xff] %v6606_v10 }
 0x1b5   : > { %v2862_v24 = vadd.f32 %v6457_v26, %v2861_v50  ;;  %v6585_v39 = vadd.f32 1.0, %v4507_v62  ;;  %4522 = vrcp.f32 %v6537_v45  ;;  %vm6592_vm14 = vcmp.eq.f32.partialorder %v2642_v2, 8.507059e+37 }
 0x1b6   : > { %v6589_v4 = vpop.eup %4512  ;;  %v2664_v1 = vmul.f32 %v6545_v0, %v6468_v56  ;;  %v6608_v55 = vadd.f32 1.0, %v4509_v59  ;;  %v2645_v25 = vor.u32 1.1754944e-38, %v2644_v31  ;;  %vm6612_vm10 = vcmp.eq.f32.partialorder %v1802_v36, 8.507059e+37  ;;  %v6691_v62 = vpop.f32.mrf.mxu3 }
 0x1b7   : > { %v6610_v48 = vpop.eup %4514  ;;  %v1805_v2 = vor.u32 1.1754944e-38, %v1804_v23  ;;  %v6616_v58 = vadd.f32 1.0, %v4511_v60  ;;  %v2641_v50 = vsel %vm6568_vm8, %v6427_v19, %v2637_v51  ;;  %vm6621_vm9 = vcmp.eq.f32.partialorder %v2867_v40, 8.507059e+37  ;;  %v10409_v40 = vld [vmem:[#allocation22_spill] sm:$0xff] }
 0x1b8   : > { %v4517_v28 = vpop.eup %4516  ;;  %v2870_v59 = vor.u32 1.1754944e-38, %v2869_v11  ;;  %v4246_v52 = vmul.f32 -1.442695, %v6587_v34  ;;  %v1801_v31 = vsel %vm6580_vm6, %v6439_v18, %v1797_v6  ;;  %v2866_v36 = vsel %vm6600_vm13, %v6457_v26, %v2862_v24  ;;  %v10411_v11 = vld [vmem:[#allocation26_spill] sm:$0xff] }
 0x1b9   : > { %v4201_v23 = vmul.f32 -1.442695, %v6606_v10  ;;  %4524 = vrcp.f32 %v6585_v39  ;;  %v6634_v19 = vpop.eup %4518  ;;  %v2665_v60 = vsub.f32 1.0, %v2664_v1  ;;  %v1824_v51 = vmul.f32 %v6589_v4, %v6518_v22 }
 0x1ba   : > { %10407 = vst [vmem:[#allocation20_spill] sm:$0xff] %v6634_v19  ;;  %v2889_v27 = vmul.f32 %v6610_v48, %v6520_v53  ;;  %4526 = vrcp.f32 %v6608_v55  ;;  %v6641_v18 = vpop.eup %4520  ;;  %v6645_v26 = vmul.f32 %v6436_v16, %v10409_v40  ;;  %v6649_v6 = vmul.f32 %v6498_v32, %v10411_v11  ;;  %v10416_v40 = vld [vmem:[#allocation29_spill] sm:$0xff] }
 0x1bb   : > { %10408 = vst [vmem:[#allocation7_spill] sm:$0xff] %v6641_v18  ;;  %v6651_v14 = vadd.f32 1.0, %v4517_v28  ;;  %4528 = vrcp.f32 %v6616_v58  ;;  %v6654_v24 = vpop.eup %4522  ;;  %v10415_v61 = vsel %vm6513_vm15, %v6378_v47, %v6504_v20  ;;  %v2646_v1 = vsel %vm6592_vm14, %v2645_v25, %v2641_v50  ;;  %v6668_v28 = vpop.f32.mrf.mxu2 }
 0x1bc   : > { %10410 = vst [vmem:[#allocation14_spill] sm:$0xff] %v6645_v26  ;;  %v1776_v16 = vsel %vm6547_vm4, %v6526_v17, %v10415_v61  ;;  %v1806_v32 = vsel %vm6612_vm10, %v1805_v2, %v1801_v31  ;;  %4530 = vpow2.f32 %v4246_v52  ;;  %v6672_v11 = vmul.f32 %v6524_v43, %v10416_v40  ;;  %v10418_v52 = vld [vmem:[#allocation30_spill] sm:$0xff]  ;;  %v10420_v2 = vld [vmem:[#allocation23_spill] sm:$0xff] }
 0x1bd   : > { %10412 = vst [vmem:[#allocation18_spill] sm:$0xff] %v6649_v6  ;;  %v2871_v47 = vsel %vm6621_vm9, %v2870_v59, %v2866_v36  ;;  %v2672_v20 = vand.u32 2147483647, %v6468_v56  ;;  %4532 = vpow2.f32 %v4201_v23  ;;  %v2666_v49 = vmul.f32 %v6545_v0, %v2665_v60 }
 0x1be   : > { %10413 = vst [vmem:[#allocation6_spill] sm:$0xff] %v6651_v14  ;;  %v1825_v17 = vsub.f32 1.0, %v1824_v51  ;;  %v2890_v15 = vsub.f32 1.0, %v2889_v27  ;;  %v4190_v3 = vmul.f32 -1.442695, %v6192_v30  ;;  %v6682_v57 = vmul.f32 %v1776_v16, %v10418_v52 }
 0x1bf   : > { %10414 = vst [vmem:[#allocation5_spill] sm:$0xff] %v6654_v24  ;;  %v6679_v25 = vpop.eup %4524  ;;  %v6685_v43 = vmul.f32 %v2646_v1, %v10420_v2  ;;  %v6688_v50 = vmul.f32 %v1806_v32, %v5798_v21  ;;  %4534 = vrcp.f32 %v6651_v14  ;;  %v6696_v31 = vmul.f32 %v2871_v47, %v6196_v35  ;;  %v6713_v1 = vpop.f32.mrf.mxu0 }
 0x1c0   : > { %10417 = vst [vmem:[#allocation35_spill] sm:$0xff] %v6672_v11  ;;  %v6693_v59 = vpop.eup %4526  ;;  %vm2668_vm12 = vweird.f32 %v6468_v56  ;;  %vm2669_vm1 = vweird.f32 %v6545_v0  ;;  %v2674_v36 = vand.u32 2147483648, %v6468_v56  ;;  %vm6703_vm15 = vcmp.eq.f32.partialorder %v2672_v20, 8.507059e+37 }
 0x1c1   : > { %10419 = vst [vmem:[#allocation17_spill] sm:$0xff] %v6682_v57  ;;  %v6701_v23 = vpop.eup %4528  ;;  %vm1828_vm5 = vweird.f32 %v6518_v22  ;;  %v1832_v60 = vand.u32 2147483647, %v6518_v22  ;;  %v1834_v51 = vand.u32 2147483648, %v6518_v22  ;;  %v2667_v27 = vadd.f32 %v6545_v0, %v2666_v49  ;;  %vm6717_vm4 = vmor %vm2668_vm12, %vm2669_vm1 }
 0x1c2   : > { %10421 = vst [vmem:[#allocation28_spill] sm:$0xff] %v6685_v43  ;;  %v4531_v35 = vpop.eup %4530  ;;  %v1826_v61 = vmul.f32 %v6589_v4, %v1825_v17  ;;  %v2891_v16 = vmul.f32 %v6610_v48, %v2890_v15  ;;  %4536 = vpow2.f32 %v4190_v3  ;;  %vm1829_vm0 = vweird.f32 %v6589_v4 }
 0x1c3   : > { %10422 = vst [vmem:[#allocation22_spill] sm:$0xff] %v6688_v50  ;;  %v4533_v32 = vpop.eup %4532  ;;  %vm2893_vm11 = vweird.f32 %v6520_v53  ;;  %v2694_v47 = vmul.f32 %v6679_v25, %v6585_v39  ;;  %v4261_v20 = vmul.f32 -1.442695, %v6668_v28  ;;  %vm2894_vm2 = vweird.f32 %v6610_v48  ;;  %vm6747_vm3 = vmor %vm1828_vm5, %vm1829_vm0  ;;  %v6757_v40 = vpop.f32.mrf.mxu2 }
 0x1c4   : > { %10423 = vst [vmem:[#allocation26_spill] sm:$0xff] %v6696_v31  ;;  %v2897_v49 = vand.u32 2147483647, %v6520_v53  ;;  %v2899_v17 = vand.u32 2147483648, %v6520_v53  ;;  %v1854_v56 = vmul.f32 %v6693_v59, %v6608_v55  ;;  %v2675_v3 = vor.u32 1.1754944e-38, %v2674_v36  ;;  %vm6763_vm8 = vmor %vm2893_vm11, %vm2894_vm2 }
 0x1c5   : > { %10426 = vst [vmem:[#allocation29_spill] sm:$0xff] %v6713_v1  ;;  %v6731_v15 = vpop.eup %4534  ;;  %v1835_v52 = vor.u32 1.1754944e-38, %v1834_v51  ;;  %v2919_v2 = vmul.f32 %v6701_v23, %v6616_v58  ;;  %v6735_v43 = vadd.f32 1.0, %v4531_v35  ;;  %v2671_v26 = vsel %vm6717_vm4, %v6545_v0, %v2667_v27 }
 0x1c6   : > { %10429 = vst [vmem:[#allocation30_spill] sm:$0xff] %v6731_v15  ;;  %v1827_v6 = vadd.f32 %v6589_v4, %v1826_v61  ;;  %vm6751_vm7 = vcmp.eq.f32.partialorder %v1832_v60, 8.507059e+37  ;;  %v2892_v35 = vadd.f32 %v6610_v48, %v2891_v16  ;;  %v4203_v11 = vmul.f32 -1.442695, %v6713_v1 }
 0x1c7   : > { %v6767_v0 = vadd.f32 1.0, %v4533_v32  ;;  %v2695_v60 = vsub.f32 1.0, %v2694_v47  ;;  %4538 = vpow2.f32 %v4261_v20  ;;  %v4248_v27 = vmul.f32 -1.442695, %v6691_v62  ;;  %v6781_v47 = vpop.f32.mrf.mxu3 }
 0x1c8   : > { %v4537_v61 = vpop.eup %4536  ;;  %vm6770_vm6 = vcmp.eq.f32.partialorder %v2897_v49, 8.507059e+37  ;;  %v2900_v57 = vor.u32 1.1754944e-38, %v2899_v17  ;;  %v1855_v50 = vsub.f32 1.0, %v1854_v56  ;;  %v4192_v31 = vmul.f32 -1.442695, %v6737_v8 }
 0x1c9   : > { %10436 = vst [vmem:[#allocation23_spill] sm:$0xff] %v6767_v0  ;;  %v6777_v53 = vsel %vm6703_vm15, %v2675_v3, %v2671_v26  ;;  %v2920_v54 = vsub.f32 1.0, %v2919_v2  ;;  %4540 = vrcp.f32 %v6735_v43  ;;  %v4263_v32 = vmul.f32 -1.442695, %v6757_v40  ;;  %v6796_v2 = vpop.f32.mrf.mxu0 }
 0x1ca   : > { %v1831_v20 = vsel %vm6747_vm3, %v6589_v4, %v1827_v6  ;;  %v2896_v49 = vsel %vm6763_vm8, %v6610_v48, %v2892_v35  ;;  %vm2698_vm14 = vweird.f32 %v6585_v39  ;;  %4542 = vpow2.f32 %v4203_v11  ;;  %10439 = vst [vmem:[#allocation38_spill] sm:$0xff] %v6796_v2 }
 0x1cb   : > { %v2696_v26 = vmul.f32 %v6679_v25, %v2695_v60  ;;  %v2702_v21 = vand.u32 2147483647, %v6585_v39  ;;  %v6792_v17 = vadd.f32 1.0, %v4537_v61  ;;  %4544 = vpow2.f32 %v4248_v27 }
 0x1cc   : > { %v2704_v56 = vand.u32 2147483648, %v6585_v39  ;;  %v1856_v3 = vmul.f32 %v6693_v59, %v1855_v50  ;;  %4546 = vpow2.f32 %v4192_v31  ;;  %v4250_v4 = vmul.f32 -1.442695, %v6781_v47  ;;  %v6892_v39 = vpop.f32.mrf.mxu2 }
 0x1cd   : > { %v4539_v48 = vpop.eup %4538  ;;  %vm2699_vm13 = vweird.f32 %v6679_v25  ;;  %vm1858_vm10 = vweird.f32 %v6608_v55  ;;  %v2921_v6 = vmul.f32 %v6701_v23, %v2920_v54  ;;  %4548 = vpow2.f32 %v4263_v32 }
 0x1ce   : > { %vm1859_vm9 = vweird.f32 %v6693_v59  ;;  %v1862_v11 = vand.u32 2147483647, %v6608_v55  ;;  %v1864_v36 = vand.u32 2147483648, %v6608_v55  ;;  %vm2923_vm12 = vweird.f32 %v6616_v58  ;;  %vm6814_vm15 = vmor %vm2698_vm14, %vm2699_vm13 }
 0x1cf   : > { %v6806_v50 = vpop.eup %4540  ;;  %v2697_v31 = vadd.f32 %v6679_v25, %v2696_v26  ;;  %vm2924_vm1 = vweird.f32 %v6701_v23  ;;  %4550 = vrcp.f32 %v6792_v17  ;;  %v4205_v35 = vmul.f32 -1.442695, %v6796_v2  ;;  %vm6830_vm5 = vmor %vm1858_vm10, %vm1859_vm9 }
 0x1d0   : > { %v4543_v54 = vpop.eup %4542  ;;  %v1857_v60 = vadd.f32 %v6693_v59, %v1856_v3  ;;  %v2929_v27 = vand.u32 2147483648, %v6616_v58  ;;  %v6820_v61 = vadd.f32 1.0, %v4539_v48  ;;  %4552 = vpow2.f32 %v4250_v4  ;;  %vm6848_vm11 = vmor %vm2923_vm12, %vm2924_vm1 }
 0x1d1   : > { %v4545_v32 = vpop.eup %4544  ;;  %v1836_v26 = vsel %vm6751_vm7, %v1835_v52, %v1831_v20  ;;  %v2901_v5 = vsel %vm6770_vm6, %v2900_v57, %v2896_v49  ;;  %v2922_v3 = vadd.f32 %v6701_v23, %v2921_v6  ;;  %v2927_v48 = vand.u32 2147483647, %v6616_v58 }
 0x1d2   : > { %v4547_v4 = vpop.eup %4546  ;;  %vm6836_vm4 = vcmp.eq.f32.partialorder %v2702_v21, 8.507059e+37  ;;  %v2705_v52 = vor.u32 1.1754944e-38, %v2704_v56  ;;  %vm6840_vm0 = vcmp.eq.f32.partialorder %v1862_v11, 8.507059e+37  ;;  %v2724_v51 = vmul.f32 %v6806_v50, %v6735_v43 }
 0x1d3   : > { %v4549_v16 = vpop.eup %4548  ;;  %v2701_v20 = vsel %vm6814_vm15, %v6679_v25, %v2697_v31  ;;  %v1865_v49 = vor.u32 1.1754944e-38, %v1864_v36  ;;  %v6857_v21 = vadd.f32 1.0, %v4543_v54  ;;  %4554 = vpow2.f32 %v4205_v35  ;;  %v6873_v31 = vpop.f32.mrf.mxu1 }
 0x1d4   : > { %v1861_v58 = vsel %vm6830_vm5, %v6693_v59, %v1857_v60  ;;  %v2930_v56 = vor.u32 1.1754944e-38, %v2929_v27  ;;  %4556 = vrcp.f32 %v6820_v61  ;;  %v6863_v6 = vadd.f32 1.0, %v4545_v32  ;;  %v7010_v38 = vpop.f32.mrf.mxu2 }
 0x1d5   : > { %10450 = vst [vmem:[#allocation39_spill] sm:$0xff] %v6857_v21  ;;  %v6865_v11 = vpop.eup %4550  ;;  %4558 = vrcp.f32 %v6767_v0  ;;  %v2926_v25 = vsel %vm6848_vm11, %v6701_v23, %v2922_v3  ;;  %vm2928_vm2 = vcmp.eq.f32.partialorder %v2927_v48, 8.507059e+37  ;;  %v6871_v36 = vadd.f32 1.0, %v4547_v4 }
 0x1d6   : > { %v4553_v35 = vpop.eup %4552  ;;  %v6877_v59 = vmul.f32 %v6777_v53, %v6350_v44  ;;  %v2706_v54 = vsel %vm6836_vm4, %v2705_v52, %v2701_v20  ;;  %v2725_v22 = vsub.f32 1.0, %v2724_v51  ;;  %v6881_v60 = vadd.f32 1.0, %v4549_v16  ;;  %v6897_v53 = vpop.f32.mrf.mxu0 }
 0x1d7   : > { %v6884_v27 = vmul.f32 %v1836_v26, %v10372_v33  ;;  %v6887_v23 = vmul.f32 %v2901_v5, %v6393_v13  ;;  %v1866_v32 = vsel %vm6840_vm0, %v1865_v49, %v1861_v58  ;;  %4560 = vrcp.f32 %v6857_v21  ;;  %10454 = vst [vmem:[#allocation43_spill] sm:$0xff] %v6897_v53  ;;  %v6925_v58 = vpop.f32.mrf.mxu3 }
 0x1d8   : > { %10451 = vst [vmem:[#allocation40_spill] sm:$0xff] %v6877_v59  ;;  %v2931_v44 = vsel %vm2928_vm2, %v2930_v56, %v2926_v25  ;;  %v1884_v46 = vmul.f32 %v6865_v11, %v6792_v17  ;;  %4562 = vrcp.f32 %v6863_v6  ;;  %v4194_v33 = vmul.f32 -1.442695, %v6873_v31 }
 0x1d9   : > { %10452 = vst [vmem:[#allocation41_spill] sm:$0xff] %v6884_v27  ;;  %v4555_v26 = vpop.eup %4554  ;;  %v6901_v5 = vmul.f32 %v2706_v54, %v6455_v29  ;;  %v2732_v13 = vand.u32 2147483647, %v6735_v43  ;;  %4564 = vrcp.f32 %v6871_v36  ;;  %v6905_v3 = vadd.f32 1.0, %v4553_v35 }
 0x1da   : > { %10453 = vst [vmem:[#allocation42_spill] sm:$0xff] %v6887_v23  ;;  %v6907_v48 = vpop.eup %4556  ;;  %v2726_v4 = vmul.f32 %v6806_v50, %v2725_v22  ;;  %v2734_v52 = vand.u32 2147483648, %v6735_v43  ;;  %4566 = vrcp.f32 %v6881_v60  ;;  %v4265_v57 = vmul.f32 -1.442695, %v6892_v39 }
 0x1db   : > { %10455 = vst [vmem:[#allocation44_spill] sm:$0xff] %v6901_v5  ;;  %v6913_v55 = vpop.eup %4558  ;;  %v6916_v29 = vmul.f32 %v1866_v32, %v10384_v7  ;;  %v6919_v51 = vmul.f32 %v2931_v44, %v6470_v37  ;;  %v1894_v16 = vand.u32 2147483648, %v6792_v17  ;;  %v4207_v20 = vmul.f32 -1.442695, %v6897_v53 }
 0x1dc   : > { %10456 = vst [vmem:[#allocation45_spill] sm:$0xff] %v6913_v55  ;;  %vm2728_vm3 = vweird.f32 %v6735_v43  ;;  %vm2729_vm7 = vweird.f32 %v6806_v50  ;;  %v1885_v49 = vsub.f32 1.0, %v1884_v46  ;;  %4568 = vpow2.f32 %v4194_v33 }
 0x1dd   : > { %10457 = vst [vmem:[#allocation46_spill] sm:$0xff] %v6916_v29  ;;  %v6927_v56 = vpop.eup %4560  ;;  %v1892_v7 = vand.u32 2147483647, %v6792_v17  ;;  %v2949_v37 = vmul.f32 %v6907_v48, %v6820_v61  ;;  %v6932_v25 = vadd.f32 1.0, %v4555_v26  ;;  %4570 = vrcp.f32 %v6905_v3  ;;  %vm6948_vm6 = vmor %vm2728_vm3, %vm2729_vm7 }
 0x1de   : > { %10458 = vst [vmem:[#allocation47_spill] sm:$0xff] %v6919_v51  ;;  %v6935_v35 = vpop.eup %4562  ;;  %v2727_v54 = vadd.f32 %v6806_v50, %v2726_v4  ;;  %vm6938_vm8 = vcmp.eq.f32.partialorder %v2732_v13, 8.507059e+37  ;;  %v2735_v32 = vor.u32 1.1754944e-38, %v2734_v52  ;;  %4572 = vpow2.f32 %v4265_v57  ;;  %v6962_v57 = vpop.f32.mrf.mxu1 }
 0x1df   : > { %10459 = vst [vmem:[#allocation48_spill] sm:$0xff] %v6927_v56  ;;  %v6942_v44 = vpop.eup %4564  ;;  %vm1888_vm14 = vweird.f32 %v6792_v17  ;;  %v6953_v33 = vor.u32 1.1754944e-38, %v1894_v16  ;;  %v2959_v26 = vand.u32 2147483648, %v6820_v61  ;;  %4574 = vpow2.f32 %v4207_v20  ;;  %v7015_v17 = vpop.f32.mrf.mxu3 }
 0x1e0   : > { %10460 = vst [vmem:[#allocation49_spill] sm:$0xff] %v6932_v25  ;;  %v6956_v13 = vpop.eup %4566  ;;  %v1886_v4 = vmul.f32 %v6865_v11, %v1885_v49  ;;  %vm2953_vm13 = vweird.f32 %v6820_v61  ;;  %v2957_v52 = vand.u32 2147483647, %v6820_v61  ;;  %v2764_v43 = vand.u32 2147483648, %v6863_v6 }
 0x1e1   : > { %vm1889_vm10 = vweird.f32 %v6865_v11  ;;  %vm6965_vm9 = vcmp.eq.f32.partialorder %v1892_v7, 8.507059e+37  ;;  %v2950_v59 = vsub.f32 1.0, %v2949_v37  ;;  %4576 = vrcp.f32 %v6932_v25 }
 0x1e2   : > { %v2754_v20 = vmul.f32 %v6935_v35, %v6863_v6  ;;  %v4569_v49 = vpop.eup %4568  ;;  %v2731_v5 = vsel %vm6948_vm6, %v6806_v50, %v2727_v54  ;;  %v1914_v27 = vmul.f32 %v6942_v44, %v6871_v36  ;;  %v1924_v29 = vand.u32 2147483648, %v6871_v36  ;;  %vm6999_vm15 = vmor %vm1888_vm14, %vm1889_vm10 }
 0x1e3   : > { %v4252_v7 = vmul.f32 -1.442695, %v6925_v58  ;;  %v6979_v23 = vpop.eup %4570  ;;  %v6981_v37 = vor.u32 1.1754944e-38, %v2959_v26  ;;  %vm2758_vm12 = vweird.f32 %v6863_v6  ;;  %v2762_v51 = vand.u32 2147483647, %v6863_v6 }
 0x1e4   : > { %v2979_v9 = vmul.f32 %v6956_v13, %v6881_v60  ;;  %v4573_v46 = vpop.eup %4572  ;;  %v1887_v50 = vadd.f32 %v6865_v11, %v1886_v4  ;;  %v6988_v54 = vor.u32 1.1754944e-38, %v2764_v43  ;;  %vm1918_vm1 = vweird.f32 %v6871_v36 }
 0x1e5   : > { %v1922_v42 = vand.u32 2147483647, %v6871_v36  ;;  %v4196_v19 = vmul.f32 -1.442695, %v6962_v57  ;;  %v4575_v26 = vpop.eup %4574  ;;  %v2736_v63 = vsel %vm6938_vm8, %v2735_v32, %v2731_v5  ;;  %v2951_v4 = vmul.f32 %v6907_v48, %v2950_v59 }
 0x1e6   : > { %vm7004_vm5 = vcmp.eq.f32.partialorder %v2957_v52, 8.507059e+37  ;;  %v2755_v18 = vsub.f32 1.0, %v2754_v20  ;;  %v7008_v12 = vadd.f32 1.0, %v4569_v49  ;;  %vm2954_vm4 = vweird.f32 %v6907_v48  ;;  %v7024_v49 = vpop.f32.mrf.mxu0 }
 0x1e7   : > { %v1915_v5 = vsub.f32 1.0, %v1914_v27  ;;  %v7013_v22 = vor.u32 1.1754944e-38, %v1924_v29  ;;  %4578 = vpow2.f32 %v4252_v7  ;;  %v7017_v32 = vpop.eup %4576  ;;  %v2980_v59 = vsub.f32 1.0, %v2979_v9  ;;  %10472 = vst [vmem:[#allocation51_spill] sm:$0xff] %v7024_v49  ;;  %vm7045_vm2 = vmor %vm2953_vm13, %vm2954_vm4 }
 0x1e8   : > { %10471 = vst [vmem:[#allocation50_spill] sm:$0xff] %v7017_v32  ;;  %vm2983_vm0 = vweird.f32 %v6881_v60  ;;  %v2784_v52 = vmul.f32 %v6979_v23, %v6905_v3  ;;  %v7022_v20 = vadd.f32 1.0, %v4573_v46  ;;  %v7027_v24 = vmul.f32 %v2736_v63, %v6587_v34 }
 0x1e9   : > { %v1891_v27 = vsel %vm6999_vm15, %v6865_v11, %v1887_v50  ;;  %4580 = vpow2.f32 %v4196_v19  ;;  %v4267_v29 = vmul.f32 -1.442695, %v7010_v38  ;;  %v2952_v9 = vadd.f32 %v6907_v48, %v2951_v4 }
 0x1ea   : > { %10473 = vst [vmem:[#allocation52_spill] sm:$0xff] %v7027_v24  ;;  %v2756_v7 = vmul.f32 %v6935_v35, %v2755_v18  ;;  %vm7035_vm11 = vcmp.eq.f32.partialorder %v2762_v51, 8.507059e+37  ;;  %4582 = vrcp.f32 %v7008_v12  ;;  %v4254_v63 = vmul.f32 -1.442695, %v7015_v17  ;;  %v7057_v51 = vpop.f32.mrf.mxu1 }
 0x1eb   : > { %vm2759_vm3 = vweird.f32 %v6935_v35  ;;  %v1916_v34 = vmul.f32 %v6942_v44, %v1915_v5  ;;  %vm7051_vm7 = vcmp.eq.f32.partialorder %v1922_v42, 8.507059e+37  ;;  %v2987_v18 = vand.u32 2147483647, %v6881_v60 }
 0x1ec   : > { %v2989_v11 = vand.u32 2147483648, %v6881_v60  ;;  %v2981_v61 = vmul.f32 %v6956_v13, %v2980_v59  ;;  %v7060_v46 = vadd.f32 1.0, %v4575_v26  ;;  %v2785_v50 = vsub.f32 1.0, %v2784_v52  ;;  %vm7077_vm14 = vmor %vm2758_vm12, %vm2759_vm3 }
 0x1ed   : > { %4584 = vrcp.f32 %v7022_v20  ;;  %v4579_v4 = vpop.eup %4578  ;;  %v1896_v42 = vsel %vm6965_vm9, %v6953_v33, %v1891_v27  ;;  %vm1919_vm8 = vweird.f32 %v6942_v44  ;;  %vm2984_vm6 = vweird.f32 %v6956_v13 }
 0x1ee   : > { %10480 = vst [vmem:[#allocation53_spill] sm:$0xff] %v7060_v46  ;;  %4586 = vpow2.f32 %v4267_v29  ;;  %v2956_v5 = vsel %vm7045_vm2, %v6907_v48, %v2952_v9  ;;  %v2757_v26 = vadd.f32 %v6935_v35, %v2756_v7  ;;  %v4198_v59 = vmul.f32 -1.442695, %v7057_v51  ;;  %vm7091_vm10 = vmor %vm1918_vm1, %vm1919_vm8  ;;  %v7125_v43 = vpop.f32.mrf.mxu0 }
 0x1ef   : > { %4588 = vpow2.f32 %v4254_v63  ;;  %v4581_v52 = vpop.eup %4580  ;;  %v1917_v16 = vadd.f32 %v6942_v44, %v1916_v34  ;;  %vm7082_vm13 = vcmp.eq.f32.partialorder %v2987_v18, 8.507059e+37  ;;  %v2990_v48 = vor.u32 1.1754944e-38, %v2989_v11  ;;  %vm7110_vm9 = vmor %vm2983_vm0, %vm2984_vm6  ;;  %10490 = vst [vmem:[#allocation55_spill] sm:$0xff] %v7125_v43 }
 0x1f0   : > { %v4209_v29 = vmul.f32 -1.442695, %v7024_v49  ;;  %v7087_v9 = vpop.eup %4582  ;;  %v2982_v6 = vadd.f32 %v6956_v13, %v2981_v61  ;;  %4590 = vrcp.f32 %v7060_v46  ;;  %v2786_v63 = vmul.f32 %v6979_v23, %v2785_v50  ;;  %v7116_v61 = vpop.f32.mrf.mxu2 }
 0x1f1   : > { %v7098_v41 = vadd.f32 1.0, %v4579_v4  ;;  %v7101_v34 = vmul.f32 %v1896_v42, %v6192_v30  ;;  %v2961_v18 = vsel %vm7004_vm5, %v6981_v37, %v2956_v5  ;;  %vm2788_vm12 = vweird.f32 %v6905_v3 }
 0x1f2   : > { %v2792_v11 = vand.u32 2147483647, %v6905_v3  ;;  %v2761_v37 = vsel %vm7077_vm14, %v6935_v35, %v2757_v26  ;;  %vm2789_vm1 = vweird.f32 %v6979_v23  ;;  %v2794_v60 = vand.u32 2147483648, %v6905_v3 }
 0x1f3   : > { %10487 = vst [vmem:[#allocation54_spill] sm:$0xff] %v7101_v34  ;;  %v7118_v30 = vpop.eup %4584  ;;  %4592 = vpow2.f32 %v4198_v59  ;;  %v1921_v4 = vsel %vm7091_vm10, %v6942_v44, %v1917_v16  ;;  %v1944_v42 = vmul.f32 %v7087_v9, %v7008_v12  ;;  %v7132_v5 = vadd.f32 1.0, %v4581_v52  ;;  %vm7150_vm15 = vmor %vm2788_vm12, %vm2789_vm1 }
 0x1f4   : > { %v4587_v50 = vpop.eup %4586  ;;  %4594 = vpow2.f32 %v4209_v29  ;;  %v2986_v35 = vsel %vm7110_vm9, %v6956_v13, %v2982_v6  ;;  %v2787_v26 = vadd.f32 %v6979_v23, %v2786_v63  ;;  %v4269_v59 = vmul.f32 -1.442695, %v7116_v61 }
 0x1f5   : > { %v4589_v33 = vpop.eup %4588  ;;  %4596 = vrcp.f32 %v7098_v41  ;;  %v7141_v7 = vmul.f32 %v2961_v18, %v6668_v28  ;;  %v2766_v44 = vsel %vm7035_vm11, %v6988_v54, %v2761_v37  ;;  %v3009_v13 = vmul.f32 %v7118_v30, %v7022_v20  ;;  %v7178_v37 = vpop.f32.mrf.mxu3 }
 0x1f6   : > { %v4211_v16 = vmul.f32 -1.442695, %v7125_v43  ;;  %v7157_v29 = vpop.eup %4590  ;;  %v1926_v45 = vsel %vm7051_vm7, %v7013_v22, %v1921_v4  ;;  %vm7162_vm5 = vcmp.eq.f32.partialorder %v2792_v11, 8.507059e+37  ;;  %v2795_v3 = vor.u32 1.1754944e-38, %v2794_v60  ;;  %v7186_v4 = vpop.f32.mrf.mxu1 }
 0x1f7   : > { %10491 = vst [vmem:[#allocation56_spill] sm:$0xff] %v7141_v7  ;;  %v7166_v54 = vadd.f32 1.0, %v4587_v50  ;;  %v2991_v6 = vsel %vm7082_vm13, %v2990_v48, %v2986_v35  ;;  %v1945_v63 = vsub.f32 1.0, %v1944_v42  ;;  %4598 = vrcp.f32 %v7132_v5 }
 0x1f8   : > { %10494 = vst [vmem:[#allocation57_spill] sm:$0xff] %v7157_v29  ;;  %v7171_v18 = vadd.f32 1.0, %v4589_v33  ;;  %v2791_v22 = vsel %vm7150_vm15, %v6979_v23, %v2787_v26  ;;  %v1952_v19 = vand.u32 2147483647, %v7008_v12  ;;  %v1954_v11 = vand.u32 2147483648, %v7008_v12 }
 0x1f9   : > { %v4593_v36 = vpop.eup %4592  ;;  %4600 = vpow2.f32 %v4269_v59  ;;  %v7181_v27 = vmul.f32 %v2766_v44, %v6691_v62  ;;  %v7184_v48 = vmul.f32 %v1926_v45, %v6737_v8  ;;  %v3010_v50 = vsub.f32 1.0, %v3009_v13  ;;  %v7216_v45 = vpop.f32.mrf.mxu2 }
 0x1fa   : > { %v4595_v60 = vpop.eup %4594  ;;  %4602 = vpow2.f32 %v4211_v16  ;;  %v7191_v23 = vmul.f32 %v2991_v6, %v6757_v40  ;;  %v3017_v33 = vand.u32 2147483647, %v7022_v20  ;;  %v3019_v35 = vand.u32 2147483648, %v7022_v20 }
 0x1fb   : > { %10497 = vst [vmem:[#allocation58_spill] sm:$0xff] %v7181_v27  ;;  %v7188_v42 = vpop.eup %4596  ;;  %4604 = vrcp.f32 %v7166_v54  ;;  %v2796_v62 = vsel %vm7162_vm5, %v2795_v3, %v2791_v22  ;;  %v1946_v8 = vmul.f32 %v7087_v9, %v1945_v63  ;;  %v7200_v26 = vadd.f32 1.0, %v4593_v36 }
 0x1fc   : > { %10498 = vst [vmem:[#allocation59_spill] sm:$0xff] %v7184_v48  ;;  %4606 = vrcp.f32 %v7171_v18  ;;  %vm1948_vm4 = vweird.f32 %v7008_v12  ;;  %vm7203_vm0 = vcmp.eq.f32.partialorder %v1952_v19, 8.507059e+37  ;;  %v1955_v59 = vor.u32 1.1754944e-38, %v1954_v11 }
 0x1fd   : > { %10499 = vst [vmem:[#allocation60_spill] sm:$0xff] %v7191_v23  ;;  %v7207_v44 = vadd.f32 1.0, %v4595_v60  ;;  %v7209_v52 = vpop.eup %4598  ;;  %vm1949_vm11 = vweird.f32 %v7087_v9  ;;  %v3011_v13 = vmul.f32 %v7118_v30, %v3010_v50  ;;  %vm3013_vm2 = vweird.f32 %v7022_v20 }
 0x1fe   : > { %v2814_v16 = vmul.f32 %v7188_v42, %v7098_v41  ;;  %v7219_v3 = vmul.f32 %v2796_v62, %v6781_v47  ;;  %vm7221_vm3 = vcmp.eq.f32.partialorder %v3017_v33, 8.507059e+37  ;;  %v2824_v63 = vand.u32 2147483648, %v7098_v41  ;;  %vm7236_vm8 = vmor %vm1948_vm4, %vm1949_vm11  ;;  %v7276_v23 = vpop.f32.mrf.mxu1 }
 0x1ff   : > { %10502 = vst [vmem:[#allocation61_spill] sm:$0xff] %v7207_v44  ;;  %v4601_v28 = vpop.eup %4600  ;;  %v1984_v36 = vand.u32 2147483648, %v7132_v5  ;;  %v1947_v19 = vadd.f32 %v7087_v9, %v1946_v8  ;;  %vm3014_vm7 = vweird.f32 %v7118_v30  ;;  %v3020_v11 = vor.u32 1.1754944e-38, %v3019_v35 }
 0x200   : > { %10503 = vst [vmem:[#allocation62_spill] sm:$0xff] %v7219_v3  ;;  %v4603_v22 = vpop.eup %4602  ;;  %4608 = vrcp.f32 %v7200_v26  ;;  %vm2818_vm6 = vweird.f32 %v7098_v41  ;;  %v1974_v50 = vmul.f32 %v7209_v52, %v7132_v5  ;;  %v4256_v33 = vmul.f32 -1.442695, %v7178_v37  ;;  %vm7253_vm14 = vmor %vm3013_vm2, %vm3014_vm7 }
 0x201   : > { %v7230_v60 = vpop.eup %4604  ;;  %4610 = vrcp.f32 %v7207_v44  ;;  %v3012_v62 = vadd.f32 %v7118_v30, %v3011_v13  ;;  %v2815_v8 = vsub.f32 1.0, %v2814_v16  ;;  %v2822_v12 = vand.u32 2147483647, %v7098_v41  ;;  %v7264_v13 = vpop.f32.mrf.mxu0 }
 0x202   : > { %v7245_v35 = vpop.eup %4606  ;;  %v7249_v24 = vadd.f32 1.0, %v4601_v28  ;;  %v7257_v3 = vor.u32 1.1754944e-38, %v2824_v63  ;;  %v1982_v48 = vand.u32 2147483647, %v7132_v5  ;;  %v7260_v34 = vor.u32 1.1754944e-38, %v1984_v36  ;;  %10510 = vst [vmem:[#allocation63_spill] sm:$0xff] %v7264_v13  ;;  %v7266_v16 = vpop.f32.mrf.mxu3 }
 0x203   : > { %v7262_v7 = vadd.f32 1.0, %v4603_v22  ;;  %v1951_v20 = vsel %vm7236_vm8, %v7087_v9, %v1947_v19  ;;  %vm1978_vm13 = vweird.f32 %v7132_v5  ;;  %v3039_v28 = vmul.f32 %v7230_v60, %v7166_v54 }
 0x204   : > { %v3047_v63 = vand.u32 2147483647, %v7166_v54  ;;  %v4200_v36 = vmul.f32 -1.442695, %v7186_v4  ;;  %v1975_v22 = vsub.f32 1.0, %v1974_v50  ;;  %v2844_v10 = vmul.f32 %v7245_v35, %v7171_v18 }
 0x205   : > { %4612 = vpow2.f32 %v4256_v33  ;;  %v4271_v15 = vmul.f32 -1.442695, %v7216_v45  ;;  %v3016_v9 = vsel %vm7253_vm14, %v7118_v30, %v3012_v62  ;;  %v2816_v19 = vmul.f32 %v7188_v42, %v2815_v8  ;;  %v7303_v8 = vpop.f32.mrf.mxu2 }
 0x206   : > { %v7281_v47 = vpop.eup %4608  ;;  %vm7287_vm10 = vcmp.eq.f32.partialorder %v2822_v12, 8.507059e+37  ;;  %vm3043_vm9 = vweird.f32 %v7166_v54  ;;  %4614 = vrcp.f32 %v7249_v24  ;;  %v4258_v50 = vmul.f32 -1.442695, %v7266_v16 }
 0x207   : > { %v7294_v33 = vpop.eup %4610  ;;  %vm2819_vm12 = vweird.f32 %v7188_v42  ;;  %v3049_v1 = vand.u32 2147483648, %v7166_v54  ;;  %4616 = vrcp.f32 %v7262_v7  ;;  %v4202_v30 = vmul.f32 -1.442695, %v7276_v23 }
 0x208   : > { %10513 = vst [vmem:[#allocation64_spill] sm:$0xff] %v7294_v33  ;;  %v1956_v27 = vsel %vm7203_vm0, %v1955_v59, %v1951_v20  ;;  %vm1979_vm1 = vweird.f32 %v7209_v52  ;;  %v3040_v62 = vsub.f32 1.0, %v3039_v28  ;;  %4618 = vpow2.f32 %v4200_v36  ;;  %vm7320_vm5 = vmor %vm2818_vm6, %vm2819_vm12 }
 0x209   : > { %v3021_v12 = vsel %vm7221_vm3, %v3020_v11, %v3016_v9  ;;  %v2845_v55 = vsub.f32 1.0, %v2844_v10  ;;  %v2004_v0 = vmul.f32 %v7281_v47, %v7200_v26  ;;  %4620 = vpow2.f32 %v4271_v15  ;;  %vm7359_vm2 = vmor %vm1978_vm13, %vm1979_vm1 }
 0x20a   : > { %v2817_v2 = vadd.f32 %v7188_v42, %v2816_v19  ;;  %v1976_v53 = vmul.f32 %v7209_v52, %v1975_v22  ;;  %vm7311_vm15 = vcmp.eq.f32.partialorder %v1982_v48, 8.507059e+37  ;;  %v4213_v59 = vmul.f32 -1.442695, %v7264_v13 }
 0x20b   : > { %4622 = vpow2.f32 %v4258_v50  ;;  %v4613_v20 = vpop.eup %4612  ;;  %v7324_v15 = vor.u32 1.1754944e-38, %v3049_v1  ;;  %v2852_v6 = vand.u32 2147483647, %v7171_v18  ;;  %v4273_v48 = vmul.f32 -1.442695, %v7303_v8  ;;  %v7347_v50 = vpop.f32.mrf.mxu0 }
 0x20c   : > { %4624 = vpow2.f32 %v4202_v30  ;;  %v7328_v11 = vpop.eup %4614  ;;  %v7331_v28 = vmul.f32 %v1956_v27, %v6873_v31  ;;  %v3041_v36 = vmul.f32 %v7230_v60, %v3040_v62  ;;  %vm7334_vm4 = vcmp.eq.f32.partialorder %v3047_v63, 8.507059e+37 }
 0x20d   : > { %vm2848_vm0 = vweird.f32 %v7171_v18  ;;  %v2854_v1 = vand.u32 2147483648, %v7171_v18  ;;  %v7340_v22 = vpop.eup %4616  ;;  %v7343_v9 = vmul.f32 %v3021_v12, %v6892_v39  ;;  %vm3044_vm11 = vweird.f32 %v7230_v60  ;;  %v7409_v18 = vpop.f32.mrf.mxu3 }
 0x20e   : > { %10518 = vst [vmem:[#allocation65_spill] sm:$0xff] %v7331_v28  ;;  %v2846_v31 = vmul.f32 %v7245_v35, %v2845_v55  ;;  %v2005_v19 = vsub.f32 1.0, %v2004_v0  ;;  %v4619_v63 = vpop.eup %4618  ;;  %v2821_v30 = vsel %vm7320_vm5, %v7188_v42, %v2817_v2  ;;  %v1977_v27 = vadd.f32 %v7209_v52, %v1976_v53  ;;  %vm7380_vm6 = vmor %vm3043_vm9, %vm3044_vm11  ;;  %v7419_v39 = vpop.f32.mrf.mxu2 }
 0x20f   : > { %10521 = vst [vmem:[#allocation66_spill] sm:$0xff] %v7343_v9  ;;  %4626 = vpow2.f32 %v4213_v59  ;;  %v7353_v62 = vadd.f32 1.0, %v4613_v20  ;;  %v4621_v28 = vpop.eup %4620  ;;  %vm2849_vm3 = vweird.f32 %v7245_v35  ;;  %vm7364_vm7 = vcmp.eq.f32.partialorder %v2852_v6, 8.507059e+37 }
 0x210   : > { %v3069_v2 = vmul.f32 %v7328_v11, %v7249_v24  ;;  %4628 = vpow2.f32 %v4273_v48  ;;  %v3042_v55 = vadd.f32 %v7230_v60, %v3041_v36  ;;  %v2855_v42 = vor.u32 1.1754944e-38, %v2854_v1  ;;  %vm7395_vm14 = vmor %vm2848_vm0, %vm2849_vm3  ;;  %v7403_v1 = vpop.f32.mrf.mxu1  ;;  %10530 = vst [vmem:[#allocation67_spill] sm:$0xff] %v7409_v18 }
 0x211   : > { %v4623_v53 = vpop.eup %4622  ;;  %vm2008_vm8 = vweird.f32 %v7200_v26  ;;  %v4215_v5 = vmul.f32 -1.442695, %v7347_v50  ;;  %v2826_v59 = vsel %vm7287_vm10, %v7257_v3, %v2821_v30  ;;  %v2847_v10 = vadd.f32 %v7245_v35, %v2846_v31 }
 0x212   : > { %v4625_v12 = vpop.eup %4624  ;;  %v2006_v6 = vmul.f32 %v7281_v47, %v2005_v19  ;;  %v7386_v48 = vadd.f32 1.0, %v4619_v63  ;;  %v1981_v36 = vsel %vm7359_vm2, %v7209_v52, %v1977_v27  ;;  %v2012_v54 = vand.u32 2147483647, %v7200_v26 }
 0x213   : > { %4630 = vrcp.f32 %v7353_v62  ;;  %v7401_v3 = vadd.f32 1.0, %v4621_v28  ;;  %vm2009_vm13 = vweird.f32 %v7281_v47  ;;  %v2014_v52 = vand.u32 2147483648, %v7200_v26 }
 0x214   : > { %v3070_v31 = vsub.f32 1.0, %v3069_v2  ;;  %v7407_v19 = vadd.f32 1.0, %v4623_v53  ;;  %v7412_v30 = vmul.f32 %v2826_v59, %v6925_v58  ;;  %v3046_v28 = vsel %vm7380_vm6, %v7230_v60, %v3042_v55  ;;  %vm7433_vm10 = vmor %vm2008_vm8, %vm2009_vm13 }
 0x215   : > { %v4627_v63 = vpop.eup %4626  ;;  %4632 = vpow2.f32 %v4215_v5  ;;  %v7417_v27 = vadd.f32 1.0, %v4625_v12  ;;  %v1986_v2 = vsel %vm7311_vm15, %v7260_v34, %v1981_v36  ;;  %v2851_v53 = vsel %vm7395_vm14, %v7245_v35, %v2847_v10 }
 0x216   : > { %10531 = vst [vmem:[#allocation68_spill] sm:$0xff] %v7412_v30  ;;  %v4629_v9 = vpop.eup %4628  ;;  %v2007_v58 = vadd.f32 %v7281_v47, %v2006_v6  ;;  %4634 = vrcp.f32 %v7386_v48  ;;  %vm7437_vm9 = vcmp.eq.f32.partialorder %v2012_v54, 8.507059e+37  ;;  %v3077_v34 = vand.u32 2147483647, %v7249_v24 }
 0x217   : > { %v3079_v35 = vand.u32 2147483648, %v7249_v24  ;;  %4636 = vrcp.f32 %v7401_v3  ;;  %v3051_v40 = vsel %vm7334_vm4, %v7324_v15, %v3046_v28  ;;  %v3071_v26 = vmul.f32 %v7328_v11, %v3070_v31 }
 0x218   : > { %v7448_v5 = vadd.f32 1.0, %v4627_v63  ;;  %4638 = vrcp.f32 %v7407_v19  ;;  %v2856_v59 = vsel %vm7364_vm7, %v2855_v42, %v2851_v53  ;;  %v2015_v20 = vor.u32 1.1754944e-38, %v2014_v52  ;;  %v7483_v52 = vpop.f32.mrf.mxu0 }
 0x219   : > { %v7451_v12 = vpop.eup %4630  ;;  %4640 = vrcp.f32 %v7417_v27  ;;  %v7456_v10 = vadd.f32 1.0, %v4629_v9  ;;  %v2011_v15 = vsel %vm7433_vm10, %v7281_v47, %v2007_v58  ;;  %vm3073_vm12 = vweird.f32 %v7249_v24 }
 0x21a   : > { %vm3074_vm1 = vweird.f32 %v7328_v11  ;;  %v2884_v41 = vand.u32 2147483648, %v7353_v62  ;;  %v7465_v36 = vmul.f32 %v1986_v2, %v6962_v57  ;;  %v7468_v0 = vmul.f32 %v3051_v40, %v7010_v38  ;;  %v7502_v2 = vpop.f32.mrf.mxu1 }
 0x21b   : > { %v4633_v6 = vpop.eup %4632  ;;  %vm7470_vm15 = vcmp.eq.f32.partialorder %v3077_v34, 8.507059e+37  ;;  %v3080_v42 = vor.u32 1.1754944e-38, %v3079_v35  ;;  %v7477_v47 = vmul.f32 %v2856_v59, %v7015_v17  ;;  %v3072_v54 = vadd.f32 %v7328_v11, %v3071_v26  ;;  %vm7495_vm5 = vmor %vm3073_vm12, %vm3074_vm1  ;;  %v7513_v34 = vpop.f32.mrf.mxu3 }
 0x21c   : > { %10536 = vst [vmem:[#allocation69_spill] sm:$0xff] %v7465_v36  ;;  %v7474_v14 = vpop.eup %4634  ;;  %4642 = vrcp.f32 %v7448_v5  ;;  %v2874_v57 = vmul.f32 %v7451_v12, %v7353_v62  ;;  %v7489_v31 = vsel %vm7437_vm9, %v2015_v20, %v2011_v15  ;;  %v2882_v63 = vand.u32 2147483647, %v7353_v62  ;;  %v7522_v15 = vpop.f32.mrf.mxu2 }
 0x21d   : > { %10537 = vst [vmem:[#allocation70_spill] sm:$0xff] %v7468_v0  ;;  %v7485_v38 = vpop.eup %4636  ;;  %4644 = vrcp.f32 %v7456_v10  ;;  %v4204_v28 = vmul.f32 -1.442695, %v7403_v1  ;;  %vm2878_vm4 = vweird.f32 %v7353_v62  ;;  %v7507_v58 = vor.u32 1.1754944e-38, %v2884_v41 }
 0x21e   : > { %10540 = vst [vmem:[#allocation71_spill] sm:$0xff] %v7477_v47  ;;  %v7504_v53 = vpop.eup %4638  ;;  %v2044_v24 = vand.u32 2147483648, %v7386_v48  ;;  %v7510_v60 = vadd.f32 1.0, %v4633_v6  ;;  %v4260_v55 = vmul.f32 -1.442695, %v7409_v18  ;;  %v2034_v40 = vmul.f32 %v7474_v14, %v7386_v48 }
 0x21f   : > { %10543 = vst [vmem:[#allocation72_spill] sm:$0xff] %v7513_v34  ;;  %v7515_v35 = vpop.eup %4640  ;;  %v2042_v26 = vand.u32 2147483647, %v7386_v48  ;;  %v3109_v59 = vand.u32 2147483648, %v7401_v3  ;;  %v4275_v20 = vmul.f32 -1.442695, %v7419_v39  ;;  %v3076_v41 = vsel %vm7495_vm5, %v7328_v11, %v3072_v54 }
 0x220   : > { %v2875_v6 = vsub.f32 1.0, %v2874_v57  ;;  %v3099_v30 = vmul.f32 %v7485_v38, %v7401_v3  ;;  %v4206_v47 = vmul.f32 -1.442695, %v7502_v2  ;;  %vm2038_vm0 = vweird.f32 %v7386_v48 }
 0x221   : > { %v3107_v18 = vand.u32 2147483647, %v7401_v3  ;;  %v2904_v36 = vmul.f32 %v7504_v53, %v7407_v19  ;;  %4646 = vpow2.f32 %v4204_v28  ;;  %v4262_v0 = vmul.f32 -1.442695, %v7513_v34 }
 0x222   : > { %v7535_v56 = vpop.eup %4642  ;;  %v7537_v17 = vor.u32 1.1754944e-38, %v2044_v24  ;;  %vm3103_vm11 = vweird.f32 %v7401_v3  ;;  %v2064_v11 = vmul.f32 %v7515_v35, %v7417_v27  ;;  %4648 = vpow2.f32 %v4260_v55 }
 0x223   : > { %v4277_v54 = vmul.f32 -1.442695, %v7522_v15  ;;  %v7543_v57 = vpop.eup %4644  ;;  %v7547_v21 = vsel %vm7470_vm15, %v3080_v42, %v3076_v41  ;;  %vm2879_vm2 = vweird.f32 %v7451_v12  ;;  %v2035_v28 = vsub.f32 1.0, %v2034_v40 }
 0x224   : > { %4650 = vpow2.f32 %v4275_v20  ;;  %v2876_v24 = vmul.f32 %v7451_v12, %v2875_v6  ;;  %vm7551_vm3 = vcmp.eq.f32.partialorder %v2882_v63, 8.507059e+37  ;;  %v3100_v32 = vsub.f32 1.0, %v3099_v30  ;;  %v7562_v63 = vpop.f32.mrf.mxu0  ;;  %vm7584_vm9 = vmor %vm2878_vm4, %vm2879_vm2 }
 0x225   : > { %v7555_v55 = vor.u32 1.1754944e-38, %v3109_v59  ;;  %4652 = vpow2.f32 %v4206_v47  ;;  %v2905_v25 = vsub.f32 1.0, %v2904_v36  ;;  %v2912_v49 = vand.u32 2147483647, %v7407_v19 }
 0x226   : > { %v2914_v9 = vand.u32 2147483648, %v7407_v19  ;;  %4654 = vpow2.f32 %v4262_v0  ;;  %v2065_v42 = vsub.f32 1.0, %v2064_v11  ;;  %v3129_v40 = vmul.f32 %v7543_v57, %v7456_v10 }
 0x227   : > { %v4217_v20 = vmul.f32 -1.442695, %v7483_v52  ;;  %4656 = vpow2.f32 %v4277_v54  ;;  %v4647_v41 = vpop.eup %4646  ;;  %v2036_v30 = vmul.f32 %v7474_v14, %v2035_v28  ;;  %vm2039_vm7 = vweird.f32 %v7474_v14 }
 0x228   : > { %vm7566_vm8 = vcmp.eq.f32.partialorder %v2042_v26, 8.507059e+37  ;;  %vm2908_vm6 = vweird.f32 %v7407_v19  ;;  %v2072_v0 = vand.u32 2147483647, %v7417_v27  ;;  %v4649_v47 = vpop.eup %4648  ;;  %v2877_v59 = vadd.f32 %v7451_v12, %v2876_v24  ;;  %vm7613_vm5 = vmor %vm2038_vm0, %vm2039_vm7 }
 0x229   : > { %v3101_v6 = vmul.f32 %v7485_v38, %v3100_v32  ;;  %vm3104_vm14 = vweird.f32 %v7485_v38  ;;  %vm7575_vm13 = vcmp.eq.f32.partialorder %v3107_v18, 8.507059e+37  ;;  %vm2068_vm10 = vweird.f32 %v7417_v27 }
 0x22a   : > { %v4651_v26 = vpop.eup %4650  ;;  %v2906_v28 = vmul.f32 %v7504_v53, %v2905_v25  ;;  %vm7589_vm12 = vcmp.eq.f32.partialorder %v2912_v49, 8.507059e+37  ;;  %v2915_v18 = vor.u32 1.1754944e-38, %v2914_v9  ;;  %v2074_v24 = vand.u32 2147483648, %v7417_v27  ;;  %vm7625_vm2 = vmor %vm3103_vm11, %vm3104_vm14 }
 0x22b   : > { %v4219_v29 = vmul.f32 -1.442695, %v7562_v63  ;;  %v4653_v46 = vpop.eup %4652  ;;  %v2066_v43 = vmul.f32 %v7515_v35, %v2065_v42  ;;  %v3130_v33 = vsub.f32 1.0, %v3129_v40  ;;  %4658 = vpow2.f32 %v4217_v20 }
 0x22c   : > { %v7596_v62 = vadd.f32 1.0, %v4647_v41  ;;  %v4655_v44 = vpop.eup %4654  ;;  %v2037_v13 = vadd.f32 %v7474_v14, %v2036_v30  ;;  %vm2909_vm1 = vweird.f32 %v7504_v53  ;;  %vm7600_vm15 = vcmp.eq.f32.partialorder %v2072_v0, 8.507059e+37  ;;  %v7696_v36 = vpop.f32.mrf.mxu0 }
 0x22d   : > { %v7604_v49 = vadd.f32 1.0, %v4649_v47  ;;  %v4657_v9 = vpop.eup %4656  ;;  %v2881_v42 = vsel %vm7584_vm9, %v7451_v12, %v2877_v59  ;;  %v3102_v20 = vadd.f32 %v7485_v38, %v3101_v6  ;;  %vm2069_vm4 = vweird.f32 %v7515_v35  ;;  %vm7634_vm0 = vmor %vm2908_vm6, %vm2909_vm1 }
 0x22e   : > { %v7619_v41 = vadd.f32 1.0, %v4651_v26  ;;  %v2907_v48 = vadd.f32 %v7504_v53, %v2906_v28  ;;  %v2075_v30 = vor.u32 1.1754944e-38, %v2074_v24  ;;  %4660 = vpow2.f32 %v4219_v29  ;;  %vm7651_vm11 = vmor %vm2068_vm10, %vm2069_vm4 }
 0x22f   : > { %v7630_v0 = vadd.f32 1.0, %v4653_v46  ;;  %v2067_v59 = vadd.f32 %v7515_v35, %v2066_v43  ;;  %v3131_v3 = vmul.f32 %v7543_v57, %v3130_v33  ;;  %4662 = vrcp.f32 %v7596_v62 }
 0x230   : > { %v7641_v6 = vadd.f32 1.0, %v4655_v44  ;;  %v2886_v29 = vsel %vm7551_vm3, %v7507_v58, %v2881_v42  ;;  %v2041_v46 = vsel %vm7613_vm5, %v7474_v14, %v2037_v13  ;;  %4664 = vrcp.f32 %v7604_v49  ;;  %v7670_v58 = vpop.f32.mrf.mxu3 }
 0x231   : > { %v7656_v43 = vadd.f32 1.0, %v4657_v9  ;;  %v4659_v44 = vpop.eup %4658  ;;  %v3106_v33 = vsel %vm7625_vm2, %v7485_v38, %v3102_v20  ;;  %vm3133_vm3 = vweird.f32 %v7456_v10  ;;  %vm3134_vm7 = vweird.f32 %v7543_v57  ;;  %10564 = vst [vmem:[#allocation73_spill] sm:$0xff] %v7670_v58 }
 0x232   : > { %4666 = vrcp.f32 %v7619_v41  ;;  %v2911_v13 = vsel %vm7634_vm0, %v7504_v53, %v2907_v48  ;;  %v3137_v27 = vand.u32 2147483647, %v7456_v10  ;;  %v3139_v14 = vand.u32 2147483648, %v7456_v10 }
 0x233   : > { %4668 = vrcp.f32 %v7630_v0  ;;  %v2046_v38 = vsel %vm7566_vm8, %v7537_v17, %v2041_v46  ;;  %v2071_v34 = vsel %vm7651_vm11, %v7515_v35, %v2067_v59  ;;  %v3132_v26 = vadd.f32 %v7543_v57, %v3131_v3  ;;  %vm7689_vm8 = vmor %vm3133_vm3, %vm3134_vm7 }
 0x234   : > { %4670 = vrcp.f32 %v7641_v6  ;;  %v4661_v53 = vpop.eup %4660  ;;  %v7682_v54 = vmul.f32 %v7489_v31, %v7057_v51  ;;  %v3111_v28 = vsel %vm7575_vm13, %v7555_v55, %v3106_v33  ;;  %v7693_v35 = vadd.f32 1.0, %v4659_v44  ;;  %v7708_v55 = vpop.f32.mrf.mxu1 }
 0x235   : > { %4672 = vrcp.f32 %v7656_v43  ;;  %v7698_v24 = vpop.eup %4662  ;;  %v7702_v51 = vmul.f32 %v7547_v21, %v7116_v61  ;;  %v2916_v10 = vsel %vm7589_vm12, %v2915_v18, %v2911_v13  ;;  %v4264_v31 = vmul.f32 -1.442695, %v7670_v58 }
 0x236   : > { %10565 = vst [vmem:[#allocation74_spill] sm:$0xff] %v7682_v54  ;;  %4674 = vrcp.f32 %v7510_v60  ;;  %v7710_v11 = vpop.eup %4664  ;;  %v7713_v9 = vmul.f32 %v2886_v29, %v7178_v37  ;;  %v7716_v42 = vmul.f32 %v2046_v38, %v7186_v4  ;;  %v2076_v21 = vsel %vm7600_vm15, %v2075_v30, %v2071_v34 }
 0x237   : > { %10568 = vst [vmem:[#allocation75_spill] sm:$0xff] %v7702_v51  ;;  %v3140_v61 = vor.u32 1.1754944e-38, %v3139_v14  ;;  %v7723_v32 = vmul.f32 %v3111_v28, %v7216_v45  ;;  %v3136_v18 = vsel %vm7689_vm8, %v7543_v57, %v3132_v26  ;;  %vm3138_vm6 = vcmp.eq.f32.partialorder %v3137_v27, 8.507059e+37  ;;  %v7766_v14 = vpop.f32.mrf.mxu2 }
 0x238   : > { %10569 = vst [vmem:[#allocation76_spill] sm:$0xff] %v7713_v9  ;;  %v7720_v40 = vpop.eup %4666  ;;  %v2944_v37 = vand.u32 2147483648, %v7604_v49  ;;  %v7732_v4 = vmul.f32 %v2916_v10, %v7266_v16  ;;  %4676 = vrcp.f32 %v7693_v35  ;;  %v2094_v25 = vmul.f32 %v7698_v24, %v7596_v62  ;;  %v7779_v10 = vpop.f32.mrf.mxu0 }
 0x239   : > { %10570 = vst [vmem:[#allocation77_spill] sm:$0xff] %v7716_v42  ;;  %v7729_v20 = vpop.eup %4668  ;;  %v4208_v45 = vmul.f32 -1.442695, %v7708_v55  ;;  %v7741_v48 = vmul.f32 %v2076_v21, %v7276_v23  ;;  %v2942_v57 = vand.u32 2147483647, %v7604_v49  ;;  %4678 = vpow2.f32 %v4264_v31 }
 0x23a   : > { %10571 = vst [vmem:[#allocation78_spill] sm:$0xff] %v7723_v32  ;;  %v7738_v12 = vpop.eup %4670  ;;  %v4221_v30 = vmul.f32 -1.442695, %v7696_v36  ;;  %v7747_v16 = vsel %vm3138_vm6, %v3140_v61, %v3136_v18  ;;  %vm2938_vm14 = vweird.f32 %v7604_v49  ;;  %v2104_v59 = vand.u32 2147483648, %v7596_v62 }
 0x23b   : > { %10572 = vst [vmem:[#allocation79_spill] sm:$0xff] %v7732_v4  ;;  %v7745_v47 = vpop.eup %4672  ;;  %v3159_v3 = vmul.f32 %v7720_v40, %v7619_v41  ;;  %v7753_v29 = vadd.f32 1.0, %v4661_v53  ;;  %v2934_v46 = vmul.f32 %v7710_v11, %v7604_v49  ;;  %v7759_v19 = vor.u32 1.1754944e-38, %v2944_v37 }
 0x23c   : > { %10573 = vst [vmem:[#allocation80_spill] sm:$0xff] %v7741_v48  ;;  %v7755_v23 = vpop.eup %4674  ;;  %vm2098_vm13 = vweird.f32 %v7596_v62  ;;  %v2124_v44 = vmul.f32 %v7729_v20, %v7630_v0  ;;  %v2095_v33 = vsub.f32 1.0, %v2094_v25  ;;  %v2102_v13 = vand.u32 2147483647, %v7596_v62 }
 0x23d   : > { %v3169_v27 = vand.u32 2147483648, %v7619_v41  ;;  %4680 = vpow2.f32 %v4208_v45  ;;  %vm3163_vm10 = vweird.f32 %v7619_v41  ;;  %v2964_v38 = vmul.f32 %v7738_v12, %v7641_v6 }
 0x23e   : > { %v3189_v34 = vmul.f32 %v7745_v47, %v7656_v43  ;;  %4682 = vpow2.f32 %v4221_v30  ;;  %v7773_v26 = vpop.eup %4676  ;;  %v7775_v53 = vor.u32 1.1754944e-38, %v2104_v59  ;;  %v3160_v28 = vsub.f32 1.0, %v3159_v3 }
 0x23f   : > { %v3167_v17 = vand.u32 2147483647, %v7619_v41  ;;  %4684 = vrcp.f32 %v7753_v29  ;;  %v4679_v31 = vpop.eup %4678  ;;  %v2935_v21 = vsub.f32 1.0, %v2934_v46  ;;  %vm2939_vm9 = vweird.f32 %v7710_v11 }
 0x240   : > { %v2125_v61 = vsub.f32 1.0, %v2124_v44  ;;  %v4279_v18 = vmul.f32 -1.442695, %v7766_v14  ;;  %v2096_v37 = vmul.f32 %v7698_v24, %v2095_v33  ;;  %v7784_v25 = vor.u32 1.1754944e-38, %v3169_v27  ;;  %vm7820_vm3 = vmor %vm2938_vm14, %vm2939_vm9 }
 0x241   : > { %vm2968_vm12 = vweird.f32 %v7641_v6  ;;  %v2972_v45 = vand.u32 2147483647, %v7641_v6  ;;  %vm7788_vm1 = vcmp.eq.f32.partialorder %v2102_v13, 8.507059e+37  ;;  %v2965_v59 = vsub.f32 1.0, %v2964_v38 }
 0x242   : > { %v2974_v3 = vand.u32 2147483648, %v7641_v6  ;;  %v3190_v46 = vsub.f32 1.0, %v3189_v34  ;;  %v4223_v44 = vmul.f32 -1.442695, %v7779_v10  ;;  %v3161_v4 = vmul.f32 %v7720_v40, %v3160_v28 }
 0x243   : > { %v4681_v9 = vpop.eup %4680  ;;  %vm7795_vm15 = vcmp.eq.f32.partialorder %v3167_v17, 8.507059e+37  ;;  %vm2128_vm5 = vweird.f32 %v7630_v0  ;;  %v2132_v13 = vand.u32 2147483647, %v7630_v0  ;;  %v7801_v27 = vadd.f32 1.0, %v4679_v31 }
 0x244   : > { %v4683_v58 = vpop.eup %4682  ;;  %v2936_v38 = vmul.f32 %v7710_v11, %v2935_v21  ;;  %vm2099_vm4 = vweird.f32 %v7698_v24  ;;  %v2126_v34 = vmul.f32 %v7729_v20, %v2125_v61  ;;  %4686 = vpow2.f32 %v4279_v18 }
 0x245   : > { %v7806_v54 = vpop.eup %4684  ;;  %vm7808_vm2 = vcmp.eq.f32.partialorder %v2942_v57, 8.507059e+37  ;;  %v2097_v17 = vadd.f32 %v7698_v24, %v2096_v37  ;;  %vm3164_vm0 = vweird.f32 %v7720_v40  ;;  %vm2129_vm11 = vweird.f32 %v7729_v20  ;;  %v7828_v37 = vpop.f32.mrf.mxu3  ;;  %vm7834_vm7 = vmor %vm2098_vm13, %vm2099_vm4 }
 0x246   : > { %v2134_v31 = vand.u32 2147483648, %v7630_v0  ;;  %v2966_v57 = vmul.f32 %v7738_v12, %v2965_v59  ;;  %v3191_v61 = vmul.f32 %v7745_v47, %v3190_v46  ;;  %v7826_v18 = vadd.f32 1.0, %v4681_v9  ;;  %10582 = vst [vmem:[#allocation81_spill] sm:$0xff] %v7828_v37  ;;  %vm7848_vm6 = vmor %vm3163_vm10, %vm3164_vm0 }
 0x247   : > { %4688 = vpow2.f32 %v4223_v44  ;;  %v3162_v49 = vadd.f32 %v7720_v40, %v3161_v4  ;;  %vm2969_vm8 = vweird.f32 %v7738_v12  ;;  %v7840_v59 = vadd.f32 1.0, %v4683_v58  ;;  %v7855_v58 = vpop.f32.mrf.mxu1  ;;  %vm7865_vm10 = vmor %vm2128_vm5, %vm2129_vm11 }
 0x248   : > { %4690 = vrcp.f32 %v7801_v27  ;;  %v2937_v9 = vadd.f32 %v7710_v11, %v2936_v38  ;;  %v2127_v46 = vadd.f32 %v7729_v20, %v2126_v34  ;;  %vm3193_vm14 = vweird.f32 %v7656_v43  ;;  %10587 = vst [vmem:[#allocation82_spill] sm:$0xff] %v7855_v58  ;;  %vm7880_vm5 = vmor %vm2968_vm12, %vm2969_vm8 }
 0x249   : > { %vm3194_vm13 = vweird.f32 %v7745_v47  ;;  %vm7857_vm9 = vcmp.eq.f32.partialorder %v2972_v45, 8.507059e+37  ;;  %v3197_v44 = vand.u32 2147483647, %v7656_v43  ;;  %v3199_v38 = vand.u32 2147483648, %v7656_v43  ;;  %v7905_v43 = vpop.f32.mrf.mxu2 }
 0x24a   : > { %v4266_v34 = vmul.f32 -1.442695, %v7828_v37  ;;  %v4687_v48 = vpop.eup %4686  ;;  %v2101_v45 = vsel %vm7834_vm7, %v7698_v24, %v2097_v17  ;;  %v2967_v51 = vadd.f32 %v7738_v12, %v2966_v57  ;;  %v3192_v32 = vadd.f32 %v7745_v47, %v3191_v61  ;;  %vm7893_vm4 = vmor %vm3193_vm14, %vm3194_vm13 }
 0x24b   : > { %4692 = vrcp.f32 %v7826_v18  ;;  %v3166_v37 = vsel %vm7848_vm6, %v7720_v40, %v3162_v49  ;;  %v2135_v42 = vor.u32 1.1754944e-38, %v2134_v31  ;;  %v4210_v6 = vmul.f32 -1.442695, %v7855_v58 }
 0x24c   : > { %4694 = vrcp.f32 %v7840_v59  ;;  %v2941_v57 = vsel %vm7820_vm3, %v7710_v11, %v2937_v9  ;;  %v2975_v61 = vor.u32 1.1754944e-38, %v2974_v3  ;;  %v2131_v40 = vsel %vm7865_vm10, %v7729_v20, %v2127_v46 }
 0x24d   : > { %v4689_v17 = vpop.eup %4688  ;;  %vm2133_vm12 = vcmp.eq.f32.partialorder %v2132_v13, 8.507059e+37  ;;  %v2106_v49 = vsel %vm7788_vm1, %v7775_v53, %v2101_v45  ;;  %v3200_v62 = vor.u32 1.1754944e-38, %v3199_v38  ;;  %v7912_v58 = vadd.f32 1.0, %v4687_v48 }
 0x24e   : > { %v7907_v31 = vpop.eup %4690  ;;  %4696 = vpow2.f32 %v4266_v34  ;;  %v3171_v11 = vsel %vm7795_vm15, %v7784_v25, %v3166_v37  ;;  %v2971_v20 = vsel %vm7880_vm5, %v7738_v12, %v2967_v51  ;;  %v3196_v3 = vsel %vm7893_vm4, %v7745_v47, %v3192_v32 }
 0x24f   : > { %vm3198_vm0 = vcmp.eq.f32.partialorder %v3197_v44, 8.507059e+37  ;;  %v2136_v13 = vsel %vm2133_vm12, %v2135_v42, %v2131_v40  ;;  %v3004_v53 = vand.u32 2147483648, %v7801_v27  ;;  %4698 = vpow2.f32 %v4210_v6 }
 0x250   : > { %v4281_v48 = vmul.f32 -1.442695, %v7905_v43  ;;  %v7929_v25 = vmul.f32 %v7747_v16, %v7303_v8  ;;  %v7934_v51 = vsel %vm7808_vm2, %v7759_v19, %v2941_v57  ;;  %v2994_v32 = vmul.f32 %v7907_v31, %v7801_v27 }
 0x251   : > { %v7925_v30 = vpop.eup %4692  ;;  %10596 = vst [vmem:[#allocation83_spill] sm:$0xff] %v7934_v51  ;;  %v7938_v12 = vadd.f32 1.0, %v4689_v17  ;;  %v7943_v33 = vmul.f32 %v2106_v49, %v7403_v1  ;;  %v3201_v21 = vsel %vm3198_vm0, %v3200_v62, %v3196_v3  ;;  %v2164_v37 = vand.u32 2147483648, %v7826_v18 }
 0x252   : > { %v7940_v47 = vpop.eup %4694  ;;  %4700 = vrcp.f32 %v7912_v58  ;;  %v7948_v8 = vmul.f32 %v3171_v11, %v7419_v39  ;;  %v7952_v16 = vsel %vm7857_vm9, %v2975_v61, %v2971_v20  ;;  %v7955_v19 = vmul.f32 %v2136_v13, %v7502_v2 }
 0x253   : > { %10597 = vst [vmem:[#allocation84_spill] sm:$0xff] %v7943_v33  ;;  %v3002_v28 = vand.u32 2147483647, %v7801_v27  ;;  %vm2998_vm1 = vweird.f32 %v7801_v27  ;;  %v7959_v1 = vor.u32 1.1754944e-38, %v3004_v53  ;;  %v2154_v46 = vmul.f32 %v7925_v30, %v7826_v18 }
 0x254   : > { %10598 = vst [vmem:[#allocation85_spill] sm:$0xff] %v7952_v16  ;;  %v4697_v9 = vpop.eup %4696  ;;  %v3229_v39 = vand.u32 2147483648, %v7912_v58  ;;  %4702 = vpow2.f32 %v4281_v48  ;;  %v7965_v4 = vmul.f32 %v3201_v21, %v7522_v15  ;;  %v2995_v41 = vsub.f32 1.0, %v2994_v32 }
 0x255   : > { %10599 = vst [vmem:[#allocation86_spill] sm:$0xff] %v7955_v19  ;;  %4704 = vrcp.f32 %v7938_v12  ;;  %v2349_v2 = vmul.f32 %v7940_v47, %v7840_v59  ;;  %v4699_v44 = vpop.eup %4698  ;;  %vm2999_vm15 = vweird.f32 %v7907_v31  ;;  %v2162_v38 = vand.u32 2147483647, %v7826_v18 }
 0x256   : > { %v7972_v34 = vor.u32 1.1754944e-38, %v2164_v37  ;;  %v2389_v45 = vand.u32 2147483648, %v7938_v12  ;;  %vm2158_vm2 = vweird.f32 %v7826_v18  ;;  %v3227_v15 = vand.u32 2147483647, %v7912_v58  ;;  %vm8034_vm5 = vmor %vm2998_vm1, %vm2999_vm15 }
 0x257   : > { %v2387_v0 = vand.u32 2147483647, %v7938_v12  ;;  %v7978_v42 = vadd.f32 1.0, %v4697_v9  ;;  %v2350_v24 = vsub.f32 1.0, %v2349_v2  ;;  %v2155_v17 = vsub.f32 1.0, %v2154_v46 }
 0x258   : > { %v7980_v6 = vpop.eup %4700  ;;  %v7982_v57 = vor.u32 1.1754944e-38, %v3229_v39  ;;  %v2359_v61 = vand.u32 2147483648, %v7840_v59  ;;  %v2319_v40 = vmul.f32 %v7806_v54, %v7753_v29  ;;  %v2996_v49 = vmul.f32 %v7907_v31, %v2995_v41 }
 0x259   : > { %v7988_v62 = vadd.f32 1.0, %v4699_v44  ;;  %v2351_v11 = vmul.f32 %v7940_v47, %v2350_v24  ;;  %vm2354_vm11 = vweird.f32 %v7940_v47  ;;  %vm7992_vm3 = vcmp.eq.f32.partialorder %v3002_v28, 8.507059e+37 }
 0x25a   : > { %v4703_v20 = vpop.eup %4702  ;;  %vm2159_vm7 = vweird.f32 %v7925_v30  ;;  %v7997_v13 = vor.u32 1.1754944e-38, %v2389_v45  ;;  %v2357_v53 = vand.u32 2147483647, %v7840_v59  ;;  %v2320_v48 = vsub.f32 1.0, %v2319_v40 }
 0x25b   : > { %v8000_v32 = vpop.eup %4704  ;;  %v3219_v21 = vmul.f32 %v7980_v6, %v7912_v58  ;;  %4706 = vrcp.f32 %v7978_v42  ;;  %v2352_v37 = vadd.f32 %v7940_v47, %v2351_v11  ;;  %vm2353_vm8 = vweird.f32 %v7840_v59  ;;  %vm8056_vm1 = vmor %vm2158_vm2, %vm2159_vm7 }
 0x25c   : > { %v2156_v28 = vmul.f32 %v7925_v30, %v2155_v17  ;;  %vm8008_vm6 = vmor %vm2353_vm8, %vm2354_vm11  ;;  %v2360_v46 = vor.u32 1.1754944e-38, %v2359_v61  ;;  %v2321_v39 = vmul.f32 %v7806_v54, %v2320_v48  ;;  %vm2324_vm14 = vweird.f32 %v7806_v54 }
 0x25d   : > { %vm3223_vm13 = vweird.f32 %v7912_v58  ;;  %v2356_v41 = vsel %vm8008_vm6, %v7940_v47, %v2352_v37  ;;  %v2327_v2 = vand.u32 2147483647, %v7753_v29  ;;  %v2329_v59 = vand.u32 2147483648, %v7753_v29 }
 0x25e   : > { %v2289_v44 = vmul.f32 %v7773_v26, %v7693_v35  ;;  %v2997_v45 = vadd.f32 %v7907_v31, %v2996_v49  ;;  %vm8023_vm9 = vcmp.eq.f32.partialorder %v2162_v38, 8.507059e+37  ;;  %v2379_v17 = vmul.f32 %v8000_v32, %v7938_v12 }
 0x25f   : > { %4708 = vrcp.f32 %v7988_v62  ;;  %vm2358_vm10 = vcmp.eq.f32.partialorder %v2357_v53, 8.507059e+37  ;;  %v3220_v61 = vsub.f32 1.0, %v3219_v21  ;;  %v2322_v38 = vadd.f32 %v7806_v54, %v2321_v39 }
 0x260   : > { %v2361_v40 = vsel %vm2358_vm10, %v2360_v46, %v2356_v41  ;;  %vm2323_vm4 = vweird.f32 %v7753_v29  ;;  %v3032_v49 = vand.u32 2147483647, %v7978_v42  ;;  %v3034_v11 = vand.u32 2147483648, %v7978_v42 }
 0x261   : > { %v3400_v53 = vmul.f32 %v2361_v40, %v7696_v36  ;;  %vm2325_vm12 = vmor %vm2323_vm4, %vm2324_vm14  ;;  %v2330_v27 = vor.u32 1.1754944e-38, %v2329_v59  ;;  %v8045_v48 = vpop.eup %4706  ;;  %v2157_v37 = vadd.f32 %v7925_v30, %v2156_v28  ;;  %vm2328_vm0 = vcmp.eq.f32.partialorder %v2327_v2, 8.507059e+37 }
 0x262   : > { %v2326_v21 = vsel %vm2325_vm12, %v7806_v54, %v2322_v38  ;;  %v2290_v9 = vsub.f32 1.0, %v2289_v44  ;;  %v3001_v29 = vsel %vm8034_vm5, %v7907_v31, %v2997_v45  ;;  %vm3224_vm15 = vweird.f32 %v7980_v6 }
 0x263   : > { %v2380_v46 = vsub.f32 1.0, %v2379_v17  ;;  %3492 = vmatpush.msrb.mxu3 %v3400_v53  ;;  %v2331_v28 = vsel %vm2328_vm0, %v2330_v27, %v2326_v21  ;;  %v3221_v54 = vmul.f32 %v7980_v6, %v3220_v61  ;;  %vm8062_vm11 = vcmp.eq.f32.partialorder %v3227_v15, 8.507059e+37  ;;  %vm8103_vm14 = vmor %vm3223_vm13, %vm3224_vm15 }
 0x264   : > { %vm2384_vm8 = vweird.f32 %v8000_v32  ;;  %v8067_v31 = vadd.f32 1.0, %v4703_v20  ;;  %vm2294_vm2 = vweird.f32 %v7773_v26  ;;  %v3398_v41 = vmul.f32 %v2331_v28, %v7562_v63 }
 0x265   : > { %v8070_v18 = vpop.eup %4708  ;;  %v2291_v2 = vmul.f32 %v7773_v26, %v2290_v9  ;;  %v2297_v59 = vand.u32 2147483647, %v7693_v35  ;;  %v2299_v44 = vand.u32 2147483648, %v7693_v35  ;;  %v8079_v15 = vsel %vm7992_vm3, %v7959_v1, %v3001_v29 }
 0x266   : > { %10612 = vst [vmem:[#allocation87_spill] sm:$0xff] %v8079_v15  ;;  %v2161_v20 = vsel %vm8056_vm1, %v7925_v30, %v2157_v37  ;;  %vm2383_vm7 = vweird.f32 %v7938_v12  ;;  %v8085_v45 = vor.u32 1.1754944e-38, %v3034_v11  ;;  %v2192_v63 = vand.u32 2147483647, %v7988_v62  ;;  %3493 = vmatpush.msrb.mxu3 %v3398_v41  ;;  %v8114_v37 = vpop.f32.mrf.mxu0 }
 0x267   : > { %v2381_v17 = vmul.f32 %v8000_v32, %v2380_v46  ;;  %v2292_v47 = vadd.f32 %v7773_v26, %v2291_v2  ;;  %vm2293_vm6 = vweird.f32 %v7693_v35  ;;  %v2259_v1 = vmul.f32 %v7755_v23, %v7510_v60  ;;  %10615 = vst [vmem:[#allocation88_spill] sm:$0xff] %v8114_v37 }
 0x268   : > { %v3222_v3 = vadd.f32 %v7980_v6, %v3221_v54  ;;  %v3024_v30 = vmul.f32 %v8045_v48, %v7978_v42  ;;  %4710 = vrcp.f32 %v8067_v31  ;;  %vm2295_vm3 = vmor %vm2293_vm6, %vm2294_vm2  ;;  %v2300_v61 = vor.u32 1.1754944e-38, %v2299_v44 }
 0x269   : > { %v2184_v40 = vmul.f32 %v8070_v18, %v7988_v62  ;;  %v2296_v38 = vsel %vm2295_vm3, %v7773_v26, %v2292_v47  ;;  %vm2298_vm10 = vcmp.eq.f32.partialorder %v2297_v59, 8.507059e+37  ;;  %v2260_v11 = vsub.f32 1.0, %v2259_v1  ;;  %vm8154_vm2 = vmor %vm2383_vm7, %vm2384_vm8  ;;  %v8167_v47 = vpop.f32.mrf.mxu1 }
 0x26a   : > { %v2166_v53 = vsel %vm8023_vm9, %v7972_v34, %v2161_v20  ;;  %v2194_v27 = vand.u32 2147483648, %v7988_v62  ;;  %v2301_v58 = vsel %vm2298_vm10, %v2300_v61, %v2296_v38  ;;  %v2269_v21 = vand.u32 2147483648, %v7510_v60  ;;  %v8160_v20 = vpop.f32.mrf.mxu3  ;;  %10622 = vst [vmem:[#allocation91_spill] sm:$0xff] %v8167_v47  ;;  %v8173_v61 = vpop.f32.mrf.mxu2 }
 0x26b   : > { %vm8119_vm13 = vcmp.eq.f32.partialorder %v2387_v0, 8.507059e+37  ;;  %v3396_v26 = vmul.f32 %v2301_v58, %v7483_v52  ;;  %v2261_v29 = vmul.f32 %v7755_v23, %v2260_v11  ;;  %vm2264_vm5 = vweird.f32 %v7755_v23  ;;  %10621 = vst [vmem:[#allocation90_spill] sm:$0xff] %v8160_v20 }
 0x26c   : > { %v2267_v34 = vand.u32 2147483647, %v7510_v60  ;;  %v3226_v24 = vsel %vm8103_vm14, %v7980_v6, %v3222_v3  ;;  %v2382_v36 = vadd.f32 %v8000_v32, %v2381_v17  ;;  %v3025_v46 = vsub.f32 1.0, %v3024_v30 }
 0x26d   : > { %vm2188_vm9 = vweird.f32 %v7988_v62  ;;  %v2229_v0 = vmul.f32 %v7535_v56, %v7448_v5  ;;  %v2185_v28 = vsub.f32 1.0, %v2184_v40  ;;  %v4225_v52 = vmul.f32 -1.442695, %v8114_v37  ;;  %3494 = vmatpush.msrb.mxu3 %v3396_v26 }
 0x26e   : > { %v2262_v54 = vadd.f32 %v7755_v23, %v2261_v29  ;;  %vm2263_vm4 = vweird.f32 %v7510_v60  ;;  %v8137_v41 = vpop.eup %4710  ;;  %v8140_v6 = vmul.f32 %v2166_v53, %v7708_v55  ;;  %vm3028_vm12 = vweird.f32 %v7978_v42  ;;  %v10633_v55 = vld [vmem:[#allocation61_spill] sm:$0xff] }
 0x26f   : > { %vm3029_vm0 = vweird.f32 %v8045_v48  ;;  %vm2189_vm1 = vweird.f32 %v8070_v18  ;;  %vm2265_vm15 = vmor %vm2263_vm4, %vm2264_vm5  ;;  %v2270_v2 = vor.u32 1.1754944e-38, %v2269_v21  ;;  %v2230_v59 = vsub.f32 1.0, %v2229_v0  ;;  %v8195_v21 = vpop.f32.mrf.mxu0 }
 0x270   : > { %10618 = vst [vmem:[#allocation89_spill] sm:$0xff] %v8140_v6  ;;  %v3231_v60 = vsel %vm8062_vm11, %v7982_v57, %v3226_v24  ;;  %v8158_v44 = vor.u32 1.1754944e-38, %v2194_v27  ;;  %v2266_v17 = vsel %vm2265_vm15, %v7755_v23, %v2262_v54  ;;  %vm2268_vm6 = vcmp.eq.f32.partialorder %v2267_v34, 8.507059e+37  ;;  %vm8216_vm5 = vmor %vm2188_vm9, %vm2189_vm1 }
 0x271   : > { %v2386_v39 = vsel %vm8154_vm2, %v8000_v32, %v2382_v36  ;;  %v3026_v57 = vmul.f32 %v8045_v48, %v3025_v46  ;;  %v2271_v12 = vsel %vm2268_vm6, %v2270_v2, %v2266_v17  ;;  %v2231_v1 = vmul.f32 %v7535_v56, %v2230_v59  ;;  %10625 = vst [vmem:[#allocation92_spill] sm:$0xff] %v8195_v21  ;;  %vm8228_vm9 = vmor %vm3028_vm12, %vm3029_vm0  ;;  %v10634_v17 = vld [vmem:[#allocation64_spill] sm:$0xff]  ;;  %v10645_v46 = vld [vmem:[#allocation53_spill] sm:$0xff] }
 0x272   : > { %v2186_v3 = vmul.f32 %v8070_v18, %v2185_v28  ;;  %v3249_v30 = vmul.f32 %v8137_v41, %v8067_v31  ;;  %v3394_v23 = vmul.f32 %v2271_v12, %v7347_v50  ;;  %v2239_v35 = vand.u32 2147483648, %v7448_v5 }
 0x273   : > { %vm8177_vm11 = vcmp.eq.f32.partialorder %v2192_v63, 8.507059e+37  ;;  %4712 = vpow2.f32 %v4225_v52  ;;  %v4268_v40 = vmul.f32 -1.442695, %v8160_v20  ;;  %vm2234_vm8 = vweird.f32 %v7535_v56  ;;  %v10630_v52 = vld [vmem:[#allocation63_spill] sm:$0xff] }
 0x274   : > { %v2237_v38 = vand.u32 2147483647, %v7448_v5  ;;  %v8185_v11 = vmul.f32 %v3231_v60, %v7766_v14  ;;  %vm3253_vm7 = vweird.f32 %v8067_v31  ;;  %v3257_v50 = vand.u32 2147483647, %v8067_v31  ;;  %3495 = vmatpush.msrb.mxu3 %v3394_v23 }
 0x275   : > { %v4212_v53 = vmul.f32 -1.442695, %v8167_v47  ;;  %v2232_v63 = vadd.f32 %v7535_v56, %v2231_v1  ;;  %v2391_v27 = vsel %vm8119_vm13, %v7997_v13, %v2386_v39  ;;  %v4283_v58 = vmul.f32 -1.442695, %v8173_v61 }
 0x276   : > { %vm2233_vm3 = vweird.f32 %v7448_v5  ;;  %v2199_v14 = vmul.f32 %v7340_v22, %v7262_v7  ;;  %v2187_v26 = vadd.f32 %v8070_v18, %v2186_v3  ;;  %v3250_v29 = vsub.f32 1.0, %v3249_v30  ;;  %v8251_v30 = vpop.f32.mrf.mxu3 }
 0x277   : > { %v3259_v34 = vand.u32 2147483648, %v8067_v31  ;;  %vm2235_vm14 = vmor %vm2233_vm3, %vm2234_vm8  ;;  %v2240_v24 = vor.u32 1.1754944e-38, %v2239_v35  ;;  %vm8206_vm10 = vcmp.eq.f32.partialorder %v3032_v49, 8.507059e+37  ;;  %4714 = vpow2.f32 %v4268_v40  ;;  %10638 = vst [vmem:[#allocation61_spill] sm:$0xff] %v8251_v30 }
 0x278   : > { %v2236_v5 = vsel %vm2235_vm14, %v7535_v56, %v2232_v63  ;;  %vm2238_vm13 = vcmp.eq.f32.partialorder %v2237_v38, 8.507059e+37  ;;  %v2200_v9 = vsub.f32 1.0, %v2199_v14  ;;  %v3027_v36 = vadd.f32 %v8045_v48, %v3026_v57 }
 0x279   : > { %4716 = vpow2.f32 %v4212_v53  ;;  %v4227_v49 = vmul.f32 -1.442695, %v8195_v21  ;;  %v2241_v0 = vsel %vm2238_vm13, %v2240_v24, %v2236_v5  ;;  %v4713_v28 = vpop.eup %4712  ;;  %v2209_v2 = vand.u32 2147483648, %v7262_v7 }
 0x27a   : > { %4718 = vpow2.f32 %v4283_v58  ;;  %v3392_v56 = vmul.f32 %v2241_v0, %v10630_v52  ;;  %v2201_v54 = vmul.f32 %v7340_v22, %v2200_v9  ;;  %v3251_v59 = vmul.f32 %v8137_v41, %v3250_v29  ;;  %v8282_v29 = vpop.f32.mrf.mxu1  ;;  %v10647_v52 = vld [vmem:[#allocation82_spill] sm:$0xff] }
 0x27b   : > { %vm2204_vm4 = vweird.f32 %v7340_v22  ;;  %v2207_v60 = vand.u32 2147483647, %v7262_v7  ;;  %v2169_v39 = vmul.f32 %v10634_v17, %v10633_v55  ;;  %v8238_v57 = vmul.f32 %v2391_v27, %v7779_v10 }
 0x27c   : > { %v2191_v42 = vsel %vm8216_vm5, %v8070_v18, %v2187_v26  ;;  %vm8243_vm12 = vcmp.eq.f32.partialorder %v3257_v50, 8.507059e+37  ;;  %3496 = vmatpush.msrb.mxu3 %v3392_v56  ;;  %v2202_v1 = vadd.f32 %v7340_v22, %v2201_v54  ;;  %vm3254_vm0 = vweird.f32 %v8137_v41 }
 0x27d   : > { %10635 = vst [vmem:[#allocation63_spill] sm:$0xff] %v8238_v57  ;;  %v8249_v3 = vadd.f32 1.0, %v4713_v28  ;;  %vm2203_vm1 = vweird.f32 %v7262_v7  ;;  %v2170_v10 = vsub.f32 1.0, %v2169_v39  ;;  %v4715_v23 = vpop.eup %4714  ;;  %v3031_v18 = vsel %vm8228_vm9, %v8045_v48, %v3027_v36  ;;  %vm8268_vm6 = vmor %vm3253_vm7, %vm3254_vm0 }
 0x27e   : > { %v3260_v35 = vor.u32 1.1754944e-38, %v3259_v34  ;;  %4720 = vpow2.f32 %v4227_v49  ;;  %vm2205_vm15 = vmor %vm2203_vm1, %vm2204_vm4  ;;  %v2210_v40 = vor.u32 1.1754944e-38, %v2209_v2  ;;  %v2196_v50 = vsel %vm8177_vm11, %v8158_v44, %v2191_v42  ;;  %v10642_v44 = vld [vmem:[#allocation55_spill] sm:$0xff]  ;;  %v10646_v49 = vld [vmem:[#allocation57_spill] sm:$0xff] }
 0x27f   : > { %v4717_v38 = vpop.eup %4716  ;;  %v3252_v53 = vadd.f32 %v8137_v41, %v3251_v59  ;;  %v2206_v7 = vsel %vm2205_vm15, %v7340_v22, %v2202_v1  ;;  %vm2208_vm2 = vcmp.eq.f32.partialorder %v2207_v60, 8.507059e+37  ;;  %v4270_v27 = vmul.f32 -1.442695, %v8251_v30  ;;  %10643 = vst [vmem:[#allocation55_spill] sm:$0xff] %v8282_v29 }
 0x280   : > { %v4719_v63 = vpop.eup %4718  ;;  %v2211_v58 = vsel %vm2208_vm2, %v2210_v40, %v2206_v7  ;;  %v2171_v32 = vmul.f32 %v10634_v17, %v2170_v10  ;;  %vm2174_vm11 = vweird.f32 %v10634_v17  ;;  %4722 = vrcp.f32 %v8249_v3  ;;  %v8317_v10 = vpop.f32.mrf.mxu2  ;;  %v10652_v40 = vld [vmem:[#allocation49_spill] sm:$0xff] }
 0x281   : > { %v8276_v22 = vadd.f32 1.0, %v4715_v23  ;;  %v3390_v14 = vmul.f32 %v2211_v58, %v10642_v44  ;;  %v2177_v26 = vand.u32 2147483647, %v10633_v55  ;;  %v8280_v31 = vadd.f32 1.0, %v4717_v38  ;;  %v10653_v38 = vld [vmem:[#allocation50_spill] sm:$0xff] }
 0x282   : > { %v2172_v34 = vadd.f32 %v10634_v17, %v2171_v32  ;;  %vm2173_vm8 = vweird.f32 %v10633_v55  ;;  %v2179_v24 = vand.u32 2147483648, %v10633_v55  ;;  %v8290_v5 = vsel %vm8206_vm10, %v8085_v45, %v3031_v18 }
 0x283   : > { %10641 = vst [vmem:[#allocation64_spill] sm:$0xff] %v8276_v22  ;;  %v3256_v9 = vsel %vm8268_vm6, %v8137_v41, %v3252_v53  ;;  %v8295_v36 = vadd.f32 1.0, %v4719_v63  ;;  %3497 = vmatpush.msrb.mxu3 %v3390_v14  ;;  %vm2175_vm7 = vmor %vm2173_vm8, %vm2174_vm11  ;;  %v2139_v0 = vmul.f32 %v10646_v49, %v10645_v46  ;;  %v8300_v56 = vmul.f32 %v2196_v50, %v10647_v52  ;;  %v10683_v63 = vld [vmem:[#allocation30_spill] sm:$0xff] }
 0x284   : > { %10644 = vst [vmem:[#allocation93_spill] sm:$0xff] %v8290_v5  ;;  %v4721_v28 = vpop.eup %4720  ;;  %4724 = vpow2.f32 %v4270_v27  ;;  %v2176_v13 = vsel %vm2175_vm7, %v10634_v17, %v2172_v34  ;;  %v2180_v45 = vor.u32 1.1754944e-38, %v2179_v24  ;;  %v2419_v54 = vand.u32 2147483648, %v8249_v3  ;;  %v10650_v17 = vld [vmem:[#allocation51_spill] sm:$0xff]  ;;  %v10657_v24 = vld [vmem:[#allocation48_spill] sm:$0xff] }
 0x285   : > { %10648 = vst [vmem:[#allocation53_spill] sm:$0xff] %v8300_v56  ;;  %4726 = vrcp.f32 %v8276_v22  ;;  %v4214_v41 = vmul.f32 -1.442695, %v8282_v29  ;;  %vm2178_vm3 = vcmp.eq.f32.partialorder %v2177_v26, 8.507059e+37  ;;  %v3261_v2 = vsel %vm8243_vm12, %v3260_v35, %v3256_v9  ;;  %v10656_v34 = vld [vmem:[#allocation39_spill] sm:$0xff] }
 0x286   : > { %4728 = vrcp.f32 %v8280_v31  ;;  %v2181_v62 = vsel %vm2178_vm3, %v2180_v45, %v2176_v13  ;;  %v2140_v59 = vsub.f32 1.0, %v2139_v0  ;;  %v8309_v60 = vpop.eup %4722  ;;  %v8312_v55 = vadd.f32 1.0, %v4721_v28  ;;  %v8348_v0 = vpop.f32.mrf.mxu0 }
 0x287   : > { %10649 = vst [vmem:[#allocation57_spill] sm:$0xff] %v8309_v60  ;;  %4730 = vrcp.f32 %v8295_v36  ;;  %v3388_v39 = vmul.f32 %v2181_v62, %v10650_v17  ;;  %v2149_v42 = vand.u32 2147483648, %v10645_v46  ;;  %vm2144_vm14 = vweird.f32 %v10646_v49 }
 0x288   : > { %v2141_v12 = vmul.f32 %v10646_v49, %v2140_v59  ;;  %v2147_v23 = vand.u32 2147483647, %v10645_v46  ;;  %v8323_v18 = vmul.f32 %v3261_v2, %v7905_v43  ;;  %v8325_v35 = vor.u32 1.1754944e-38, %v2419_v54  ;;  %10658 = vst [vmem:[#allocation50_spill] sm:$0xff] %v8348_v0  ;;  %v10659_v59 = vld [vmem:[#allocation43_spill] sm:$0xff] }
 0x289   : > { %4732 = vpow2.f32 %v4214_v41  ;;  %3498 = vmatpush.msrb.mxu3 %v3388_v39  ;;  %v2109_v50 = vmul.f32 %v10653_v38, %v10652_v40  ;;  %v2409_v7 = vmul.f32 %v8309_v60, %v8249_v3  ;;  %vm2143_vm10 = vweird.f32 %v10645_v46 }
 0x28a   : > { %10651 = vst [vmem:[#allocation82_spill] sm:$0xff] %v8325_v35  ;;  %v4725_v53 = vpop.eup %4724  ;;  %v2142_v48 = vadd.f32 %v10646_v49, %v2141_v12  ;;  %4734 = vrcp.f32 %v8312_v55  ;;  %v4285_v43 = vmul.f32 -1.442695, %v8317_v10  ;;  %vm2145_vm13 = vmor %vm2143_vm10, %vm2144_vm14  ;;  %v2150_v58 = vor.u32 1.1754944e-38, %v2149_v42 }
 0x28b   : > { %v8334_v27 = vpop.eup %4726  ;;  %v2110_v32 = vsub.f32 1.0, %v2109_v50  ;;  %vm2148_vm5 = vcmp.eq.f32.partialorder %v2147_v23, 8.507059e+37  ;;  %v2119_v26 = vand.u32 2147483648, %v10652_v40  ;;  %v2079_v9 = vmul.f32 %v10657_v24, %v10656_v34  ;;  %v8368_v23 = vpop.f32.mrf.mxu3 }
 0x28c   : > { %10654 = vst [vmem:[#allocation51_spill] sm:$0xff] %v8334_v27  ;;  %v8340_v44 = vpop.eup %4728  ;;  %v2146_v14 = vsel %vm2145_vm13, %v10646_v49, %v2142_v48  ;;  %vm2114_vm9 = vweird.f32 %v10653_v38  ;;  %v2117_v13 = vand.u32 2147483647, %v10652_v40  ;;  %v2410_v45 = vsub.f32 1.0, %v2409_v7 }
 0x28d   : > { %10655 = vst [vmem:[#allocation49_spill] sm:$0xff] %v8340_v44  ;;  %v8346_v46 = vpop.eup %4730  ;;  %v2151_v28 = vsel %vm2148_vm5, %v2150_v58, %v2146_v14  ;;  %v2111_v52 = vmul.f32 %v10653_v38, %v2110_v32  ;;  %v2224_v49 = vand.u32 2147483648, %v8280_v31  ;;  %v3287_v54 = vand.u32 2147483647, %v8295_v36 }
 0x28e   : > { %v3289_v41 = vand.u32 2147483648, %v8295_v36  ;;  %v2214_v62 = vmul.f32 %v8340_v44, %v8280_v31  ;;  %v3386_v17 = vmul.f32 %v2151_v28, %v10659_v59  ;;  %vm2113_vm4 = vweird.f32 %v10652_v40  ;;  %10660 = vst [vmem:[#allocation39_spill] sm:$0xff] %v8368_v23 }
 0x28f   : > { %v4733_v2 = vpop.eup %4732  ;;  %v2112_v39 = vadd.f32 %v10653_v38, %v2111_v52  ;;  %v8363_v42 = vmul.f32 %v8334_v27, %v8276_v22  ;;  %vm2218_vm12 = vweird.f32 %v8280_v31  ;;  %v3279_v12 = vmul.f32 %v8346_v46, %v8295_v36  ;;  %vm2115_vm0 = vmor %vm2113_vm4, %vm2114_vm9  ;;  %v10703_v22 = vld [vmem:[#allocation13_spill] sm:$0xff] }
 0x290   : > { %v2120_v50 = vor.u32 1.1754944e-38, %v2119_v26  ;;  %v2080_v7 = vsub.f32 1.0, %v2079_v9  ;;  %v8372_v48 = vpop.eup %4734  ;;  %vm3283_vm1 = vweird.f32 %v8295_v36  ;;  %4736 = vpow2.f32 %v4285_v43  ;;  %3499 = vmatpush.msrb.mxu3 %v3386_v17 }
 0x291   : > { %10661 = vst [vmem:[#allocation48_spill] sm:$0xff] %v8372_v48  ;;  %v2116_v40 = vsel %vm2115_vm0, %v10653_v38, %v2112_v39  ;;  %vm2118_vm15 = vcmp.eq.f32.partialorder %v2117_v13, 8.507059e+37  ;;  %vm2084_vm2 = vweird.f32 %v10657_v24  ;;  %v2087_v14 = vand.u32 2147483647, %v10656_v34  ;;  %v10663_v13 = vld [vmem:[#allocation38_spill] sm:$0xff] }
 0x292   : > { %v2121_v58 = vsel %vm2118_vm15, %v2120_v50, %v2116_v40  ;;  %v2081_v32 = vmul.f32 %v10657_v24, %v2080_v7  ;;  %v2089_v28 = vand.u32 2147483648, %v10656_v34  ;;  %v2411_v26 = vmul.f32 %v8309_v60, %v2410_v45 }
 0x293   : > { %vm2414_vm6 = vweird.f32 %v8309_v60  ;;  %v2215_v9 = vsub.f32 1.0, %v2214_v62  ;;  %v8382_v52 = vor.u32 1.1754944e-38, %v2224_v49  ;;  %v8384_v43 = vor.u32 1.1754944e-38, %v3289_v41 }
 0x294   : > { %v3280_v38 = vsub.f32 1.0, %v3279_v12  ;;  %v3384_v59 = vmul.f32 %v2121_v58, %v10663_v13  ;;  %v2082_v17 = vadd.f32 %v10657_v24, %v2081_v32  ;;  %vm2083_vm11 = vweird.f32 %v10656_v34  ;;  %v10665_v34 = vld [vmem:[#allocation23_spill] sm:$0xff]  ;;  %v10666_v12 = vld [vmem:[#allocation45_spill] sm:$0xff]  ;;  %v8405_v32 = vpop.f32.mrf.mxu0 }
 0x295   : > { %10662 = vst [vmem:[#allocation43_spill] sm:$0xff] %v8382_v52  ;;  %vm2413_vm8 = vweird.f32 %v8249_v3  ;;  %v2439_v39 = vmul.f32 %v8372_v48, %v8312_v55  ;;  %v2449_v45 = vand.u32 2147483648, %v8312_v55  ;;  %v8393_v50 = vadd.f32 1.0, %v4725_v53  ;;  %vm2085_vm7 = vmor %vm2083_vm11, %vm2084_vm2 }
 0x296   : > { %v2090_v49 = vor.u32 1.1754944e-38, %v2089_v28  ;;  %v3055_v41 = vsub.f32 1.0, %v8363_v42  ;;  %3500 = vmatpush.msrb.mxu3 %v3384_v59  ;;  %v2086_v62 = vsel %vm2085_vm7, %v10657_v24, %v2082_v17  ;;  %vm2088_vm3 = vcmp.eq.f32.partialorder %v2087_v14, 8.507059e+37  ;;  %v4737_v40 = vpop.eup %4736  ;;  %10667 = vst [vmem:[#allocation23_spill] sm:$0xff] %v8405_v32  ;;  %v10670_v14 = vld [vmem:[#allocation29_spill] sm:$0xff] }
 0x297   : > { %10664 = vst [vmem:[#allocation38_spill] sm:$0xff] %v8393_v50  ;;  %v2049_v7 = vmul.f32 %v10666_v12, %v10665_v34  ;;  %v2216_v58 = vmul.f32 %v8340_v44, %v2215_v9  ;;  %vm2219_vm14 = vweird.f32 %v8340_v44  ;;  %v8403_v53 = vadd.f32 1.0, %v4733_v2  ;;  %v8416_v2 = vpop.f32.mrf.mxu1 }
 0x298   : > { %v2091_v13 = vsel %vm2088_vm3, %v2090_v49, %v2086_v62  ;;  %v3281_v28 = vmul.f32 %v8346_v46, %v3280_v38  ;;  %vm8408_vm10 = vcmp.eq.f32.partialorder %v3287_v54, 8.507059e+37  ;;  %v4229_v24 = vmul.f32 -1.442695, %v8348_v0  ;;  %10671 = vst [vmem:[#allocation45_spill] sm:$0xff] %v8416_v2  ;;  %v8421_v54 = vpop.f32.mrf.mxu3  ;;  %vm8436_vm9 = vmor %vm2218_vm12, %vm2219_vm14 }
 0x299   : > { %v3382_v59 = vmul.f32 %v2091_v13, %v10670_v14  ;;  %v2050_v17 = vsub.f32 1.0, %v2049_v7  ;;  %vm3284_vm13 = vweird.f32 %v8346_v46  ;;  %v2440_v9 = vsub.f32 1.0, %v2439_v39  ;;  %10672 = vst [vmem:[#allocation29_spill] sm:$0xff] %v8421_v54  ;;  %v10682_v14 = vld [vmem:[#allocation6_spill] sm:$0xff] }
 0x29a   : > { %4738 = vrcp.f32 %v8393_v50  ;;  %v2059_v49 = vand.u32 2147483648, %v10665_v34  ;;  %v8419_v62 = vadd.f32 1.0, %v4737_v40  ;;  %vm2054_vm5 = vweird.f32 %v10666_v12  ;;  %vm8447_vm4 = vmor %vm3283_vm1, %vm3284_vm13 }
 0x29b   : > { %3501 = vmatpush.msrb.mxu3 %v3382_v59  ;;  %v2051_v38 = vmul.f32 %v10666_v12, %v2050_v17  ;;  %v2057_v7 = vand.u32 2147483647, %v10665_v34  ;;  %v8427_v13 = vadd.f32 %v8309_v60, %v2411_v26  ;;  %v8430_v39 = vadd.f32 %v8340_v44, %v2216_v58  ;;  %vm8464_vm1 = vmor %vm2413_vm8, %vm2414_vm6 }
 0x29c   : > { %v10675_v40 = vmov 0  ;;  %4740 = vrcp.f32 %v8403_v53  ;;  %v3282_v59 = vadd.f32 %v8346_v46, %v3281_v28  ;;  %vm2053_vm12 = vweird.f32 %v10665_v34  ;;  %v8490_v16 = vpop.f32.mrf.mxu0 }
 0x29d   : > { %10673 = vst [vmem:[#allocation94_spill] sm:$0xff] %v8427_v13  ;;  %v10676_v40 = vsel %vm8436_vm9, 4294967295, %v10675_v40  ;;  %4742 = vpow2.f32 %v4229_v24  ;;  %v2052_v58 = vadd.f32 %v10666_v12, %v2051_v38  ;;  %v8454_v17 = vmul.f32 %v8334_v27, %v3055_v41  ;;  %vm2055_vm0 = vmor %vm2053_vm12, %vm2054_vm5 }
 0x29e   : > { %10674 = vst [vmem:[#allocation95_spill] sm:$0xff] %v8430_v39  ;;  %v8456_v1 = vor.u32 1.1754944e-38, %v2449_v45  ;;  %v2060_v28 = vor.u32 1.1754944e-38, %v2059_v49  ;;  %v2019_v30 = vmul.f32 %v10683_v63, %v10682_v14  ;;  %v10684_v36 = vmov 0 }
 0x29f   : > { %10677 = vst [vmem:[#allocation96_spill] sm:$0xff] %v10676_v40  ;;  %v10685_v36 = vsel %vm8464_vm1, 4294967295, %v10684_v36  ;;  %v2441_v34 = vmul.f32 %v8372_v48, %v2440_v9  ;;  %4744 = vrcp.f32 %v8419_v62  ;;  %v2056_v45 = vsel %vm2055_vm0, %v10666_v12, %v2052_v58  ;;  %v10688_v58 = vld [vmem:[#allocation15_spill] sm:$0xff]  ;;  %v8509_v51 = vpop.f32.mrf.mxu1 }
 0x2a0   : > { %10680 = vst [vmem:[#allocation97_spill] sm:$0xff] %v8454_v17  ;;  %vm2058_vm15 = vcmp.eq.f32.partialorder %v2057_v7, 8.507059e+37  ;;  %v8471_v41 = vpop.eup %4738  ;;  %v4216_v49 = vmul.f32 -1.442695, %v8416_v2  ;;  %v2020_v20 = vsub.f32 1.0, %v2019_v30  ;;  %v3286_v12 = vsel %vm8447_vm4, %v8346_v46, %v3282_v59  ;;  %v10691_v59 = vld [vmem:[#allocation21_spill] sm:$0xff]  ;;  %v8518_v33 = vpop.f32.mrf.mxu3 }
 0x2a1   : > { %10681 = vst [vmem:[#allocation98_spill] sm:$0xff] %v8456_v1  ;;  %v2061_v38 = vsel %vm2058_vm15, %v2060_v28, %v2056_v45  ;;  %v4231_v7 = vmul.f32 -1.442695, %v8405_v32  ;;  %v2027_v28 = vand.u32 2147483647, %v10682_v14  ;;  %v2029_v45 = vand.u32 2147483648, %v10682_v14 }
 0x2a2   : > { %10686 = vst [vmem:[#allocation6_spill] sm:$0xff] %v10685_v36  ;;  %v3380_v5 = vmul.f32 %v2061_v38, %v10688_v58  ;;  %v8487_v15 = vpop.eup %4740  ;;  %v2021_v30 = vmul.f32 %v10683_v63, %v2020_v20  ;;  %v8496_v26 = vadd.f32 %v8372_v48, %v2441_v34  ;;  %vm2024_vm2 = vweird.f32 %v10683_v63  ;;  %v10692_v38 = vld [vmem:[#allocation5_spill] sm:$0xff] }
 0x2a3   : > { %10687 = vst [vmem:[#allocation30_spill] sm:$0xff] %v8471_v41  ;;  %v4743_v9 = vpop.eup %4742  ;;  %v1989_v58 = vmul.f32 %v10692_v38, %v10691_v59  ;;  %v3291_v20 = vsel %vm8408_vm10, %v8384_v43, %v3286_v12  ;;  %v8507_v24 = vmul.f32 %v8471_v41, %v8393_v50  ;;  %4746 = vpow2.f32 %v4216_v49 }
 0x2a4   : > { %10689 = vst [vmem:[#allocation15_spill] sm:$0xff] %v8487_v15  ;;  %3502 = vmatpush.msrb.mxu3 %v3380_v5  ;;  %v2022_v34 = vadd.f32 %v10683_v63, %v2021_v30  ;;  %v8516_v5 = vmul.f32 %v8487_v15, %v8403_v53  ;;  %4748 = vpow2.f32 %v4231_v7  ;;  %vm2023_vm6 = vweird.f32 %v10682_v14 }
 0x2a5   : > { %10690 = vst [vmem:[#allocation99_spill] sm:$0xff] %v8496_v26  ;;  %v8512_v46 = vpop.eup %4744  ;;  %v1990_v43 = vsub.f32 1.0, %v1989_v58  ;;  %v8521_v42 = vadd.f32 1.0, %v4743_v9  ;;  %v4233_v49 = vmul.f32 -1.442695, %v8490_v16  ;;  %vm2025_vm11 = vmor %vm2023_vm6, %vm2024_vm2  ;;  %vm2028_vm8 = vcmp.eq.f32.partialorder %v2027_v28, 8.507059e+37 }
 0x2a6   : > { %10693 = vst [vmem:[#allocation21_spill] sm:$0xff] %v8507_v24  ;;  %v2030_v12 = vor.u32 1.1754944e-38, %v2029_v45  ;;  %v2026_v30 = vsel %vm2025_vm11, %v10683_v63, %v2022_v34  ;;  %vm1994_vm7 = vweird.f32 %v10692_v38  ;;  %v1997_v7 = vand.u32 2147483647, %v10691_v59  ;;  %v10696_v28 = vld [vmem:[#allocation25_spill] sm:$0xff] }
 0x2a7   : > { %10694 = vst [vmem:[#allocation5_spill] sm:$0xff] %v8509_v51  ;;  %v1991_v19 = vmul.f32 %v10692_v38, %v1990_v43  ;;  %v3309_v14 = vmul.f32 %v8512_v46, %v8419_v62  ;;  %v4272_v9 = vmul.f32 -1.442695, %v8368_v23  ;;  %v1999_v6 = vand.u32 2147483648, %v10691_v59  ;;  %v10698_v23 = vld [vmem:[#allocation7_spill] sm:$0xff] }
 0x2a8   : > { %10695 = vst [vmem:[#allocation100_spill] sm:$0xff] %v8518_v33  ;;  %v2031_v58 = vsel %vm2028_vm8, %v2030_v12, %v2026_v30  ;;  %v4218_v57 = vmul.f32 -1.442695, %v8509_v51  ;;  %vm1993_vm3 = vweird.f32 %v10691_v59  ;;  %v8539_v43 = vmul.f32 %v3291_v20, %v8173_v61  ;;  %v10697_v30 = vld [vmem:[#allocation16_spill] sm:$0xff]  ;;  %v8548_v20 = vpop.f32.mrf.mxu0  ;;  %v10745_v51 = vld [vmem:[#allocation70_spill] sm:$0xff] }
 0x2a9   : > { %v3378_v45 = vmul.f32 %v2031_v58, %v10696_v28  ;;  %v1992_v63 = vadd.f32 %v10692_v38, %v1991_v19  ;;  %v4747_v34 = vpop.eup %4746  ;;  %vm2444_vm14 = vweird.f32 %v8372_v48  ;;  %4750 = vrcp.f32 %v8521_v42  ;;  %vm1995_vm10 = vmor %vm1993_vm3, %vm1994_vm7 }
 0x2aa   : > { %v2000_v12 = vor.u32 1.1754944e-38, %v1999_v6  ;;  %v1959_v56 = vmul.f32 %v10698_v23, %v10697_v30  ;;  %v4749_v41 = vpop.eup %4748  ;;  %4752 = vpow2.f32 %v4233_v49  ;;  %vm1998_vm13 = vcmp.eq.f32.partialorder %v1997_v7, 8.507059e+37 }
 0x2ab   : > { %3503 = vmatpush.msrb.mxu3 %v3378_v45  ;;  %v1996_v19 = vsel %vm1995_vm10, %v10692_v38, %v1992_v63  ;;  %vm2443_vm5 = vweird.f32 %v8312_v55  ;;  %v3310_v61 = vsub.f32 1.0, %v3309_v14  ;;  %4754 = vpow2.f32 %v4272_v9  ;;  %v8556_v45 = vpop.f32.mrf.mxu1  ;;  %v10699_v38 = vld [vmem:[#allocation11_spill] sm:$0xff] }
 0x2ac   : > { %v2001_v59 = vsel %vm1998_vm13, %v2000_v12, %v1996_v19  ;;  %v1960_v28 = vsub.f32 1.0, %v1959_v56  ;;  %vm3313_vm4 = vweird.f32 %v8419_v62  ;;  %v3317_v6 = vand.u32 2147483647, %v8419_v62  ;;  %v10700_v12 = vld [vmem:[#allocation9_spill] sm:$0xff]  ;;  %vm8592_vm8 = vmor %vm2443_vm5, %vm2444_vm14 }
 0x2ad   : > { %v8552_v50 = vadd.f32 1.0, %v4747_v34  ;;  %4756 = vpow2.f32 %v4218_v57  ;;  %v8554_v49 = vadd.f32 1.0, %v4749_v41  ;;  %v3376_v7 = vmul.f32 %v2001_v59, %v10699_v38  ;;  %v10701_v34 = vld [vmem:[#allocation20_spill] sm:$0xff]  ;;  %v8566_v57 = vpop.f32.mrf.mxu3 }
 0x2ae   : > { %v1961_v14 = vmul.f32 %v10698_v23, %v1960_v28  ;;  %vm1964_vm12 = vweird.f32 %v10698_v23  ;;  %v4235_v9 = vmul.f32 -1.442695, %v8548_v20  ;;  %v1967_v56 = vand.u32 2147483647, %v10697_v30  ;;  %10702 = vst [vmem:[#allocation25_spill] sm:$0xff] %v8566_v57 }
 0x2af   : > { %v1969_v63 = vand.u32 2147483648, %v10697_v30  ;;  %v1929_v19 = vmul.f32 %v10701_v34, %v10700_v12  ;;  %v8568_v41 = vpop.eup %4750  ;;  %v3311_v58 = vmul.f32 %v8512_v46, %v3310_v61  ;;  %v3319_v59 = vand.u32 2147483648, %v8419_v62  ;;  %3504 = vmatpush.msrb.mxu3 %v3376_v7 }
 0x2b0   : > { %v1962_v28 = vadd.f32 %v10698_v23, %v1961_v14  ;;  %vm1963_vm0 = vweird.f32 %v10697_v30  ;;  %v4753_v38 = vpop.eup %4752  ;;  %4758 = vrcp.f32 %v8552_v50  ;;  %v4220_v47 = vmul.f32 -1.442695, %v8556_v45 }
 0x2b1   : > { %vm1965_vm15 = vmor %vm1963_vm0, %vm1964_vm12  ;;  %v1970_v27 = vor.u32 1.1754944e-38, %v1969_v63  ;;  %v1930_v17 = vsub.f32 1.0, %v1929_v19  ;;  %v4755_v37 = vpop.eup %4754  ;;  %vm3314_vm2 = vweird.f32 %v8512_v46  ;;  %4760 = vrcp.f32 %v8554_v49 }
 0x2b2   : > { %v1966_v61 = vsel %vm1965_vm15, %v10698_v23, %v1962_v28  ;;  %vm1968_vm6 = vcmp.eq.f32.partialorder %v1967_v56, 8.507059e+37  ;;  %4762 = vpow2.f32 %v4235_v9  ;;  %v1939_v29 = vand.u32 2147483648, %v10700_v12  ;;  %vm8609_vm7 = vmor %vm3313_vm4, %vm3314_vm2 }
 0x2b3   : > { %v4757_v7 = vpop.eup %4756  ;;  %v1971_v30 = vsel %vm1968_vm6, %v1970_v27, %v1966_v61  ;;  %v1931_v14 = vmul.f32 %v10701_v34, %v1930_v17  ;;  %v8583_v21 = vadd.f32 1.0, %v4753_v38  ;;  %vm1934_vm11 = vweird.f32 %v10701_v34 }
 0x2b4   : > { %v3374_v63 = vmul.f32 %v1971_v30, %v10703_v22  ;;  %v1937_v19 = vand.u32 2147483647, %v10700_v12  ;;  %v10704_v23 = vmov 0  ;;  %v3312_v27 = vadd.f32 %v8512_v46, %v3311_v58 }
 0x2b5   : > { %v10705_v23 = vsel %vm8592_vm8, 4294967295, %v10704_v23  ;;  %v2469_v17 = vmul.f32 %v8568_v41, %v8521_v42  ;;  %v8599_v9 = vadd.f32 1.0, %v4755_v37  ;;  %4764 = vpow2.f32 %v4220_v47  ;;  %v8644_v52 = vpop.f32.mrf.mxu3 }
 0x2b6   : > { %10706 = vst [vmem:[#allocation16_spill] sm:$0xff] %v10705_v23  ;;  %v8613_v58 = vadd.f32 1.0, %v4757_v7  ;;  %3505 = vmatpush.msrb.mxu3 %v3374_v63  ;;  %v1932_v37 = vadd.f32 %v10701_v34, %v1931_v14  ;;  %vm1933_vm3 = vweird.f32 %v10700_v12  ;;  %v8617_v47 = vpop.eup %4758  ;;  %v10710_v28 = vsub.f32 1.0, %v8516_v5  ;;  %v8630_v12 = vpop.f32.mrf.mxu0  ;;  %v10713_v14 = vld [vmem:[#allocation19_spill] sm:$0xff]  ;;  %v10714_v63 = vld [vmem:[#allocation8_spill] sm:$0xff] }
 0x2b7   : > { %10707 = vst [vmem:[#allocation7_spill] sm:$0xff] %v8599_v9  ;;  %vm2248_vm14 = vweird.f32 %v8403_v53  ;;  %vm2249_vm10 = vweird.f32 %v8487_v15  ;;  %vm8624_vm13 = vcmp.eq.f32.partialorder %v3317_v6, 8.507059e+37  ;;  %v3320_v61 = vor.u32 1.1754944e-38, %v3319_v59  ;;  %vm1935_vm5 = vmor %vm1933_vm3, %vm1934_vm11  ;;  %v8632_v30 = vpop.eup %4760 }
 0x2b8   : > { %v2246_v38 = vmul.f32 %v8487_v15, %v10710_v28  ;;  %v1940_v7 = vor.u32 1.1754944e-38, %v1939_v29  ;;  %4766 = vrcp.f32 %v8583_v21  ;;  %v1936_v5 = vsel %vm1935_vm5, %v10701_v34, %v1932_v37  ;;  %v8638_v28 = vpop.f32.mrf.mxu1  ;;  %v4763_v22 = vpop.eup %4762  ;;  %10715 = vst [vmem:[#allocation11_spill] sm:$0xff] %v8644_v52  ;;  %v10716_v34 = vld [vmem:[#allocation27_spill] sm:$0xff]  ;;  %vm8691_vm6 = vmor %vm2248_vm14, %vm2249_vm10 }
 0x2b9   : > { %vm1938_vm4 = vcmp.eq.f32.partialorder %v1937_v19, 8.507059e+37  ;;  %v1899_v6 = vmul.f32 %v10714_v63, %v10713_v14  ;;  %v3316_v59 = vsel %vm8609_vm7, %v8512_v46, %v3312_v27  ;;  %v2470_v29 = vsub.f32 1.0, %v2469_v17 }
 0x2ba   : > { %4768 = vrcp.f32 %v8599_v9  ;;  %v1941_v24 = vsel %vm1938_vm4, %v1940_v7, %v1936_v5  ;;  %v4274_v39 = vmul.f32 -1.442695, %v8421_v54  ;;  %v2499_v40 = vmul.f32 %v8632_v30, %v8554_v49 }
 0x2bb   : > { %4770 = vrcp.f32 %v8613_v58  ;;  %v3372_v19 = vmul.f32 %v1941_v24, %v10716_v34  ;;  %v1900_v37 = vsub.f32 1.0, %v1899_v6  ;;  %v4765_v44 = vpop.eup %4764  ;;  %v1909_v56 = vand.u32 2147483648, %v10713_v14 }
 0x2bc   : > { %v4222_v46 = vmul.f32 -1.442695, %v8638_v28  ;;  %v4237_v27 = vmul.f32 -1.442695, %v8630_v12  ;;  %v8654_v17 = vadd.f32 1.0, %v4763_v22  ;;  %vm1904_vm12 = vweird.f32 %v10714_v63 }
 0x2bd   : > { %3506 = vmatpush.msrb.mxu3 %v3372_v19  ;;  %v1901_v7 = vmul.f32 %v10714_v63, %v1900_v37  ;;  %v1907_v24 = vand.u32 2147483647, %v10713_v14  ;;  %v3321_v5 = vsel %vm8624_vm13, %v3320_v61, %v3316_v59  ;;  %v2274_v6 = vmul.f32 %v8617_v47, %v8552_v50  ;;  %v8705_v2 = vpop.f32.mrf.mxu3 }
 0x2be   : > { %v4276_v34 = vmul.f32 -1.442695, %v8518_v33  ;;  %4772 = vpow2.f32 %v4222_v46  ;;  %v8664_v54 = vpop.eup %4766  ;;  %v8666_v22 = vadd.f32 1.0, %v4765_v44  ;;  %vm1903_vm0 = vweird.f32 %v10713_v14  ;;  %v8675_v46 = vpop.f32.mrf.mxu0  ;;  %10725 = vst [vmem:[#allocation8_spill] sm:$0xff] %v8705_v2 }
 0x2bf   : > { %v1902_v19 = vadd.f32 %v10714_v63, %v1901_v7  ;;  %4774 = vpow2.f32 %v4237_v27  ;;  %v2471_v62 = vmul.f32 %v8568_v41, %v2470_v29  ;;  %v2500_v61 = vsub.f32 1.0, %v2499_v40  ;;  %vm1905_vm15 = vmor %vm1903_vm0, %vm1904_vm12 }
 0x2c0   : > { %v8670_v37 = vpop.eup %4768  ;;  %4776 = vpow2.f32 %v4274_v39  ;;  %v1910_v59 = vor.u32 1.1754944e-38, %v1909_v56  ;;  %vm1908_vm2 = vcmp.eq.f32.partialorder %v1907_v24, 8.507059e+37  ;;  %v4239_v14 = vmul.f32 -1.442695, %v8675_v46 }
 0x2c1   : > { %10717 = vst [vmem:[#allocation9_spill] sm:$0xff] %v8670_v37  ;;  %v8677_v33 = vpop.eup %4770  ;;  %4778 = vrcp.f32 %v8654_v17  ;;  %v1906_v44 = vsel %vm1905_vm15, %v10714_v63, %v1902_v19  ;;  %v8683_v27 = vadd.f32 %v8487_v15, %v2246_v38  ;;  %v2529_v39 = vmul.f32 %v8664_v54, %v8583_v21  ;;  %v8755_v15 = vpop.f32.mrf.mxu1 }
 0x2c2   : > { %4780 = vpow2.f32 %v4276_v34  ;;  %v1911_v40 = vsel %vm1908_vm2, %v1910_v59, %v1906_v44  ;;  %v10719_v29 = vmov 0  ;;  %v10722_v63 = vand.u32 2147483648, %v8403_v53  ;;  %v10724_v59 = vld [vmem:[#allocation12_spill] sm:$0xff]  ;;  %10728 = vst [vmem:[#allocation27_spill] sm:$0xff] %v8755_v15 }
 0x2c3   : > { %10718 = vst [vmem:[#allocation20_spill] sm:$0xff] %v8683_v27  ;;  %v10720_v29 = vsel %vm8691_vm6, 4294967295, %v10719_v29  ;;  %v3464_v38 = vmul.f32 %v3321_v5, %v8317_v10  ;;  %v2275_v7 = vsub.f32 1.0, %v2274_v6  ;;  %4782 = vrcp.f32 %v8666_v22 }
 0x2c4   : > { %10721 = vst [vmem:[#allocation13_spill] sm:$0xff] %v10720_v29  ;;  %v8697_v56 = vor.u32 1.1754944e-38, %v10722_v63  ;;  %v4773_v24 = vpop.eup %4772  ;;  %v2501_v34 = vmul.f32 %v8632_v30, %v2500_v61  ;;  %v2304_v19 = vmul.f32 %v8677_v33, %v8613_v58  ;;  %v3370_v44 = vmul.f32 %v1911_v40, %v10724_v59 }
 0x2c5   : > { %4784 = vpow2.f32 %v4239_v14  ;;  %v4775_v0 = vpop.eup %4774  ;;  %v8708_v63 = vadd.f32 %v8568_v41, %v2471_v62  ;;  %vm2474_vm11 = vweird.f32 %v8568_v41  ;;  %v2479_v10 = vand.u32 2147483648, %v8521_v42 }
 0x2c6   : > { %10723 = vst [vmem:[#allocation19_spill] sm:$0xff] %v8697_v56  ;;  %v8712_v5 = vadd.f32 1.0, %v4773_v24  ;;  %v4777_v6 = vpop.eup %4776  ;;  %vm2473_vm7 = vweird.f32 %v8521_v42  ;;  %v2530_v14 = vsub.f32 1.0, %v2529_v39  ;;  %3507 = vmatpush.msrb.mxu3 %v3370_v44  ;;  %v8719_v40 = vadd.f32 1.0, %v4775_v0 }
 0x2c7   : > { %v8721_v62 = vpop.eup %4778  ;;  %v2276_v59 = vmul.f32 %v8617_v47, %v2275_v7  ;;  %v2284_v35 = vand.u32 2147483648, %v8552_v50  ;;  %v2509_v24 = vand.u32 2147483648, %v8554_v49  ;;  %vm8729_vm3 = vmor %vm2473_vm7, %vm2474_vm11  ;;  %v8734_v0 = vadd.f32 %v8632_v30, %v2501_v34 }
 0x2c8   : > { %4786 = vrcp.f32 %v8712_v5  ;;  %3544 = vmatpush.msra.mxu3 %v3464_v38  ;;  %v4781_v13 = vpop.eup %4780  ;;  %vm2504_vm14 = vweird.f32 %v8632_v30  ;;  %v2305_v39 = vsub.f32 1.0, %v2304_v19  ;;  %v8745_v60 = vor.u32 1.1754944e-38, %v2479_v10 }
 0x2c9   : > { %4788 = vrcp.f32 %v8719_v40  ;;  %v8738_v7 = vpop.eup %4782  ;;  %v8747_v36 = vadd.f32 1.0, %v4777_v6  ;;  %vm2503_vm10 = vweird.f32 %v8554_v49  ;;  %v2531_v56 = vmul.f32 %v8664_v54, %v2530_v14 }
 0x2ca   : > { %3545 = vmatpush.msra.mxu3 %v8539_v43  ;;  %v2559_v27 = vmul.f32 %v8721_v62, %v8654_v17  ;;  %v8759_v10 = vmul.f32 %v8670_v37, %v8599_v9  ;;  %v8761_v6 = vor.u32 1.1754944e-38, %v2284_v35  ;;  %vm8765_vm13 = vmor %vm2503_vm10, %vm2504_vm14  ;;  %v8770_v14 = vor.u32 1.1754944e-38, %v2509_v24  ;;  %v8800_v37 = vpop.f32.mrf.mxu3 }
 0x2cb   : > { %v4785_v34 = vpop.eup %4784  ;;  %v8774_v44 = vadd.f32 %v8617_v47, %v2276_v59  ;;  %v2306_v19 = vmul.f32 %v8677_v33, %v2305_v39  ;;  %4790 = vrcp.f32 %v8747_v36  ;;  %v8787_v38 = vadd.f32 1.0, %v4781_v13  ;;  %10734 = vst [vmem:[#allocation103_spill] sm:$0xff] %v8800_v37 }
 0x2cc   : > { %10729 = vst [vmem:[#allocation12_spill] sm:$0xff] %v8759_v10  ;;  %3546 = vmatpush.msra.mxu3 %v8323_v18  ;;  %v8781_v15 = vadd.f32 1.0, %v4785_v34  ;;  %v2334_v18 = vmul.f32 %v8738_v7, %v8666_v22  ;;  %v8795_v35 = vadd.f32 %v8664_v54, %v2531_v56  ;;  %vm2534_vm5 = vweird.f32 %v8664_v54 }
 0x2cd   : > { %10730 = vst [vmem:[#allocation101_spill] sm:$0xff] %v8761_v6  ;;  %v2560_v39 = vsub.f32 1.0, %v2559_v27  ;;  %vm2533_vm4 = vweird.f32 %v8583_v21  ;;  %v8809_v56 = vadd.f32 %v8677_v33, %v2306_v19  ;;  %v4278_v29 = vmul.f32 -1.442695, %v8566_v57  ;;  %v8839_v19 = vpop.f32.mrf.mxu1 }
 0x2ce   : > { %v8783_v9 = vpop.eup %4786  ;;  %10733 = vst [vmem:[#allocation102_spill] sm:$0xff] %v8787_v38  ;;  %3547 = vmatpush.msra.mxu3 %v8185_v11  ;;  %4792 = vrcp.f32 %v8781_v15  ;;  %vm8814_vm12 = vmor %vm2533_vm4, %vm2534_vm5  ;;  %v2335_v1 = vsub.f32 1.0, %v2334_v18  ;;  %vm2339_vm15 = vweird.f32 %v8738_v7  ;;  %vm2563_vm2 = vweird.f32 %v8654_v17 }
 0x2cf   : > { %v8792_v59 = vpop.eup %4788  ;;  %v2364_v34 = vmul.f32 %v8783_v9, %v8712_v5  ;;  %4794 = vrcp.f32 %v8787_v38  ;;  %v2561_v27 = vmul.f32 %v8721_v62, %v2560_v39  ;;  %10737 = vst [vmem:[#allocation104_spill] sm:$0xff] %v8839_v19  ;;  %vm2564_vm5 = vweird.f32 %v8721_v62 }
 0x2d0   : > { %v2589_v11 = vmul.f32 %v8792_v59, %v8719_v40  ;;  %3548 = vmatpush.msra.mxu3 %v7965_v4  ;;  %v4280_v4 = vmul.f32 -1.442695, %v8644_v52  ;;  %4796 = vpow2.f32 %v4278_v29  ;;  %v4284_v52 = vmul.f32 -1.442695, %v8800_v37  ;;  %v8871_v37 = vld [vmem:[%s10084_s2 + $0x8] sm:$0xff]  ;;  %vm8877_vm7 = vmor %vm2563_vm2, %vm2564_vm5 }
 0x2d1   : > { %v2365_v24 = vsub.f32 1.0, %v2364_v34  ;;  %v8827_v57 = vpop.eup %4790  ;;  %v8850_v29 = vadd.f32 %v8721_v62, %v2561_v27  ;;  %vm2368_vm4 = vweird.f32 %v8712_v5  ;;  %vm2369_vm14 = vweird.f32 %v8783_v9  ;;  %10742 = vst [vmem:[#allocation105_spill] sm:$0xff] %v8871_v37  ;;  %3508 = vmatmul.f32.vlgmr.msrb.gmra.mxu3 %v8871_v37  ;;  %v10812_v37 = vld [vmem:[#allocation16_spill] sm:$0xff] }
 0x2d2   : > { %v2590_v26 = vsub.f32 1.0, %v2589_v11  ;;  %3549 = vmatpush.msra.mxu3 %v7948_v8  ;;  %4798 = vpow2.f32 %v4280_v4  ;;  %v10738_v11 = vld [vmem:[#allocation78_spill] sm:$0xff]  ;;  %v4282_v8 = vmul.f32 -1.442695, %v8705_v2  ;;  %v2374_v4 = vand.u32 2147483648, %v8712_v5  ;;  %v8866_v2 = vpop.f32.mrf.mxu3  ;;  %vm8899_vm2 = vmor %vm2368_vm4, %vm2369_vm14 }
 0x2d3   : > { %vm2593_vm10 = vweird.f32 %v8719_v40  ;;  %vm2594_vm11 = vweird.f32 %v8792_v59  ;;  %v2599_v48 = vand.u32 2147483648, %v8719_v40  ;;  %v2629_v23 = vand.u32 2147483648, %v8781_v15 }
 0x2d4   : > { %3550 = vmatpush.msra.mxu3 %v7929_v25  ;;  %v2591_v34 = vmul.f32 %v8792_v59, %v2590_v26  ;;  %v8841_v18 = vpop.eup %4792  ;;  %v2336_v25 = vmul.f32 %v8738_v7, %v2335_v1  ;;  %v2366_v26 = vmul.f32 %v8783_v9, %v2365_v24  ;;  %v2372_v1 = vand.u32 2147483647, %v8712_v5  ;;  %vm8917_vm14 = vmor %vm2593_vm10, %vm2594_vm11 }
 0x2d5   : > { %v2619_v39 = vmul.f32 %v8841_v18, %v8781_v15  ;;  %v8856_v19 = vpop.eup %4794  ;;  %v10747_v10 = vand.u32 2147483647, %v8613_v58  ;;  %4800 = vpow2.f32 %v4284_v52  ;;  %v2566_v5 = vsel %vm8877_vm7, %v8721_v62, %v8850_v29  ;;  %v10754_v52 = vld [vmem:[#allocation66_spill] sm:$0xff]  ;;  %v9042_v62 = vld [vmem:[%s10084_s2] sm:$0xff] }
 0x2d6   : > { %3551 = vmatpush.msra.mxu3 %v10738_v11  ;;  %10739 = vst [vmem:[#allocation78_spill] sm:$0xff] %v8856_v19  ;;  %v10740_v11 = vld [vmem:[#allocation75_spill] sm:$0xff]  ;;  %v2592_v27 = vadd.f32 %v8792_v59, %v2591_v34  ;;  %v2597_v34 = vand.u32 2147483647, %v8719_v40  ;;  %v8886_v32 = vpop.eup %4796  ;;  %v2367_v38 = vadd.f32 %v8783_v9, %v2366_v26  ;;  %4802 = vpow2.f32 %v4282_v8  ;;  %3482 = vmatmul.f32.vlgmr.msrb.gmra.mxu2 %v9042_v62  ;;  %v10806_v61 = vld [vmem:[#allocation102_spill] sm:$0xff] }
 0x2d7   : > { %v2620_v24 = vsub.f32 1.0, %v2619_v39  ;;  %10741 = vst [vmem:[#allocation75_spill] sm:$0xff] %v8866_v2  ;;  %v2627_v39 = vand.u32 2147483647, %v8781_v15  ;;  %vm8890_vm0 = vcmp.eq.f32.partialorder %v10747_v10, 8.507059e+37  ;;  %vm10758_vm7 = vweird.f32 %v8666_v22 }
 0x2d8   : > { %3552 = vmatpush.msra.mxu3 %v10740_v11  ;;  %10746 = vst [vmem:[#allocation70_spill] sm:$0xff] %v8886_v32  ;;  %v8906_v10 = vpop.eup %4798  ;;  %v2337_v32 = vadd.f32 %v8738_v7, %v2336_v25  ;;  %v10755_v25 = vand.u32 2147483647, %v8552_v50  ;;  %vm8933_vm5 = vmor %vm10758_vm7, %vm2339_vm15  ;;  %vm8937_vm11 = vcmp.eq.f32.partialorder %v2372_v1, 8.507059e+37  ;;  %v2596_v8 = vsel %vm8917_vm14, %v8792_v59, %v2592_v27  ;;  %v8946_v11 = vpop.f32.mrf.mxu1  ;;  %v10767_v59 = vld [vmem:[#allocation60_spill] sm:$0xff] }
 0x2d9   : > { %vm2623_vm10 = vweird.f32 %v8781_v15  ;;  %v2375_v1 = vor.u32 1.1754944e-38, %v2374_v4  ;;  %vm2598_vm7 = vcmp.eq.f32.partialorder %v2597_v34, 8.507059e+37  ;;  %vm10766_vm9 = vweird.f32 %v8841_v18  ;;  %v9136_v15 = vld [vmem:[%s10084_s2 + $0x48] sm:$0xff] }
 0x2da   : > { %3553 = vmatpush.msra.mxu3 %v10745_v51  ;;  %v2621_v51 = vmul.f32 %v8841_v18, %v2620_v24  ;;  %v4286_v24 = vmul.f32 -1.442695, %v8866_v2  ;;  %vm8925_vm4 = vcmp.eq.f32.partialorder %v10755_v25, 8.507059e+37  ;;  %v2600_v2 = vor.u32 1.1754944e-38, %v2599_v48  ;;  %vm2625_vm1 = vmor %vm2623_vm10, %vm10766_vm9  ;;  %v10810_v25 = vld [vmem:[#allocation23_spill] sm:$0xff] }
 0x2db   : > { %v2630_v26 = vor.u32 1.1754944e-38, %v2629_v23  ;;  %v10768_v27 = vand.u32 2147483647, %v8403_v53  ;;  %vm2628_vm6 = vcmp.eq.f32.partialorder %v2627_v39, 8.507059e+37  ;;  %vm10771_vm8 = vweird.f32 %v8677_v33 }
 0x2dc   : > { %3554 = vmatpush.msra.mxu3 %v10754_v52  ;;  %v2622_v29 = vadd.f32 %v8841_v18, %v2621_v51  ;;  %v10763_v52 = vand.u32 2147483647, %v8521_v42  ;;  %v2371_v42 = vsel %vm8899_vm2, %v8783_v9, %v2367_v38  ;;  %4804 = vpow2.f32 %v4286_v24  ;;  %v10777_v38 = vld [vmem:[#allocation56_spill] sm:$0xff] }
 0x2dd   : > { %vm8959_vm14 = vcmp.eq.f32.partialorder %v10768_v27, 8.507059e+37  ;;  %vm10772_vm9 = vweird.f32 %v8613_v58  ;;  %v10775_v53 = vand.u32 2147483648, %v8666_v22  ;;  %v10776_v34 = vand.u32 2147483648, %v8654_v17 }
 0x2de   : > { %vm8950_vm15 = vcmp.eq.f32.partialorder %v10763_v52, 8.507059e+37  ;;  %3555 = vmatpush.msra.mxu3 %v10767_v59  ;;  %v2626_v4 = vsel %vm2625_vm1, %v8841_v18, %v2622_v29  ;;  %vm8971_vm10 = vmor %vm10772_vm9, %vm10771_vm8  ;;  %v2601_v6 = vsel %vm2598_vm7, %v2600_v2, %v2596_v8  ;;  %v4801_v18 = vpop.eup %4800  ;;  %v10778_v39 = vand.u32 2147483647, %v8280_v31  ;;  %v10814_v2 = vld [vmem:[#allocation48_spill] sm:$0xff] }
 0x2df   : > { %v2345_v23 = vor.u32 1.1754944e-38, %v10775_v53  ;;  %v2570_v51 = vor.u32 1.1754944e-38, %v10776_v34  ;;  %v2631_v9 = vsel %vm2628_vm6, %v2630_v26, %v2626_v4  ;;  %v10779_v24 = vmov 0  ;;  %v10797_v34 = vld [vmem:[#allocation47_spill] sm:$0xff]  ;;  %v10834_v4 = vld [vmem:[#allocation49_spill] sm:$0xff] }
 0x2e0   : > { %3556 = vmatpush.msra.mxu3 %v10777_v38  ;;  %vm8982_vm1 = vcmp.eq.f32.partialorder %v10778_v39, 8.507059e+37  ;;  %v10781_v29 = vand.u32 2147483647, %v8312_v55  ;;  %vm10784_vm2 = vweird.f32 %v8617_v47  ;;  %vm10785_vm7 = vweird.f32 %v8552_v50  ;;  %v4803_v50 = vpop.eup %4802  ;;  %v9069_v13 = vpop.f32.mrf.mxu1  ;;  %v10807_v38 = vld [vmem:[#allocation78_spill] sm:$0xff]  ;;  %v10811_v39 = vld [vmem:[#allocation5_spill] sm:$0xff] }
 0x2e1   : > { %v10780_v24 = vsel %vm8982_vm1, 4294967295, %v10779_v24  ;;  %vm8996_vm6 = vmor %vm10785_vm7, %vm10784_vm2  ;;  %v2341_v31 = vsel %vm8933_vm5, %v8738_v7, %v2337_v32  ;;  %v10788_v8 = vand.u32 2147483647, %v8666_v22  ;;  %v10791_v26 = vand.u32 2147483647, %v8654_v17  ;;  %v10817_v55 = vld [vmem:[#allocation98_spill] sm:$0xff] }
 0x2e2   : > { %vm8988_vm8 = vcmp.eq.f32.partialorder %v10781_v29, 8.507059e+37  ;;  %v3418_v59 = vmul.f32 %v2631_v9, %v8675_v46  ;;  %v10792_v27 = vand.u32 2147483647, %v8249_v3  ;;  %v10795_v32 = vand.u32 2147483648, %v8613_v58  ;;  %3557 = vmatpush.msra.mxu3 %v10797_v34  ;;  %v4805_v48 = vpop.eup %4804  ;;  %v10827_v34 = vld [vmem:[#allocation94_spill] sm:$0xff] }
 0x2e3   : > { %vm9005_vm9 = vcmp.eq.f32.partialorder %v10788_v8, 8.507059e+37  ;;  %vm2568_vm1 = vcmp.eq.f32.partialorder %v10791_v26, 8.507059e+37  ;;  %v10796_v22 = vand.u32 2147483648, %v8583_v21  ;;  %v2376_v17 = vsel %vm8937_vm11, %v2375_v1, %v2371_v42  ;;  %v10801_v42 = vld [vmem:[#allocation42_spill] sm:$0xff] }
 0x2e4   : > { %vm9014_vm2 = vcmp.eq.f32.partialorder %v10792_v27, 8.507059e+37  ;;  %v2315_v7 = vor.u32 1.1754944e-38, %v10795_v32  ;;  %v2571_v53 = vsel %vm2568_vm1, %v2570_v51, %v2566_v5  ;;  %v2311_v3 = vsel %vm8971_vm10, %v8677_v33, %v8809_v56  ;;  %3525 = vmatpush.msra.mxu2 %v3418_v59  ;;  %v9037_v5 = vld [vmem:[%s10084_s2 + $0x28] sm:$0xff]  ;;  %3558 = vmatpush.msra.mxu3 %v10801_v42  ;;  %v10821_v27 = vld [vmem:[#allocation20_spill] sm:$0xff]  ;;  %v10835_v42 = vld [vmem:[#allocation95_spill] sm:$0xff] }
 0x2e5   : > { %v2540_v40 = vor.u32 1.1754944e-38, %v10796_v22  ;;  %v10798_v46 = vand.u32 2147483647, %v8583_v21  ;;  %v3416_v58 = vmul.f32 %v2601_v6, %v8630_v12  ;;  %v9032_v9 = vadd.f32 1.0, %v4801_v18  ;;  %3511 = vmatmul.f32.gmra.mxu3 %v9037_v5  ;;  %v10818_v59 = vld [vmem:[#allocation13_spill] sm:$0xff] }
 0x2e6   : > { %v2281_v33 = vsel %vm8996_vm6, %v8617_v47, %v8774_v44  ;;  %v10799_v21 = vand.u32 2147483647, %v8554_v49  ;;  %v10800_v12 = vsel %vm8814_vm12, %v8664_v54, %v8795_v35  ;;  %v2346_v1 = vsel %vm9005_vm9, %v2345_v23, %v2341_v31  ;;  %v10815_v31 = vld [vmem:[#allocation99_spill] sm:$0xff] }
 0x2e7   : > { %vm2538_vm5 = vcmp.eq.f32.partialorder %v10798_v46, 8.507059e+37  ;;  %v10802_v49 = vsel %vm8765_vm13, %v8632_v30, %v8734_v0  ;;  %v3414_v44 = vmul.f32 %v2571_v53, %v8548_v20  ;;  %v3401_v54 = vmul.f32 %v2376_v17, %v8638_v28  ;;  %3526 = vmatpush.msra.mxu2 %v3416_v58  ;;  %v10803_v0 = vld [vmem:[#allocation26_spill] sm:$0xff]  ;;  %v10826_v17 = vld [vmem:[#allocation57_spill] sm:$0xff] }
 0x2e8   : > { %vm2508_vm11 = vcmp.eq.f32.partialorder %v10799_v21, 8.507059e+37  ;;  %v2541_v56 = vsel %vm2538_vm5, %v2540_v40, %v10800_v12  ;;  %v9067_v35 = vadd.f32 1.0, %v4803_v50  ;;  %v3144_v23 = vmul.f32 %v8827_v57, %v8747_v36  ;;  %3559 = vmatpush.msra.mxu3 %v10803_v0  ;;  %v10820_v50 = vld [vmem:[#allocation15_spill] sm:$0xff]  ;;  %v10824_v53 = vld [vmem:[#allocation6_spill] sm:$0xff]  ;;  %v10831_v21 = vld [vmem:[#allocation45_spill] sm:$0xff] }
 0x2e9   : > { %v2511_v47 = vsel %vm2508_vm11, %v8770_v14, %v10802_v49  ;;  %v2316_v43 = vsel %vm8890_vm0, %v2315_v7, %v2311_v3  ;;  %v9077_v30 = vadd.f32 1.0, %v8906_v10  ;;  %v9080_v20 = vadd.f32 1.0, %v4805_v48  ;;  %3527 = vmatpush.msra.mxu2 %v3414_v44  ;;  %v10805_v10 = vld [vmem:[#allocation101_spill] sm:$0xff]  ;;  %v10823_v7 = vld [vmem:[#allocation19_spill] sm:$0xff]  ;;  %v10829_v46 = vld [vmem:[#allocation82_spill] sm:$0xff] }
 0x2ea   : > { %v10804_v28 = vsel %vm8729_vm3, %v8568_v41, %v8708_v63  ;;  %v3412_v51 = vmul.f32 %v2541_v56, %v8490_v16  ;;  %v3399_v19 = vmul.f32 %v2346_v1, %v8556_v45  ;;  %4806 = vrcp.f32 %v9032_v9  ;;  %3596 = vmatpush.msrb.mxu3 %v3401_v54  ;;  %v10808_v41 = vld [vmem:[#allocation70_spill] sm:$0xff]  ;;  %v9141_v56 = vld [vmem:[%s10084_s2 + $0x20] sm:$0xff]  ;;  %v10837_v49 = vld [vmem:[#allocation43_spill] sm:$0xff] }
 0x2eb   : > { %v2481_v14 = vsel %vm8950_vm15, %v8745_v60, %v10804_v28  ;;  %v2286_v6 = vsel %vm8925_vm4, %v10805_v10, %v2281_v33  ;;  %v3174_v18 = vmul.f32 %v10807_v38, %v10806_v61  ;;  %v9099_v63 = vadd.f32 1.0, %v10808_v41  ;;  %v10809_v60 = vld [vmem:[#allocation12_spill] sm:$0xff]  ;;  %v10830_v58 = vld [vmem:[#allocation50_spill] sm:$0xff]  ;;  %v10839_v44 = vld [vmem:[#allocation21_spill] sm:$0xff]  ;;  %3485 = vmatmul.f32.gmra.mxu2 %v9141_v56 }
 0x2ec   : > { %4808 = vrcp.f32 %v9080_v20  ;;  %v3115_v16 = vsub.f32 1.0, %v10809_v60  ;;  %v3410_v45 = vmul.f32 %v2511_v47, %v10810_v25  ;;  %v3397_v29 = vmul.f32 %v2316_v43, %v10811_v39  ;;  %3597 = vmatpush.msrb.mxu3 %v3399_v19  ;;  %3528 = vmatpush.msra.mxu2 %v3412_v51  ;;  %v10832_v1 = vld [vmem:[#allocation96_spill] sm:$0xff]  ;;  %v10842_v19 = vld [vmem:[#allocation55_spill] sm:$0xff] }
 0x2ed   : > { %4810 = vrcp.f32 %v9067_v35  ;;  %vm10813_vm3 = vnez %v10812_v37  ;;  %vm10819_vm13 = vnez %v10818_v59  ;;  %v3145_v40 = vsub.f32 1.0, %v3144_v23  ;;  %v10840_v0 = vld [vmem:[#allocation64_spill] sm:$0xff]  ;;  %v10846_v39 = vld [vmem:[#allocation51_spill] sm:$0xff]  ;;  %3514 = vmatmul.f32.gmra.mxu3 %v9136_v15 }
 0x2ee   : > { %v10816_v8 = vsel %vm10813_vm3, %v10814_v2, %v10815_v31  ;;  %v10822_v32 = vsel %vm10819_vm13, %v10820_v50, %v10821_v27  ;;  %4812 = vrcp.f32 %v9077_v30  ;;  %vm10825_vm12 = vnez %v10824_v53  ;;  %3598 = vmatpush.msrb.mxu3 %v3397_v29  ;;  %3529 = vmatpush.msra.mxu2 %v3410_v45  ;;  %v10845_v45 = vld [vmem:[#allocation97_spill] sm:$0xff]  ;;  %v9376_v28 = vld [vmem:[%s10084_s2 + $0x38] sm:$0xff] }
 0x2ef   : > { %v2451_v26 = vsel %vm8988_vm8, %v10817_v55, %v10816_v8  ;;  %v2256_v22 = vsel %vm8959_vm14, %v10823_v7, %v10822_v32  ;;  %v10828_v3 = vsel %vm10825_vm12, %v10826_v17, %v10827_v34  ;;  %v3408_v33 = vmul.f32 %v2481_v14, %v10830_v58  ;;  %v10841_v14 = vld [vmem:[#allocation92_spill] sm:$0xff]  ;;  %v10848_v55 = vld [vmem:[#allocation38_spill] sm:$0xff] }
 0x2f0   : > { %v2421_v52 = vsel %vm9014_vm2, %v10829_v46, %v10828_v3  ;;  %v3395_v12 = vmul.f32 %v2286_v6, %v10831_v21  ;;  %vm10833_vm0 = vnez %v10832_v1  ;;  %vm10838_vm4 = vnez %v10780_v24  ;;  %v9154_v43 = vpop.eup %4806  ;;  %v10843_v6 = vld [vmem:[#allocation9_spill] sm:$0xff]  ;;  %v9160_v24 = vpop.f32.mrf.mxu1  ;;  %v10849_v32 = vld [vmem:[#allocation30_spill] sm:$0xff]  ;;  %v10851_v46 = vld [vmem:[#allocation27_spill] sm:$0xff] }
 0x2f1   : > { %v10836_v48 = vsel %vm10833_vm0, %v10834_v4, %v10835_v42  ;;  %v3085_v54 = vsub.f32 1.0, %v10839_v44  ;;  %v3175_v23 = vsub.f32 1.0, %v3174_v18  ;;  %4814 = vrcp.f32 %v9099_v63  ;;  %3530 = vmatpush.msra.mxu2 %v3408_v33  ;;  %v10844_v18 = vld [vmem:[#allocation88_spill] sm:$0xff] }
 0x2f2   : > { %v2226_v47 = vsel %vm10838_vm4, %v10837_v49, %v10836_v48  ;;  %v3406_v51 = vmul.f32 %v2451_v26, %v10841_v14  ;;  %v3393_v10 = vmul.f32 %v2256_v22, %v10842_v19  ;;  %v3116_v41 = vmul.f32 %v10843_v6, %v3115_v16  ;;  %3599 = vmatpush.msrb.mxu3 %v3395_v12  ;;  %v9162_v60 = vpop.eup %4808  ;;  %v10847_v16 = vld [vmem:[#allocation91_spill] sm:$0xff]  ;;  %v9205_v42 = vld [vmem:[%s10084_s2 + $0x40] sm:$0xff]  ;;  %v10859_v26 = vld [vmem:[#allocation41_spill] sm:$0xff] }
 0x2f3   : > { %v3404_v25 = vmul.f32 %v2421_v52, %v10844_v18  ;;  %v9167_v29 = vadd.f32 %v10846_v39, %v10845_v45  ;;  %v3146_v2 = vmul.f32 %v8827_v57, %v3145_v40  ;;  %v9172_v31 = vpop.eup %4810  ;;  %v3391_v8 = vmul.f32 %v2226_v47, %v10847_v16  ;;  %v10850_v22 = vld [vmem:[#allocation7_spill] sm:$0xff]  ;;  %v10852_v44 = vld [vmem:[#allocation104_spill] sm:$0xff]  ;;  %v10856_v16 = vld [vmem:[#allocation89_spill] sm:$0xff]  ;;  %3488 = vmatmul.f32.gmra.mxu2 %v9205_v42 }
 0x2f4   : > { %v3324_v50 = vmul.f32 %v9162_v60, %v9080_v20  ;;  %3600 = vmatpush.msrb.mxu3 %v3393_v10  ;;  %3531 = vmatpush.msra.mxu2 %v3406_v51  ;;  %v9179_v27 = vpop.eup %4812  ;;  %v9182_v7 = vmul.f32 %v10849_v32, %v3085_v54  ;;  %v3176_v53 = vmul.f32 %v10807_v38, %v3175_v23  ;;  %v4224_v52 = vmul.f32 -1.442695, %v10851_v46  ;;  %v10853_v23 = vld [vmem:[#allocation53_spill] sm:$0xff]  ;;  %v10854_v14 = vld [vmem:[#allocation63_spill] sm:$0xff]  ;;  %v10874_v48 = vld [vmem:[#allocation74_spill] sm:$0xff] }
 0x2f5   : > { %v3294_v17 = vmul.f32 %v9154_v43, %v9032_v9  ;;  %v9189_v34 = vadd.f32 %v10843_v6, %v3116_v41  ;;  %v9196_v21 = vadd.f32 %v8827_v57, %v3146_v2  ;;  %v3264_v4 = vmul.f32 %v9172_v31, %v9067_v35  ;;  %v9217_v51 = vld [vmem:[%s10084_s2 + $0x18] sm:$0xff]  ;;  %v10867_v40 = vld [vmem:[#allocation17_spill] sm:$0xff] }
 0x2f6   : > { %v3325_v58 = vsub.f32 1.0, %v3324_v50  ;;  %3601 = vmatpush.msrb.mxu3 %v3391_v8  ;;  %3532 = vmatpush.msra.mxu2 %v3404_v25  ;;  %v3184_v49 = vand.u32 2147483648, %v10806_v61  ;;  %v3234_v47 = vmul.f32 %v9179_v27, %v9077_v30  ;;  %v4226_v54 = vmul.f32 -1.442695, %v10852_v44  ;;  %v10855_v25 = vld [vmem:[#allocation54_spill] sm:$0xff] }
 0x2f7   : > { %v9193_v33 = vpop.eup %4814  ;;  %v9220_v19 = vadd.f32 %v10807_v38, %v3176_v53  ;;  %v3295_v10 = vsub.f32 1.0, %v3294_v17  ;;  %v4228_v18 = vmul.f32 -1.442695, %v8946_v11  ;;  %v3212_v2 = vand.u32 2147483647, %v9099_v63  ;;  %3560 = vmatmul.f32.vlgmr.msra.gmra.mxu3 %v9217_v51 }
 0x2f8   : > { %3602 = vmatpush.msrb.mxu3 %v10853_v23  ;;  %3533 = vmatpush.msra.mxu2 %v10854_v14  ;;  %v3326_v41 = vmul.f32 %v9162_v60, %v3325_v58  ;;  %v3204_v45 = vmul.f32 %v9193_v33, %v9099_v63  ;;  %4816 = vpow2.f32 %v4224_v52  ;;  %v4232_v8 = vmul.f32 -1.442695, %v9160_v24  ;;  %v9230_v50 = vpop.f32.mrf.mxu1  ;;  %v10857_v58 = vld [vmem:[#allocation46_spill] sm:$0xff] }
 0x2f9   : > { %vm3238_vm15 = vweird.f32 %v9077_v30  ;;  %v3265_v53 = vsub.f32 1.0, %v3264_v4  ;;  %vm3328_vm14 = vweird.f32 %v9080_v20  ;;  %vm3329_vm10 = vweird.f32 %v9162_v60  ;;  %v10858_v14 = vld [vmem:[#allocation86_spill] sm:$0xff] }
 0x2fa   : > { %3570 = vmatpush.msrb.mxu2 %v10855_v25  ;;  %3603 = vmatpush.msrb.mxu3 %v10856_v16  ;;  %v4234_v17 = vmul.f32 -1.442695, %v9230_v50  ;;  %vm3208_vm1 = vweird.f32 %v9099_v63  ;;  %vm3209_vm8 = vweird.f32 %v9193_v33  ;;  %v3235_v52 = vsub.f32 1.0, %v3234_v47  ;;  %vm9253_vm6 = vmor %vm3328_vm14, %vm3329_vm10 }
 0x2fb   : > { %v3242_v23 = vand.u32 2147483647, %v9077_v30  ;;  %4818 = vpow2.f32 %v4226_v54  ;;  %v3334_v4 = vand.u32 2147483648, %v9080_v20  ;;  %v3296_v25 = vmul.f32 %v9154_v43, %v3295_v10  ;;  %v10862_v10 = vld [vmem:[#allocation84_spill] sm:$0xff] }
 0x2fc   : > { %3571 = vmatpush.msrb.mxu2 %v10857_v58  ;;  %3604 = vmatpush.msrb.mxu3 %v10858_v14  ;;  %v3327_v16 = vadd.f32 %v9162_v60, %v3326_v41  ;;  %v3332_v58 = vand.u32 2147483647, %v9080_v20  ;;  %4820 = vpow2.f32 %v4228_v18  ;;  %v3205_v59 = vsub.f32 1.0, %v3204_v45  ;;  %v10863_v20 = vld [vmem:[#allocation22_spill] sm:$0xff]  ;;  %v10864_v14 = vld [vmem:[#allocation80_spill] sm:$0xff] }
 0x2fd   : > { %vm3268_vm7 = vweird.f32 %v9067_v35  ;;  %v4230_v54 = vmul.f32 -1.442695, %v9069_v13  ;;  %4822 = vpow2.f32 %v4232_v8  ;;  %vm3178_vm9 = vweird.f32 %v10806_v61  ;;  %v9268_v41 = vld [vmem:[%s10084_s2 + $0x10] sm:$0xff] }
 0x2fe   : > { %3572 = vmatpush.msrb.mxu2 %v10859_v26  ;;  %3605 = vmatpush.msrb.mxu3 %v10862_v10  ;;  %vm3179_vm2 = vweird.f32 %v10807_v38  ;;  %v3266_v26 = vmul.f32 %v9172_v31, %v3265_v53  ;;  %vm3298_vm5 = vweird.f32 %v9032_v9  ;;  %vm3299_vm11 = vweird.f32 %v9154_v43  ;;  %v4817_v18 = vpop.eup %4816 }
 0x2ff   : > { %4824 = vpow2.f32 %v4234_v17  ;;  %v3236_v45 = vmul.f32 %v9179_v27, %v3235_v52  ;;  %vm3269_vm3 = vweird.f32 %v9172_v31  ;;  %v3304_v8 = vand.u32 2147483648, %v9032_v9  ;;  %vm9295_vm10 = vmor %vm3298_vm5, %vm3299_vm11  ;;  %3534 = vmatmul.f32.vlgmr.msra.gmra.mxu2 %v9268_v41  ;;  %3563 = vmatmul.f32.gmra.mxu3 %v9376_v28 }
 0x300   : > { %3573 = vmatpush.msrb.mxu2 %v10863_v20  ;;  %v3335_v53 = vor.u32 1.1754944e-38, %v3334_v4  ;;  %3606 = vmatpush.msrb.mxu3 %v10864_v14  ;;  %vm3148_vm13 = vweird.f32 %v8747_v36  ;;  %vm3149_vm12 = vweird.f32 %v8827_v57  ;;  %v3297_v17 = vadd.f32 %v9154_v43, %v3296_v25  ;;  %vm9315_vm5 = vmor %vm3268_vm7, %vm3269_vm3 }
 0x301   : > { %v3302_v10 = vand.u32 2147483647, %v9032_v9  ;;  %v3331_v20 = vsel %vm9253_vm6, %v9162_v60, %v3327_v16  ;;  %vm9281_vm0 = vcmp.eq.f32.partialorder %v3332_v58, 8.507059e+37  ;;  %v4819_v4 = vpop.eup %4818  ;;  %v3206_v14 = vmul.f32 %v9193_v33, %v3205_v59  ;;  %v9300_v16 = vpop.f32.mrf.mxu1 }
 0x302   : > { %3574 = vmatpush.msrb.mxu2 %v10867_v40  ;;  %v3244_v25 = vand.u32 2147483648, %v9077_v30  ;;  %v3274_v3 = vand.u32 2147483648, %v9067_v35  ;;  %4826 = vpow2.f32 %v4230_v54  ;;  %v10870_v40 = vld [vmem:[#allocation77_spill] sm:$0xff]  ;;  %v4821_v59 = vpop.eup %4820  ;;  %vm3119_vm4 = vweird.f32 %v10843_v6  ;;  %v10871_v54 = vld [vmem:[#allocation35_spill] sm:$0xff] }
 0x303   : > { %3607 = vmatpush.msrb.mxu3 %v10870_v40  ;;  %vm3239_vm14 = vweird.f32 %v9179_v27  ;;  %v3267_v9 = vadd.f32 %v9172_v31, %v3266_v26  ;;  %v3272_v58 = vand.u32 2147483647, %v9067_v35  ;;  %v4236_v47 = vmul.f32 -1.442695, %v9300_v16  ;;  %v4823_v40 = vpop.eup %4822 }
 0x304   : > { %3575 = vmatpush.msrb.mxu2 %v10871_v54  ;;  %v3237_v37 = vadd.f32 %v9179_v27, %v3236_v45  ;;  %v9319_v12 = vadd.f32 1.0, %v4817_v18  ;;  %v3305_v26 = vor.u32 1.1754944e-38, %v3304_v8  ;;  %v3336_v1 = vsel %vm9281_vm0, %v3335_v53, %v3331_v20  ;;  %v10877_v8 = vld [vmem:[#allocation18_spill] sm:$0xff]  ;;  %vm9342_vm3 = vmor %vm3238_vm15, %vm3239_vm14 }
 0x305   : > { %3608 = vmatpush.msrb.mxu3 %v10874_v48  ;;  %v4825_v54 = vpop.eup %4824  ;;  %vm3088_vm11 = vweird.f32 %v10848_v55  ;;  %vm3089_vm6 = vweird.f32 %v10849_v32  ;;  %v3301_v35 = vsel %vm9295_vm10, %v9154_v43, %v3297_v17  ;;  %vm9329_vm7 = vcmp.eq.f32.partialorder %v3302_v10, 8.507059e+37  ;;  %v10880_v10 = vld [vmem:[#allocation69_spill] sm:$0xff]  ;;  %vm9353_vm0 = vmor %vm3208_vm1, %vm3209_vm8 }
 0x306   : > { %v9333_v18 = vadd.f32 1.0, %v4819_v4  ;;  %4828 = vpow2.f32 %v4236_v47  ;;  %3576 = vmatpush.msrb.mxu2 %v10877_v8  ;;  %v3207_v48 = vadd.f32 %v9193_v33, %v3206_v14  ;;  %v3214_v53 = vand.u32 2147483648, %v9099_v63  ;;  %v10886_v47 = vld [vmem:[#allocation14_spill] sm:$0xff]  ;;  %vm9406_vm14 = vmor %vm3178_vm9, %vm3179_vm2 }
 0x307   : > { %v3275_v43 = vor.u32 1.1754944e-38, %v3274_v3  ;;  %v9346_v17 = vadd.f32 1.0, %v4821_v59  ;;  %3609 = vmatpush.msrb.mxu3 %v10880_v10  ;;  %v3271_v4 = vsel %vm9315_vm5, %v9172_v31, %v3267_v9  ;;  %vm9360_vm15 = vcmp.eq.f32.partialorder %v3272_v58, 8.507059e+37  ;;  %v10885_v3 = vld [vmem:[#allocation75_spill] sm:$0xff]  ;;  %v9371_v8 = vld [vmem:[%s10084_s2 + $0x30] sm:$0xff]  ;;  %vm9430_vm9 = vmor %vm3148_vm13, %vm3149_vm12 }
 0x308   : > { %v3465_v60 = vmul.f32 %v3336_v1, %v10885_v3  ;;  %v9365_v59 = vadd.f32 1.0, %v4823_v40  ;;  %3577 = vmatpush.msrb.mxu2 %v10886_v47  ;;  %v4827_v31 = vpop.eup %4826  ;;  %v3245_v9 = vor.u32 1.1754944e-38, %v3244_v25  ;;  %4830 = vrcp.f32 %v9319_v12  ;;  %v10887_v40 = vld [vmem:[#allocation65_spill] sm:$0xff]  ;;  %v10917_v10 = vld [vmem:[#allocation36_spill] sm:$0xff] }
 0x309   : > { %v3306_v1 = vsel %vm9329_vm7, %v3305_v26, %v3301_v35  ;;  %v9381_v58 = vadd.f32 1.0, %v4825_v54  ;;  %3610 = vmatpush.msrb.mxu3 %v10887_v40  ;;  %vm9386_vm1 = vcmp.eq.f32.partialorder %v3212_v2, 8.507059e+37  ;;  %v3241_v3 = vsel %vm9342_vm3, %v9179_v27, %v3237_v37  ;;  %v10892_v26 = vld [vmem:[#allocation10_spill] sm:$0xff]  ;;  %v10895_v2 = vld [vmem:[#allocation59_spill] sm:$0xff]  ;;  %3537 = vmatmul.f32.gmra.mxu2 %v9371_v8  ;;  %v10928_v47 = vld [vmem:[#allocation25_spill] sm:$0xff] }
 0x30a   : > { %vm9395_vm8 = vcmp.eq.f32.partialorder %v3242_v23, 8.507059e+37  ;;  %4832 = vrcp.f32 %v9333_v18  ;;  %3578 = vmatpush.msrb.mxu2 %v10892_v26  ;;  %v3211_v30 = vsel %vm9353_vm0, %v9193_v33, %v3207_v48  ;;  %v3215_v37 = vor.u32 1.1754944e-38, %v3214_v53  ;;  %v9417_v23 = vpop.f32.mrf.mxu1  ;;  %v10896_v35 = vld [vmem:[#allocation103_spill] sm:$0xff]  ;;  %v10897_v48 = vld [vmem:[#allocation24_spill] sm:$0xff]  ;;  %vm9517_vm0 = vmor %vm3088_vm11, %vm3089_vm6 }
 0x30b   : > { %v3276_v27 = vsel %vm9360_vm15, %v3275_v43, %v3271_v4  ;;  %4834 = vrcp.f32 %v9346_v17  ;;  %3611 = vmatpush.msrb.mxu3 %v10895_v2  ;;  %v3463_v45 = vmul.f32 %v3306_v1, %v10896_v35  ;;  %v9421_v20 = vadd.f32 1.0, %v4827_v31  ;;  %v10907_v31 = vld [vmem:[#allocation8_spill] sm:$0xff]  ;;  %v10908_v1 = vld [vmem:[#allocation37_spill] sm:$0xff]  ;;  %v10916_v2 = vld [vmem:[#allocation11_spill] sm:$0xff] }
 0x30c   : > { %v4829_v54 = vpop.eup %4828  ;;  %4836 = vrcp.f32 %v9365_v59  ;;  %v4238_v33 = vmul.f32 -1.442695, %v9417_v23  ;;  %3579 = vmatpush.msrb.mxu2 %v10897_v48  ;;  %v3185_v43 = vor.u32 1.1754944e-38, %v3184_v49  ;;  %v3246_v52 = vsel %vm9395_vm8, %v3245_v9, %v3241_v3 }
 0x30d   : > { %3648 = vmatpush.msra.mxu3 %v3465_v60  ;;  %4838 = vrcp.f32 %v9381_v58  ;;  %v9439_v4 = vadd.f32 1.0, %v4829_v54  ;;  %vm10900_vm2 = vweird.f32 %v10846_v39  ;;  %vm10901_vm10 = vweird.f32 %v10840_v0 }
 0x30e   : > { %vm9445_vm5 = vmor %vm10901_vm10, %vm10900_vm2  ;;  %v3181_v49 = vsel %vm9406_vm14, %v10807_v38, %v9220_v19  ;;  %v10904_v60 = vand.u32 2147483647, %v10806_v61  ;;  %v3461_v9 = vmul.f32 %v3276_v27, %v10907_v31  ;;  %4840 = vpow2.f32 %v4238_v33  ;;  %3580 = vmatpush.msrb.mxu2 %v10908_v1  ;;  %v9461_v40 = vpop.eup %4830 }
 0x30f   : > { %3649 = vmatpush.msra.mxu3 %v3463_v45  ;;  %v3087_v3 = vadd.f32 %v10849_v32, %v9182_v7  ;;  %vm10909_vm12 = vweird.f32 %v10850_v22  ;;  %v10912_v38 = vand.u32 2147483648, %v8747_v36  ;;  %v3216_v25 = vsel %vm9386_vm1, %v3215_v37, %v3211_v30  ;;  %v9496_v30 = vld [vmem:[%s10084_s2 + $0x50] sm:$0xff]  ;;  %v10937_v37 = vld [vmem:[#allocation32_spill] sm:$0xff] }
 0x310   : > { %vm9455_vm13 = vcmp.eq.f32.partialorder %v10904_v60, 8.507059e+37  ;;  %vm9469_vm7 = vmor %vm10909_vm12, %vm3119_vm4  ;;  %4842 = vrcp.f32 %v9439_v4  ;;  %v9478_v26 = vpop.eup %4832  ;;  %v3151_v7 = vsel %vm9430_vm9, %v8827_v57, %v9196_v21  ;;  %v10913_v63 = vand.u32 2147483647, %v8747_v36  ;;  %3581 = vmatpush.msrb.mxu2 %v10917_v10  ;;  %v9501_v36 = vld [vmem:[%s10084_s2 + $0x58] sm:$0xff] }
 0x311   : > { %v3155_v19 = vor.u32 1.1754944e-38, %v10912_v38  ;;  %v3459_v54 = vmul.f32 %v3246_v52, %v10916_v2  ;;  %4844 = vrcp.f32 %v9421_v20  ;;  %3650 = vmatpush.msra.mxu3 %v3461_v9  ;;  %v9503_v57 = vpop.eup %4834  ;;  %v10918_v21 = vand.u32 2147483647, %v10840_v0  ;;  %3540 = vmatmul.f32.gmra.mxu2 %v9496_v30  ;;  %v10935_v2 = vld [vmem:[#allocation33_spill] sm:$0xff] }
 0x312   : > { %vm9486_vm4 = vcmp.eq.f32.partialorder %v10913_v63, 8.507059e+37  ;;  %v10921_v35 = vand.u32 2147483648, %v10840_v0  ;;  %v10924_v48 = vand.u32 2147483648, %v10850_v22  ;;  %v3186_v52 = vsel %vm9455_vm13, %v3185_v43, %v3181_v49  ;;  %v9525_v60 = vpop.eup %4836  ;;  %v10929_v49 = vld [vmem:[#allocation34_spill] sm:$0xff]  ;;  %3566 = vmatmul.f32.gmra.mxu3 %v9501_v36 }
 0x313   : > { %vm9507_vm3 = vcmp.eq.f32.partialorder %v10918_v21, 8.507059e+37  ;;  %v3061_v0 = vsel %vm9445_vm5, %v10846_v39, %v9167_v29  ;;  %v3121_v31 = vsel %vm9469_vm7, %v10843_v6, %v9189_v34  ;;  %v10925_v9 = vand.u32 2147483647, %v10850_v22  ;;  %3651 = vmatpush.msra.mxu3 %v3459_v54  ;;  %3582 = vmatpush.msrb.mxu2 %v10929_v49  ;;  %v9543_v38 = vpop.eup %4838 }
 0x314   : > { %v3065_v45 = vor.u32 1.1754944e-38, %v10921_v35  ;;  %v3125_v53 = vor.u32 1.1754944e-38, %v10924_v48  ;;  %v3457_v43 = vmul.f32 %v3216_v25, %v10928_v47  ;;  %v10930_v39 = vand.u32 2147483648, %v10848_v55  ;;  %v4841_v34 = vpop.eup %4840  ;;  %v10936_v35 = vld [vmem:[#allocation29_spill] sm:$0xff]  ;;  %v10940_v47 = vld [vmem:[#allocation39_spill] sm:$0xff] }
 0x315   : > { %vm9537_vm6 = vcmp.eq.f32.partialorder %v10925_v9, 8.507059e+37  ;;  %v3156_v14 = vsel %vm9486_vm4, %v3155_v19, %v3151_v7  ;;  %v2394_v6 = vmul.f32 %v9461_v40, %v9319_v12  ;;  %v2424_v22 = vmul.f32 %v9478_v26, %v9333_v18  ;;  %v10934_v19 = vld [vmem:[#allocation100_spill] sm:$0xff]  ;;  %3583 = vmatpush.msrb.mxu2 %v10935_v2  ;;  %v10939_v9 = vld [vmem:[#allocation83_spill] sm:$0xff]  ;;  %v10947_v2 = vld [vmem:[#allocation81_spill] sm:$0xff] }
 0x316   : > { %v3095_v29 = vor.u32 1.1754944e-38, %v10930_v39  ;;  %v3091_v61 = vsel %vm9517_vm0, %v10849_v32, %v3087_v3  ;;  %v10931_v25 = vand.u32 2147483647, %v10848_v55  ;;  %v3455_v7 = vmul.f32 %v3186_v52, %v10934_v19  ;;  %3652 = vmatpush.msra.mxu3 %v3457_v43  ;;  %v9568_v54 = vpop.eup %4842 }
 0x317   : > { %v2454_v27 = vmul.f32 %v9503_v57, %v9346_v17  ;;  %v3066_v10 = vsel %vm9507_vm3, %v3065_v45, %v3061_v0  ;;  %v3126_v55 = vsel %vm9537_vm6, %v3125_v53, %v3121_v31  ;;  %v2514_v32 = vmul.f32 %v9525_v60, %v9365_v59  ;;  %v9578_v21 = vpop.eup %4844  ;;  %3584 = vmatpush.msrb.mxu2 %v10937_v37  ;;  %v10938_v31 = vld [vmem:[#allocation67_spill] sm:$0xff] }
 0x318   : > { %vm9560_vm11 = vcmp.eq.f32.partialorder %v10931_v25, 8.507059e+37  ;;  %v9576_v3 = vadd.f32 1.0, %v4841_v34  ;;  %v3453_v33 = vmul.f32 %v3156_v14, %v10936_v35  ;;  %v2544_v48 = vmul.f32 %v9543_v38, %v9381_v58  ;;  %3653 = vmatpush.msra.mxu3 %v3455_v7  ;;  %v10941_v14 = vld [vmem:[#allocation31_spill] sm:$0xff]  ;;  %v10942_v34 = vld [vmem:[#allocation72_spill] sm:$0xff]  ;;  %v10943_v25 = vld [vmem:[#allocation85_spill] sm:$0xff] }
 0x319   : > { %v2574_v52 = vmul.f32 %v9568_v54, %v9439_v4  ;;  %v3096_v45 = vsel %vm9560_vm11, %v3095_v29, %v3091_v61  ;;  %v2395_v53 = vsub.f32 1.0, %v2394_v6  ;;  %v2425_v0 = vsub.f32 1.0, %v2424_v22  ;;  %3585 = vmatpush.msrb.mxu2 %v10941_v14  ;;  %v10944_v29 = vld [vmem:[#allocation73_spill] sm:$0xff]  ;;  %v10945_v6 = vld [vmem:[#allocation87_spill] sm:$0xff]  ;;  %v10949_v35 = vld [vmem:[#allocation90_spill] sm:$0xff] }
 0x31a   : > { %4846 = vrcp.f32 %v9576_v3  ;;  %v9591_v1 = vmul.f32 %v10939_v9, %v10938_v31  ;;  %v3451_v43 = vmul.f32 %v3126_v55, %v10940_v47  ;;  %v2455_v49 = vsub.f32 1.0, %v2454_v27  ;;  %3654 = vmatpush.msra.mxu3 %v3453_v33  ;;  %v10946_v7 = vld [vmem:[#allocation71_spill] sm:$0xff]  ;;  %v10948_v55 = vld [vmem:[#allocation93_spill] sm:$0xff]  ;;  %3586 = vmatmul.f32.vlgmr.msrb.gmra.mxu2 %v9042_v62 }
 0x31b   : > { %v2575_v39 = vsub.f32 1.0, %v2574_v52  ;;  %v9597_v19 = vmul.f32 %v10943_v25, %v10942_v34  ;;  %v3443_v22 = vmul.f32 %v10945_v6, %v10944_v29  ;;  %v2484_v61 = vmul.f32 %v9578_v21, %v9421_v20  ;;  %3622 = vmatpush.msra.mxu2 %v10946_v7  ;;  %v10950_v52 = vld [vmem:[#allocation61_spill] sm:$0xff]  ;;  %v10951_v34 = vld [vmem:[#allocation68_spill] sm:$0xff] }
 0x31c   : > { %v2515_v63 = vsub.f32 1.0, %v2514_v32  ;;  %v3445_v27 = vmul.f32 %v10948_v55, %v10947_v2  ;;  %v3447_v33 = vmul.f32 %v3066_v10, %v10949_v35  ;;  %v3449_v37 = vmul.f32 %v3096_v45, %v10950_v52  ;;  %3655 = vmatpush.msra.mxu3 %v3451_v43  ;;  %v10952_v25 = vld [vmem:[#allocation105_spill] sm:$0xff]  ;;  %v10953_v43 = vld [vmem:[#allocation62_spill] sm:$0xff]  ;;  %v10977_v52 = vld [vmem:[#allocation79_spill] sm:$0xff] }
 0x31d   : > { %v2545_v31 = vsub.f32 1.0, %v2544_v48  ;;  %v9609_v9 = vmul.f32 %v9461_v40, %v2395_v53  ;;  %v9612_v47 = vmul.f32 %v9478_v26, %v2425_v0  ;;  %v2462_v14 = vand.u32 2147483647, %v9346_v17  ;;  %3623 = vmatpush.msra.mxu2 %v10951_v34  ;;  %3612 = vmatmul.f32.vlgmr.msrb.gmra.mxu3 %v10952_v25 }
 0x31e   : > { %v2464_v32 = vand.u32 2147483648, %v9346_v17  ;;  %v9619_v10 = vmul.f32 %v9503_v57, %v2455_v49  ;;  %vm2488_vm15 = vweird.f32 %v9421_v20  ;;  %vm2489_vm1 = vweird.f32 %v9578_v21  ;;  %3656 = vmatpush.msra.mxu3 %v3449_v37  ;;  %v10957_v37 = vld [vmem:[#allocation52_spill] sm:$0xff] }
 0x31f   : > { %v2576_v48 = vmul.f32 %v9568_v54, %v2575_v39  ;;  %v2485_v53 = vsub.f32 1.0, %v2484_v61  ;;  %v2516_v0 = vmul.f32 %v9525_v60, %v2515_v63  ;;  %vm2548_vm8 = vweird.f32 %v9381_v58  ;;  %3624 = vmatpush.msra.mxu2 %v10953_v43  ;;  %v10954_v61 = vld [vmem:[#allocation58_spill] sm:$0xff] }
 0x320   : > { %v9625_v45 = vpop.eup %4846  ;;  %vm2549_vm14 = vweird.f32 %v9543_v38  ;;  %vm2458_vm9 = vweird.f32 %v9346_v17  ;;  %v2546_v49 = vmul.f32 %v9543_v38, %v2545_v31  ;;  %vm2578_vm2 = vweird.f32 %v9439_v4  ;;  %3657 = vmatpush.msra.mxu3 %v3447_v33 }
 0x321   : > { %vm2579_vm10 = vweird.f32 %v9568_v54  ;;  %v2604_v62 = vmul.f32 %v9625_v45, %v9576_v3  ;;  %v2582_v39 = vand.u32 2147483647, %v9439_v4  ;;  %v2584_v29 = vand.u32 2147483648, %v9439_v4  ;;  %3625 = vmatpush.msra.mxu2 %v10954_v61  ;;  %vm9667_vm11 = vmor %vm2548_vm8, %vm2549_vm14 }
 0x322   : > { %vm2608_vm5 = vweird.f32 %v9576_v3  ;;  %v2614_v6 = vand.u32 2147483648, %v9576_v3  ;;  %vm2428_vm13 = vweird.f32 %v9333_v18  ;;  %v2577_v63 = vadd.f32 %v9568_v54, %v2576_v48  ;;  %3658 = vmatpush.msra.mxu3 %v3445_v27  ;;  %vm9654_vm4 = vmor %vm2578_vm2, %vm2579_vm10  ;;  %3589 = vmatmul.f32.gmra.mxu2 %v9141_v56 }
 0x323   : > { %v2605_v7 = vsub.f32 1.0, %v2604_v62  ;;  %vm2609_vm12 = vweird.f32 %v9625_v45  ;;  %v2612_v2 = vand.u32 2147483647, %v9576_v3  ;;  %v2486_v55 = vmul.f32 %v9578_v21, %v2485_v53  ;;  %3626 = vmatpush.msra.mxu2 %v10957_v37  ;;  %v10962_v62 = vld [vmem:[#allocation44_spill] sm:$0xff] }
 0x324   : > { %vm2518_vm7 = vweird.f32 %v9365_v59  ;;  %v2522_v35 = vand.u32 2147483647, %v9365_v59  ;;  %v2554_v33 = vand.u32 2147483648, %v9381_v58  ;;  %vm2398_vm3 = vweird.f32 %v9319_v12  ;;  %3659 = vmatpush.msra.mxu3 %v3443_v22  ;;  %vm9679_vm2 = vmor %vm2608_vm5, %vm2609_vm12 }
 0x325   : > { %vm2399_vm0 = vweird.f32 %v9461_v40  ;;  %vm2519_vm6 = vweird.f32 %v9525_v60  ;;  %v2547_v27 = vadd.f32 %v9543_v38, %v2546_v49  ;;  %v2552_v31 = vand.u32 2147483647, %v9381_v58  ;;  %3627 = vmatpush.msra.mxu2 %v10962_v62  ;;  %3615 = vmatmul.f32.gmra.mxu3 %v9037_v5 }
 0x326   : > { %v2606_v34 = vmul.f32 %v9625_v45, %v2605_v7  ;;  %v2517_v25 = vadd.f32 %v9525_v60, %v2516_v0  ;;  %v2524_v48 = vand.u32 2147483648, %v9365_v59  ;;  %v2585_v53 = vor.u32 1.1754944e-38, %v2584_v29  ;;  %3660 = vmatpush.msra.mxu3 %v9597_v19  ;;  %vm9706_vm5 = vmor %vm2518_vm7, %vm2519_vm6 }
 0x327   : > { %v2615_v49 = vor.u32 1.1754944e-38, %v2614_v6  ;;  %v2581_v58 = vsel %vm9654_vm4, %v9568_v54, %v2577_v63  ;;  %vm9688_vm8 = vcmp.eq.f32.partialorder %v2582_v39, 8.507059e+37  ;;  %vm9693_vm14 = vcmp.eq.f32.partialorder %v2612_v2, 8.507059e+37  ;;  %v10969_v6 = vld [vmem:[#allocation40_spill] sm:$0xff]  ;;  %vm9728_vm4 = vmor %vm2488_vm15, %vm2489_vm1 }
 0x328   : > { %v2607_v0 = vadd.f32 %v9625_v45, %v2606_v34  ;;  %vm2459_vm10 = vweird.f32 %v9503_v57  ;;  %v2492_v5 = vand.u32 2147483647, %v9421_v20  ;;  %v2494_v54 = vand.u32 2147483648, %v9421_v20  ;;  %3628 = vmatpush.msra.mxu2 %v10969_v6  ;;  %3661 = vmatpush.msra.mxu3 %v9591_v1 }
 0x329   : > { %v2555_v29 = vor.u32 1.1754944e-38, %v2554_v33  ;;  %v2487_v19 = vadd.f32 %v9578_v21, %v2486_v55  ;;  %v2551_v56 = vsel %vm9667_vm11, %v9543_v38, %v2547_v27  ;;  %vm9715_vm12 = vcmp.eq.f32.partialorder %v2552_v31, 8.507059e+37  ;;  %vm9754_vm1 = vmor %vm2458_vm9, %vm2459_vm10 }
 0x32a   : > { %v2611_v59 = vsel %vm9679_vm2, %v9625_v45, %v2607_v0  ;;  %vm2429_vm7 = vweird.f32 %v9478_v26  ;;  %v2525_v38 = vor.u32 1.1754944e-38, %v2524_v48  ;;  %v2586_v7 = vsel %vm9688_vm8, %v2585_v53, %v2581_v58  ;;  %v10974_v45 = vld [vmem:[#allocation28_spill] sm:$0xff]  ;;  %3662 = vmatpush.msra.mxu3 %v10977_v52  ;;  %vm9798_vm11 = vmor %vm2398_vm3, %vm2399_vm0  ;;  %3592 = vmatmul.f32.gmra.mxu2 %v9205_v42 }
 0x32b   : > { %v2616_v2 = vsel %vm9693_vm14, %v2615_v49, %v2611_v59  ;;  %3629 = vmatpush.msra.mxu2 %v10974_v45  ;;  %v2457_v1 = vadd.f32 %v9503_v57, %v9619_v10  ;;  %v2521_v20 = vsel %vm9706_vm5, %v9525_v60, %v2517_v25  ;;  %vm9742_vm15 = vcmp.eq.f32.partialorder %v2522_v35, 8.507059e+37  ;;  %v10982_v25 = vld [vmem:[#allocation76_spill] sm:$0xff]  ;;  %vm9777_vm9 = vmor %vm2428_vm13, %vm2429_vm7 }
 0x32c   : > { %v3417_v33 = vmul.f32 %v2616_v2, %v9417_v23  ;;  %v2432_v37 = vand.u32 2147483647, %v9333_v18  ;;  %v2434_v27 = vand.u32 2147483648, %v9333_v18  ;;  %v2495_v60 = vor.u32 1.1754944e-38, %v2494_v54  ;;  %3663 = vmatpush.msra.mxu3 %v10982_v25 }
 0x32d   : > { %v2556_v35 = vsel %vm9715_vm12, %v2555_v29, %v2551_v56  ;;  %v2427_v23 = vadd.f32 %v9478_v26, %v9612_v47  ;;  %v2491_v4 = vsel %vm9728_vm4, %v9578_v21, %v2487_v19  ;;  %vm9765_vm6 = vcmp.eq.f32.partialorder %v2492_v5, 8.507059e+37  ;;  %3618 = vmatmul.f32.gmra.mxu3 %v9136_v15 }
 0x32e   : > { %v3415_v34 = vmul.f32 %v2586_v7, %v9300_v16  ;;  %3630 = vmatpush.msra.mxu2 %v3417_v33  ;;  %v2402_v48 = vand.u32 2147483647, %v9319_v12  ;;  %v2404_v53 = vand.u32 2147483648, %v9319_v12  ;;  %v2465_v21 = vor.u32 1.1754944e-38, %v2464_v32 }
 0x32f   : > { %v2526_v16 = vsel %vm9742_vm15, %v2525_v38, %v2521_v20  ;;  %v2397_v43 = vadd.f32 %v9461_v40, %v9609_v9  ;;  %v2461_v49 = vsel %vm9754_vm1, %v9503_v57, %v2457_v1  ;;  %vm2463_vm13 = vcmp.eq.f32.partialorder %v2462_v14, 8.507059e+37 }
 0x330   : > { %v3413_v18 = vmul.f32 %v2556_v35, %v9230_v50  ;;  %3631 = vmatpush.msra.mxu2 %v3415_v34  ;;  %v2435_v15 = vor.u32 1.1754944e-38, %v2434_v27  ;;  %v2496_v9 = vsel %vm9765_vm6, %v2495_v60, %v2491_v4  ;;  %v2431_v17 = vsel %vm9777_vm9, %v9478_v26, %v2427_v23 }
 0x331   : > { %vm2433_vm2 = vcmp.eq.f32.partialorder %v2432_v37, 8.507059e+37  ;;  %v3411_v50 = vmul.f32 %v2526_v16, %v9160_v24  ;;  %v2405_v57 = vor.u32 1.1754944e-38, %v2404_v53  ;;  %v2466_v12 = vsel %vm2463_vm13, %v2465_v21, %v2461_v49 }
 0x332   : > { %3632 = vmatpush.msra.mxu2 %v3413_v18  ;;  %v2401_v14 = vsel %vm9798_vm11, %v9461_v40, %v2397_v43  ;;  %vm2403_vm3 = vcmp.eq.f32.partialorder %v2402_v48, 8.507059e+37  ;;  %v3409_v62 = vmul.f32 %v2496_v9, %v9069_v13  ;;  %v2436_v58 = vsel %vm2433_vm2, %v2435_v15, %v2431_v17 }
 0x333   : > { %v3407_v42 = vmul.f32 %v2466_v12, %v8946_v11  ;;  %v2406_v22 = vsel %vm2403_vm3, %v2405_v57, %v2401_v14  ;;  %v3405_v24 = vmul.f32 %v2436_v58, %v10852_v44  ;;  %vm3680_vm5 = vcmask 392192  }
 0x334   : > { %3633 = vmatpush.msra.mxu2 %v3411_v50  ;;  %v3403_v26 = vmul.f32 %v2406_v22, %v10851_v46  ;;  %vm3745_vm12 = vcmask 1040384   ;;  %vm3747_vm7 = vcmask 1041409   ;;  %vm3750_vm4 = vcmask 1042434  }
 0x335   : > { %3664 = vmatmul.f32.vlgmr.msra.gmra.mxu3 %v9217_v51  ;;  %vm3753_vm15 = vcmask 1043459   ;;  %vm3756_vm1 = vcmask 1044484   ;;  %vm3759_vm6 = vcmask 1045509   ;;  %vm3762_vm9 = vcmask 1046534  }
 0x336   : > { %3634 = vmatpush.msra.mxu2 %v3409_v62  ;;  %vm3765_vm13 = vcmask 1046528  }
 0x338   : > { %3635 = vmatpush.msra.mxu2 %v3407_v42 }
 0x33a   : > { %3636 = vmatpush.msra.mxu2 %v3405_v24 }
 0x33c   : > { %3637 = vmatpush.msra.mxu2 %v3403_v26 }
 0x33d   : > { %3638 = vmatmul.f32.vlgmr.msra.gmra.mxu2 %v9268_v41  ;;  %3667 = vmatmul.f32.gmra.mxu3 %v9376_v28 }
 0x345   : > { %3641 = vmatmul.f32.gmra.mxu2 %v9371_v8  ;;  %3670 = vmatmul.f32.gmra.mxu3 %v9501_v36 }
 0x34d   : > { %3644 = vmatmul.f32.gmra.mxu2 %v9496_v30 }
 0x354   : > { %v3509_v11 = vpop.f32.mrf.mxu3 }
 0x359   : > { %v3483_v13 = vpop.f32.mrf.mxu2 }
 0x35a   : > { %v3510_v5 = vadd.f32 %v3509_v11, %v3483_v13 }
 0x368   : > { %v3512_v51 = vpop.f32.mrf.mxu3 }
 0x36e   : > { %v3486_v40 = vpop.f32.mrf.mxu2 }
 0x36f   : > { %v3513_v44 = vadd.f32 %v3512_v51, %v3486_v40 }
 0x370   : > { %v3515_v0 = vpop.f32.mrf.mxu3 }
 0x376   : > { %v3489_v3 = vpop.f32.mrf.mxu2 }
 0x377   : > { %v3516_v46 = vadd.f32 %v3515_v0, %v3489_v3 }
 0x37a   : > { %v3561_v39 = vpop.f32.mrf.mxu3 }
 0x382   : > { %v3535_v54 = vpop.f32.mrf.mxu2  ;;  %v3564_v63 = vpop.f32.mrf.mxu3 }
 0x383   : > { %v3536_v41 = vadd.f32 %v3535_v54, %v3510_v5 }
 0x385   : > { %v3562_v29 = vadd.f32 %v3561_v39, %v3536_v41 }
 0x387   : > { %v3674_v28 = vrot.slane %v3562_v29, 4 }
 0x389   : > { %v3675_v6 = vmax.f32 %v3562_v29, %v3674_v28 }
 0x38b   : > { %v3676_v8 = vrot.slane %v3675_v6, 2 }
 0x38c   : > { %v3538_v59 = vpop.f32.mrf.mxu2 }
 0x38d   : > { %v3677_v19 = vmax.f32 %v3675_v6, %v3676_v8  ;;  %v3539_v38 = vadd.f32 %v3538_v59, %v3513_v44 }
 0x38f   : > { %v3678_v36 = vrot.slane %v3677_v19, 1  ;;  %v9822_v45 = vadd.f32 %v3564_v63, %v3539_v38 }
 0x391   : > { %v3679_v56 = vmax.f32 %v3677_v19, %v3678_v36 }
 0x393   : > { %v3688_v30 = vsub.f32 %v3562_v29, %v3679_v56 }
 0x394   : > { %v3541_v55 = vpop.f32.mrf.mxu2 }
 0x395   : > { %v3690_v61 = vmul.f32 1.442695, %v3688_v30  ;;  %v3567_v33 = vpop.f32.mrf.mxu3  ;;  %v3542_v37 = vadd.f32 %v3541_v55, %v3516_v46 }
 0x397   : > { %4848 = vpow2.f32 %v3690_v61  ;;  %v9824_v10 = vadd.f32 %v3567_v33, %v3542_v37 }
 0x39d   : > { %v4849_v7 = vpop.eup %4848  ;;  %v3587_v35 = vpop.f32.mrf.mxu2 }
 0x39e   : > { %v3694_v2 = vrot.slane %v4849_v7, 4 }
 0x3a0   : > { %v3695_v1 = vadd.f32 %v4849_v7, %v3694_v2  ;;  %v3613_v23 = vpop.f32.mrf.mxu3 }
 0x3a1   : > { %v3614_v17 = vadd.f32 %v3613_v23, %v3587_v35 }
 0x3a2   : > { %v3696_v20 = vrot.slane %v3695_v1, 2 }
 0x3a4   : > { %v3697_v52 = vadd.f32 %v3696_v20, %v3695_v1 }
 0x3a5   : > { %v3590_v25 = vpop.f32.mrf.mxu2 }
 0x3a6   : > { %v3698_v27 = vrot.slane %v3697_v52, 1 }
 0x3a8   : > { %v3699_v60 = vadd.f32 %v3698_v27, %v3697_v52  ;;  %v3616_v48 = vpop.f32.mrf.mxu3 }
 0x3a9   : > { %v3617_v40 = vadd.f32 %v3616_v48, %v3590_v25 }
 0x3aa   : > { %4850 = vrcp.f32 %v3699_v60  ;;  %v3718_v53 = vand.u32 2147483648, %v3699_v60  ;;  %v3716_v21 = vand.u32 2147483647, %v3699_v60  ;;  %vm3712_vm8 = vweird.f32 %v3699_v60 }
 0x3ac   : > { %v3719_v43 = vor.u32 1.1754944e-38, %v3718_v53  ;;  %vm3717_vm10 = vcmp.eq.f32.partialorder %v3716_v21, 8.507059e+37 }
 0x3ad   : > { %v9831_v15 = vpop.f32.mrf.mxu2 }
 0x3b0   : > { %v4851_v4 = vpop.eup %4850  ;;  %v9833_v9 = vpop.f32.mrf.mxu3 }
 0x3b1   : > { %v3708_v31 = vmul.f32 %v4851_v4, %v3699_v60  ;;  %vm3713_vm0 = vweird.f32 %v4851_v4  ;;  %v3620_v48 = vadd.f32 %v9833_v9, %v9831_v15 }
 0x3b2   : > { %vm3714_vm14 = vmor %vm3712_vm8, %vm3713_vm0 }
 0x3b3   : > { %v3709_v34 = vsub.f32 1.0, %v3708_v31 }
 0x3b5   : > { %v3710_v47 = vmul.f32 %v4851_v4, %v3709_v34 }
 0x3b7   : > { %v3711_v16 = vadd.f32 %v4851_v4, %v3710_v47 }
 0x3b8   : > { %v3665_v57 = vpop.f32.mrf.mxu3 }
 0x3b9   : > { %v3715_v49 = vsel %vm3714_vm14, %v4851_v4, %v3711_v16 }
 0x3ba   : > { %v3720_v18 = vsel %vm3717_vm10, %v3719_v43, %v3715_v49 }
 0x3bb   : > { %v9829_v32 = vmul.f32 %v4849_v7, %v3720_v18 }
 0x3bd   : > { %3737 = vst [vmem:[%s9835_s28] sm:$0xff] %v9829_v32 }
 0x3c0   : > { %v3639_v50 = vpop.f32.mrf.mxu2  ;;  %v3668_v0 = vpop.f32.mrf.mxu3 }
 0x3c1   : > { %v3640_v12 = vadd.f32 %v3639_v50, %v3614_v17 }
 0x3c3   : > { %v3666_v14 = vadd.f32 %v3665_v57, %v3640_v12 }
 0x3c5   : > { %v3681_v62 = vsel %vm3680_vm5, %v3666_v14, -inf }
 0x3c6   : > { %v3682_v58 = vrot.slane %v3681_v62, 4 }
 0x3c8   : > { %v3683_v42 = vmax.f32 %v3681_v62, %v3682_v58  ;;  %v3642_v44 = vpop.f32.mrf.mxu2  ;;  %v3671_v49 = vpop.f32.mrf.mxu3 }
 0x3c9   : > { %v3643_v46 = vadd.f32 %v3642_v44, %v3617_v40 }
 0x3ca   : > { %v3684_v22 = vrot.slane %v3683_v42, 2 }
 0x3cb   : > { %v3669_v39 = vadd.f32 %v3668_v0, %v3643_v46 }
 0x3cc   : > { %v3685_v24 = vmax.f32 %v3683_v42, %v3684_v22 }
 0x3cd   : > { %v3743_v29 = vrot.slane %v3669_v39, 7 }
 0x3ce   : > { %v3686_v26 = vrot.slane %v3685_v24, 1 }
 0x3cf   : > { %v9846_v6 = vsel %vm3747_vm7, %v9822_v45, %v3743_v29  ;;  %v9850_v8 = vsel %vm3750_vm4, %v9822_v45, %v3743_v29  ;;  %v9854_v19 = vsel %vm3745_vm12, %v9822_v45, %v3743_v29  ;;  %v9858_v36 = vsel %vm3753_vm15, %v9822_v45, %v3743_v29 }
 0x3d0   : > { %v3687_v11 = vmax.f32 %v3685_v24, %v3686_v26  ;;  %v9862_v56 = vsel %vm3756_vm1, %v9822_v45, %v3743_v29  ;;  %v3749_v61 = vrot.slane %v9846_v6, 1  ;;  %v3752_v59 = vrot.slane %v9850_v8, 2  ;;  %v3645_v25 = vpop.f32.mrf.mxu2 }
 0x3d1   : > { %v9868_v63 = vsel %vm3759_vm6, %v9822_v45, %v3743_v29  ;;  %v3755_v38 = vrot.slane %v9858_v36, 3  ;;  %v3758_v7 = vrot.slane %v9862_v56, 4  ;;  %v9874_v2 = vsel %vm3762_vm9, %v9822_v45, %v3743_v29 }
 0x3d2   : > { %v3689_v13 = vsub.f32 %v3666_v14, %v3687_v11  ;;  %v9878_v1 = vsel %vm3765_vm13, %v3743_v29, %v9822_v45  ;;  %v3761_v55 = vrot.slane %v9868_v63, 5  ;;  %v3764_v33 = vrot.slane %v9874_v2, 6 }
 0x3d3   : > { %v3783_v52 = vperm.slane %v9854_v19, 0  ;;  %v3767_v27 = vrot.slane %v9878_v1, 7  ;;  %v3785_v60 = vperm.slane %v3749_v61, 0  ;;  %v3787_v35 = vperm.slane %v3752_v59, 0 }
 0x3d4   : > { %v3692_v51 = vmul.f32 1.442695, %v3689_v13  ;;  %v3789_v45 = vperm.slane %v3755_v38, 0  ;;  %v3791_v23 = vperm.slane %v3758_v7, 0  ;;  %v3793_v4 = vperm.slane %v3761_v55, 0 }
 0x3d5   : > { %v3795_v31 = vperm.slane %v3764_v33, 0  ;;  %v3847_v34 = vmul.f32 %v3783_v52, %v9829_v32  ;;  %v3797_v53 = vperm.slane %v3767_v27, 0  ;;  %v3849_v47 = vmul.f32 %v3785_v60, %v9829_v32 }
 0x3d6   : > { %4852 = vpow2.f32 %v3692_v51  ;;  %v3851_v21 = vmul.f32 %v3787_v35, %v9829_v32  ;;  %v3853_v16 = vmul.f32 %v3789_v45, %v9829_v32  ;;  %v3855_v43 = vmul.f32 %v3791_v23, %v9829_v32 }
 0x3d7   : > { %3879 = vst [vmem:[%s9896_s5] sm:$0xff] %v3847_v34  ;;  %v3857_v18 = vmul.f32 %v3793_v4, %v9829_v32  ;;  %v3646_v15 = vadd.f32 %v3645_v25, %v3620_v48  ;;  %v3859_v9 = vmul.f32 %v3795_v31, %v9829_v32  ;;  %v3861_v50 = vmul.f32 %v3797_v53, %v9829_v32 }
 0x3d8   : > { %3881 = vst [vmem:[%s9896_s5 + $0x10] sm:$0xff] %v3849_v47  ;;  %v3784_v29 = vperm.slane %v9854_v19, 1  ;;  %v3794_v8 = vperm.slane %v3761_v55, 1 }
 0x3d9   : > { %3883 = vst [vmem:[%s9896_s5 + $0x20] sm:$0xff] %v3851_v21  ;;  %v3672_v57 = vadd.f32 %v3671_v49, %v3646_v15 }
 0x3da   : > { %3885 = vst [vmem:[%s9896_s5 + $0x30] sm:$0xff] %v3853_v16 }
 0x3db   : > { %3887 = vst [vmem:[%s9896_s5 + $0x40] sm:$0xff] %v3855_v43  ;;  %v3744_v14 = vrot.slane %v3672_v57, 7 }
 0x3dc   : > { %v9840_v3 = vpop.eup %4852  ;;  %3889 = vst [vmem:[%s9896_s5 + $0x50] sm:$0xff] %v3857_v18 }
 0x3dd   : > { %v3700_v5 = vsel %vm3680_vm5, %v9840_v3, 0.0  ;;  %3891 = vst [vmem:[%s9896_s5 + $0x60] sm:$0xff] %v3859_v9  ;;  %v9925_v42 = vsel %vm3745_vm12, %v9824_v10, %v3744_v14  ;;  %v9929_v22 = vsel %vm3747_vm7, %v9824_v10, %v3744_v14  ;;  %v9933_v24 = vsel %vm3750_vm4, %v9824_v10, %v3744_v14 }
 0x3de   : > { %v3701_v54 = vrot.slane %v3700_v5, 4  ;;  %3893 = vst [vmem:[%s9896_s5 + $0x70] sm:$0xff] %v3861_v50  ;;  %v9937_v26 = vsel %vm3753_vm15, %v9824_v10, %v3744_v14  ;;  %v9944_v51 = vsel %vm3756_vm1, %v9824_v10, %v3744_v14  ;;  %v9948_v40 = vsel %vm3759_vm6, %v9824_v10, %v3744_v14 }
 0x3df   : > { %v9952_v44 = vsel %vm3762_vm9, %v9824_v10, %v3744_v14  ;;  %v9956_v0 = vsel %vm3765_vm13, %v3744_v14, %v9824_v10  ;;  %v3786_v10 = vperm.slane %v3749_v61, 1  ;;  %v3770_v6 = vrot.slane %v9929_v22, 1 }
 0x3e0   : > { %v3702_v41 = vadd.f32 %v3701_v54, %v3700_v5 }
 0x3e2   : > { %v3703_v28 = vrot.slane %v3702_v41, 2 }
 0x3e4   : > { %v3704_v30 = vadd.f32 %v3703_v28, %v3702_v41  ;;  %v3788_v28 = vperm.slane %v3752_v59, 1 }
 0x3e6   : > { %v3705_v20 = vrot.slane %v3704_v30, 1 }
 0x3e8   : > { %v3706_v37 = vadd.f32 %v3705_v20, %v3704_v30  ;;  %v3790_v30 = vperm.slane %v3755_v38, 1  ;;  %v3792_v20 = vperm.slane %v3758_v7, 1 }
 0x3ea   : > { %4854 = vrcp.f32 %v3706_v37  ;;  %v3733_v58 = vand.u32 2147483648, %v3706_v37  ;;  %v3731_v13 = vand.u32 2147483647, %v3706_v37  ;;  %vm3727_vm2 = vweird.f32 %v3706_v37 }
 0x3ec   : > { %v3734_v5 = vor.u32 1.1754944e-38, %v3733_v58  ;;  %vm3732_vm0 = vcmp.eq.f32.partialorder %v3731_v13, 8.507059e+37 }
 0x3f0   : > { %v4855_v17 = vpop.eup %4854 }
 0x3f1   : > { %v3723_v12 = vmul.f32 %v4855_v17, %v3706_v37  ;;  %vm3728_vm11 = vweird.f32 %v4855_v17 }
 0x3f2   : > { %vm3729_vm3 = vmor %vm3727_vm2, %vm3728_vm11 }
 0x3f3   : > { %v3724_v62 = vsub.f32 1.0, %v3723_v12 }
 0x3f5   : > { %v3725_v11 = vmul.f32 %v4855_v17, %v3724_v62 }
 0x3f7   : > { %v3726_v46 = vadd.f32 %v4855_v17, %v3725_v11 }
 0x3f9   : > { %v3730_v54 = vsel %vm3729_vm3, %v4855_v17, %v3726_v46 }
 0x3fa   : > { %v3735_v39 = vsel %vm3732_vm0, %v3734_v5, %v3730_v54 }
 0x3fb   : > { %v9960_v41 = vmul.f32 %v9840_v3, %v3735_v39 }
 0x3fd   : > { %v3848_v3 = vmul.f32 %v3784_v29, %v9960_v41  ;;  %v3850_v52 = vmul.f32 %v3786_v10, %v9960_v41  ;;  %v3852_v19 = vmul.f32 %v3788_v28, %v9960_v41  ;;  %3738 = vst.msk [vmem:[%s9835_s28 + $0x8] sm:$0xff] %vm3680_vm5, %v9960_v41  ;;  %v3854_v36 = vmul.f32 %v3790_v30, %v9960_v41 }
 0x3fe   : > { %4884 = shalt.err (!%p4881_p3)
}
 0x3ff   : > { %4297 = dma.vmem_to_hbm [thread:$0]  (%p4984_p5), %s3931_s9, 256, %s3933_s10, %s3912_s11   ;;  %v3796_v56 = vperm.slane %v3764_v33, 1  ;;  %v3856_v61 = vmul.f32 %v3792_v20, %v9960_v41  ;;  %3880 = vst.msk [vmem:[%s9896_s5 + $0x8] sm:$0xff] %vm3680_vm5, %v3848_v3  ;;  %v3772_v59 = vrot.slane %v9933_v24, 2  ;;  %v3799_v63 = vperm.slane %v9925_v42, 0 }
 0x400   : > { %v3798_v38 = vperm.slane %v3767_v27, 1  ;;  %v3858_v7 = vmul.f32 %v3794_v8, %v9960_v41  ;;  %3882 = vst.msk [vmem:[%s9896_s5 + $0x18] sm:$0xff] %vm3680_vm5, %v3850_v52  ;;  %v3774_v55 = vrot.slane %v9937_v26, 3  ;;  %v3801_v33 = vperm.slane %v3770_v6, 0 }
 0x401   : > { %v3860_v2 = vmul.f32 %v3796_v56, %v9960_v41  ;;  %3884 = vst.msk [vmem:[%s9896_s5 + $0x28] sm:$0xff] %vm3680_vm5, %v3852_v19  ;;  %v3800_v1 = vperm.slane %v9925_v42, 1  ;;  %v3776_v27 = vrot.slane %v9944_v51, 4  ;;  %v3803_v60 = vperm.slane %v3772_v59, 0 }
 0x402   : > { %v3862_v37 = vmul.f32 %v3798_v38, %v9960_v41  ;;  %3886 = vst.msk [vmem:[%s9896_s5 + $0x38] sm:$0xff] %vm3680_vm5, %v3854_v36  ;;  %v3863_v35 = vmul.f32 %v3799_v63, %v9829_v32  ;;  %v3802_v45 = vperm.slane %v3770_v6, 1  ;;  %v3778_v4 = vrot.slane %v9948_v40, 5 }
 0x403   : > { %3888 = vst.msk [vmem:[%s9896_s5 + $0x48] sm:$0xff] %vm3680_vm5, %v3856_v61  ;;  %v3864_v23 = vmul.f32 %v3800_v1, %v9960_v41  ;;  %v3805_v31 = vperm.slane %v3774_v55, 0  ;;  %v3865_v34 = vmul.f32 %v3801_v33, %v9829_v32  ;;  %v3804_v25 = vperm.slane %v3772_v59, 1 }
 0x404   : > { %3890 = vst.msk [vmem:[%s9896_s5 + $0x58] sm:$0xff] %vm3680_vm5, %v3858_v7  ;;  %v3866_v48 = vmul.f32 %v3802_v45, %v9960_v41  ;;  %v3780_v53 = vrot.slane %v9952_v44, 6  ;;  %v3807_v47 = vperm.slane %v3776_v27, 0  ;;  %v3867_v21 = vmul.f32 %v3803_v60, %v9829_v32 }
 0x405   : > { %3892 = vst.msk [vmem:[%s9896_s5 + $0x68] sm:$0xff] %vm3680_vm5, %v3860_v2  ;;  %v3806_v16 = vperm.slane %v3774_v55, 1  ;;  %v3868_v43 = vmul.f32 %v3804_v25, %v9960_v41  ;;  %v3782_v49 = vrot.slane %v9956_v0, 7  ;;  %v3809_v18 = vperm.slane %v3778_v4, 0 }
 0x406   : > { %3894 = vst.msk [vmem:[%s9896_s5 + $0x78] sm:$0xff] %vm3680_vm5, %v3862_v37  ;;  %v3869_v15 = vmul.f32 %v3805_v31, %v9829_v32  ;;  %v3808_v9 = vperm.slane %v3776_v27, 1  ;;  %v3811_v50 = vperm.slane %v3780_v53, 0  ;;  %v3871_v57 = vmul.f32 %v3807_v47, %v9829_v32 }
 0x407   : > { %3895 = vst [vmem:[%s9896_s5 + $0x80] sm:$0xff] %v3863_v35  ;;  %v3870_v17 = vmul.f32 %v3806_v16, %v9960_v41  ;;  %v3810_v12 = vperm.slane %v3778_v4, 1  ;;  %v3813_v62 = vperm.slane %v3782_v49, 0  ;;  %v3873_v58 = vmul.f32 %v3809_v18, %v9829_v32 }
 0x408   : > { %3896 = vst.msk [vmem:[%s9896_s5 + $0x88] sm:$0xff] %vm3680_vm5, %v3864_v23  ;;  %v3872_v14 = vmul.f32 %v3808_v9, %v9960_v41  ;;  %v3812_v42 = vperm.slane %v3780_v53, 1  ;;  %v3875_v24 = vmul.f32 %v3811_v50, %v9829_v32  ;;  %v3814_v26 = vperm.slane %v3782_v49, 1 }
 0x409   : > { %3897 = vst [vmem:[%s9896_s5 + $0x90] sm:$0xff] %v3865_v34  ;;  %v3874_v22 = vmul.f32 %v3810_v12, %v9960_v41  ;;  %v3877_v13 = vmul.f32 %v3813_v62, %v9829_v32 }
 0x40a   : > { %3898 = vst.msk [vmem:[%s9896_s5 + $0x98] sm:$0xff] %vm3680_vm5, %v3866_v48  ;;  %v3876_v11 = vmul.f32 %v3812_v42, %v9960_v41  ;;  %v3878_v51 = vmul.f32 %v3814_v26, %v9960_v41 }
 0x40b   : > { %3899 = vst [vmem:[%s9896_s5 + $0xa0] sm:$0xff] %v3867_v21 }
 0x40c   : > { %3900 = vst.msk [vmem:[%s9896_s5 + $0xa8] sm:$0xff] %vm3680_vm5, %v3868_v43 }
 0x40d   : > { %3901 = vst [vmem:[%s9896_s5 + $0xb0] sm:$0xff] %v3869_v15 }
 0x40e   : > { %3902 = vst.msk [vmem:[%s9896_s5 + $0xb8] sm:$0xff] %vm3680_vm5, %v3870_v17 }
 0x40f   : > { %3903 = vst [vmem:[%s9896_s5 + $0xc0] sm:$0xff] %v3871_v57 }
 0x410   : > { %3904 = vst.msk [vmem:[%s9896_s5 + $0xc8] sm:$0xff] %vm3680_vm5, %v3872_v14 }
 0x411   : > { %3905 = vst [vmem:[%s9896_s5 + $0xd0] sm:$0xff] %v3873_v58 }
 0x412   : > { %3906 = vst.msk [vmem:[%s9896_s5 + $0xd8] sm:$0xff] %vm3680_vm5, %v3874_v22 }
 0x413   : > { %3907 = vst [vmem:[%s9896_s5 + $0xe0] sm:$0xff] %v3875_v24 }
 0x414   : > { %3908 = vst.msk [vmem:[%s9896_s5 + $0xe8] sm:$0xff] %vm3680_vm5, %v3876_v11 }
 0x415   : > { %3909 = vst [vmem:[%s9896_s5 + $0xf0] sm:$0xff] %v3877_v13 }
 0x416   : > { %3910 = vst.msk [vmem:[%s9896_s5 + $0xf8] sm:$0xff] %vm3680_vm5, %v3878_v51 }
 0x417 PF: > { %p4303_p4 = scmp.ge.s32.totalorder %s4919_s18, 2  ;;  %s3947_s25 = sand.u32 1, %s4907_s15  }
 0x418   : > { %s3948_s22 = scalar_lea.sflag [#allocation3], %s3947_s25 }
 0x419   : > { %p4300_p5 = pnand %p4303_p4, %p4988_p6 }
 0x41b   : > { %p4301_p7 = pneg %p4300_p5 }
 0x41d   : > { %4902 = dma.done.wait (%p4301_p7), %s3948_s22, 256  }
 0x41e   : > { %4904 = vsyncadd (%p4301_p7), %s3948_s22, 4294967040  ;;  %p15_p8 = scmp.ge.s32.totalorder %s4971_s21, 4   ;;  %s10987_s15 = smov %s4911_s16 }
 0x41f   : > { %s10988_s16 = smov %s4915_s17  ;;  %s10989_s17 = smov %s4982_s24 }
 0x420   : > { %s10990_s18 = smov %s4971_s21  ;;  %17 = sbr.rel (!%p15_p8) target bundleno = 3 (0x3), region = 79 }
 0x425   :  { %3962 = vsyncpa [#allocation3], 1 }
 0x426   :  { %3964 = vsyncpa [#allocation3 + $0x1], 1 }

</bundles_post_ra>
